<compile_context>
chip_gen: v7x
topology: tpu7x:2x2x1
jax: 0.10.0
libtpu: 0.0.40
codegen_flags: <defaults>
</compile_context>

<pallas_src>
import jax
import jax.numpy as jnp
from jax.experimental import pallas as pl
from jax.experimental.pallas import tpu as pltpu


KSIZE = 7   # spatial-attention conv kernel size
PAD = 3     # spatial-attention conv padding


def cbam_kernel(x_ref, w1t_ref, w2t_ref, khi_ref, klo_ref, o_ref):
    # x_ref   : VMEM (Nb, C, HW)   -- Nb images, lane-dense spatial axis
    # w1t_ref : VMEM (C, Cr)       -- 1x1 conv #1 weight, transposed
    # w2t_ref : VMEM (Cr, C)       -- 1x1 conv #2 weight, transposed, x2 folded in
    # khi_ref : VMEM (2*HW, HW)    -- folded 7x7 conv operator, bf16 hi part
    # klo_ref : VMEM (2*HW, HW)    -- folded 7x7 conv operator, bf16 lo part
    # o_ref   : VMEM (Nb, C, HW)
    # TODO(synk): when x is bf16, keep the elementwise scaling in bf16 on
    # v6e/v7x (f32 only for reductions / matmul accumulation) to halve
    # HBM bytes and VMEM pressure; f32 upcast kept here (demo input is f32).
    x = x_ref[...].astype(jnp.float32)                    # (Nb, C, HW)

    # ---------------- Channel attention ----------------
    # AdaptiveAvgPool2d(1) for *both* branches (as in the reference module);
    # the (mlp + mlp) factor 2 is pre-folded into w2^T by the wrapper.
    pooled = jnp.mean(x, axis=2)                          # (Nb, C)
    # Tiny MLP (Cr ~ C/16): near-empty MXU pushes, negligible vs the rest.
    h = jnp.maximum(
        jnp.dot(pooled, w1t_ref[...], preferred_element_type=jnp.float32),
        0.0,
    )                                                     # (Nb, Cr)
    ca = jax.nn.sigmoid(
        jnp.dot(h, w2t_ref[...], preferred_element_type=jnp.float32))   # (Nb, C)

    # Write x*ca straight into the output block (buffer reuse); x is dead
    # afterwards, so only ~one f32 block is live at a time.
    o_ref[...] = (x * ca[:, :, None]).astype(o_ref.dtype)

    # ---------------- Spatial attention ----------------
    x1 = o_ref[...].astype(jnp.float32)                   # (Nb, C, HW)
    avg_c = jnp.mean(x1, axis=1)                          # (Nb, HW)
    max_c = jnp.max(x1, axis=1)                           # (Nb, HW)
    feat = jnp.concatenate([avg_c, max_c], axis=1)        # (Nb, 2*HW)

    # 7x7 zero-padded cross-correlation as one lane-dense matmul, computed as
    # a 3-pass bf16 hi/lo split with f32 accumulation (~f32 accurate; the
    # f_lo @ k_lo term is dropped, which is standard).
    f_hi = feat.astype(jnp.bfloat16)
    f_lo = (feat - f_hi.astype(jnp.float32)).astype(jnp.bfloat16)
    conv = (jnp.dot(f_hi, khi_ref[...], preferred_element_type=jnp.float32)
            + jnp.dot(f_lo, khi_ref[...], preferred_element_type=jnp.float32)
            + jnp.dot(f_hi, klo_ref[...], preferred_element_type=jnp.float32))
    sa = jax.nn.sigmoid(conv)                             # (Nb, HW)

    o_ref[...] = (o_ref[...].astype(jnp.float32)
                  * sa[:, None, :]).astype(o_ref.dtype)


def _spatial_conv_operator(w_sp, H, W):
    """Fold Conv2d(2, 1, 7, padding=3, bias=False) into a (2*H*W, H*W) matrix.

    conv_flat[n, h*W+w] = sum_{c,p,q} feat[n, c*H*W + p*W + q] * K[c*H*W+p*W+q, h*W+w]
    with K[(c,p,q),(h,w)] = w_sp[0, c, p-h+3, q-w+3] when in range, else 0.
    """
    k = w_sp.reshape(2, KSIZE, KSIZE).astype(jnp.float32)
    p = jnp.arange(H)
    h = jnp.arange(H)
    q = jnp.arange(W)
    w = jnp.arange(W)
    di = p[:, None] - h[None, :] + PAD                    # (H, H)
    dj = q[:, None] - w[None, :] + PAD                    # (W, W)
    vi = (di >= 0) & (di < KSIZE)
    vj = (dj >= 0) & (dj < KSIZE)
    di_c = jnp.clip(di, 0, KSIZE - 1)
    dj_c = jnp.clip(dj, 0, KSIZE - 1)
    # K4[c, p, q, h, w] = k[c, p-h+3, q-w+3] * valid
    K4 = k[:, di_c[:, None, :, None], dj_c[None, :, None, :]]      # (2, H, W, H, W)
    valid = (vi[:, None, :, None] & vj[None, :, None, :])[None]    # (1, H, W, H, W)
    K4 = K4 * valid.astype(jnp.float32)
    return K4.reshape(2 * H * W, H * W)


def _vmem_physical_bytes():
    """Physical VMEM of the local TPU generation; conservative v7x fallback."""
    try:
        return int(pltpu.get_tpu_info().vmem_capacity_bytes)
    except Exception:
        return 64 * 1024 * 1024


def _pick_nb(N, C, HW, itemsize, budget_bytes):
    """Images per grid step: largest divisor of N whose block fits the budget."""
    # Per image per step: in + out blocks (double-buffered by the pipeline)
    # plus ~2 f32 intermediates live inside the body.
    per_image = 4 * C * HW * itemsize + 2 * C * HW * 4
    cap = max(1, min(N, int(budget_bytes) // max(1, per_image)))
    nb = 1
    for d in range(1, cap + 1):
        if N % d == 0:
            nb = d
    return nb


def cbam(x, w1, w2, w_sp):
    """x: (N, C, H, W) NCHW; w1: (Cr, C); w2: (C, Cr); w_sp: (1, 2, 7, 7)."""
    N, C, H, W = x.shape
    Cr = w1.shape[0]
    HW = H * W
    itemsize = jnp.dtype(x.dtype).itemsize

    # Lane-dense spatial layout; grid-invariant operands prepared ONCE here.
    x3 = x.reshape(N, C, HW)
    w1t = jnp.transpose(w1).astype(jnp.float32)                  # (C, Cr)
    w2t = (2.0 * jnp.transpose(w2)).astype(jnp.float32)          # (Cr, C); folds mlp+mlp
    ksp = _spatial_conv_operator(w_sp, H, W)                     # (2*HW, HW) f32
    k_hi = ksp.astype(jnp.bfloat16)
    k_lo = (ksp - k_hi.astype(jnp.float32)).astype(jnp.bfloat16)
    # TODO(synk): at realistic HW (e.g. 56x56) tile K's output columns with a
    # second grid axis (feat stays resident) instead of keeping the dense
    # O(HW^2) operator fully resident; required to fit v7x's 64 MiB VMEM.

    # Per-generation VMEM budgeting (v5e/v6e: 128 MiB, v7x: 64 MiB physical).
    vmem_phys = _vmem_physical_bytes()
    vmem_limit = int(min(vmem_phys * 3 // 4, 100 * 1024 * 1024))
    fixed_bytes = 2 * 2 * (2 * HW) * HW * 2        # K hi+lo, x2 buffering worst case
    fixed_bytes += 2 * 2 * (C * Cr) * 4            # w1^T + w2^T, x2 buffering worst case
    nb = _pick_nb(N, C, HW, itemsize, int(vmem_limit * 0.8) - fixed_bytes)
    grid = (N // nb,)

    flops = int(N * (5 * C * HW + 12 * HW * HW + 4 * C * Cr))
    transcendentals = int(N * (C + HW))
    bytes_accessed = int(2 * N * C * HW * itemsize + 4 * 2 * HW * HW
                         + 2 * C * Cr * 4)

    def run(single_buffer_weights):
        if single_buffer_weights:
            def wspec(shape):
                return pl.BlockSpec(shape, lambda n: (0, 0),
                                    pipeline_mode=pl.Buffered(1))
        else:
            def wspec(shape):
                return pl.BlockSpec(shape, lambda n: (0, 0))
        return pl.pallas_call(
            cbam_kernel,
            out_shape=jax.ShapeDtypeStruct((N, C, HW), x.dtype),
            grid=grid,
            in_specs=[
                pl.BlockSpec((nb, C, HW), lambda n: (n, 0, 0)),   # x
                wspec((C, Cr)),                                   # w1^T
                wspec((Cr, C)),                                   # 2 * w2^T
                wspec((2 * HW, HW)),                              # K hi (bf16)
                wspec((2 * HW, HW)),                              # K lo (bf16)
            ],
            out_specs=pl.BlockSpec((nb, C, HW), lambda n: (n, 0, 0)),
            compiler_params=pltpu.CompilerParams(
                dimension_semantics=("parallel",),
                vmem_limit_bytes=vmem_limit,
            ),
            cost_estimate=pl.CostEstimate(
                flops=flops,
                transcendentals=transcendentals,
                bytes_accessed=bytes_accessed,
            ),
        )(x3, w1t, w2t, k_hi, k_lo)

    try:
        out3 = run(True)
    except Exception:
        # Fallback if this JAX build rejects Buffered(1) single-buffering of
        # the grid-invariant weight operands.
        out3 = run(False)
    return out3.reshape(N, C, H, W)


def cbam_ref(x, w1, w2, w_sp):
    """Pure-JAX reference mirroring the PyTorch forward."""
    pooled = jnp.mean(x, axis=(2, 3), keepdims=True)          # (N,C,1,1) (both pools)
    h = jax.nn.relu(jnp.einsum("rc,nchw->nrhw", w1, pooled))
    mlp = jnp.einsum("cr,nrhw->nchw", w2, h)
    ca = jax.nn.sigmoid(mlp + mlp)
    x1 = x * ca
    avg_c = jnp.mean(x1, axis=1, keepdims=True)
    max_c = jnp.max(x1, axis=1, keepdims=True)
    x_cat = jnp.concatenate([avg_c, max_c], axis=1)
    conv = jax.lax.conv_general_dilated(
        x_cat, w_sp, (1, 1), ((PAD, PAD), (PAD, PAD)),
        dimension_numbers=("NCHW", "OIHW", "NCHW"))
    sa = jax.nn.sigmoid(conv)
    return x1 * sa


if __name__ == "__main__":
    # Small shapes consistent with the module: reduction=16 requires C >= 16.
    N, C, H, W = 2, 64, 16, 16
    reduction = 16
    Cr = C // reduction

    key = jax.random.PRNGKey(0)
    kx, k1, k2, k3 = jax.random.split(key, 4)
    x = jax.random.normal(kx, (N, C, H, W), jnp.float32)
    w1 = jax.random.normal(k1, (Cr, C), jnp.float32) * 0.1      # Conv2d(C, Cr, 1) weight
    w2 = jax.random.normal(k2, (C, Cr), jnp.float32) * 0.1      # Conv2d(Cr, C, 1) weight
    w_sp = jax.random.normal(k3, (1, 2, KSIZE, KSIZE), jnp.float32) * 0.1  # Conv2d(2,1,7)

    out = jax.block_until_ready(cbam(x, w1, w2, w_sp))
    ref = jax.block_until_ready(cbam_ref(x, w1, w2, w_sp))

    assert out.shape == (N, C, H, W) and out.dtype == jnp.float32
    err = float(jnp.max(jnp.abs(out - ref)))
    assert jnp.allclose(out, ref, atol=2e-4, rtol=2e-4), err
    print("KERNEL_OK")
</pallas_src>

<mosaic_0001>
module attributes {stable_mosaic.version = 11 : i64} {
  func.func @cbam_kernel(%arg0: i32, %arg1: memref<2x64x256xf32, #tpu.memory_space<vmem>>, %arg2: memref<64x4xf32, #tpu.memory_space<vmem>>, %arg3: memref<4x64xf32, #tpu.memory_space<vmem>>, %arg4: memref<512x256xbf16, #tpu.memory_space<vmem>>, %arg5: memref<512x256xbf16, #tpu.memory_space<vmem>>, %arg6: memref<2x64x256xf32, #tpu.memory_space<vmem>>) attributes {dimension_semantics = [#tpu.dimension_semantics<parallel>], iteration_bounds = array<i64: 1>, scalar_prefetch = 0 : i64, scratch_operands = 0 : i64, tpu.core_type = #tpu.core_type<tc>, window_params = [{transform_indices = @transform_0, window_bounds = array<i64: 2, 64, 256>}, {pipeline_mode = #tpu.pipeline_mode<synchronous>, transform_indices = @transform_1, window_bounds = array<i64: 64, 4>}, {pipeline_mode = #tpu.pipeline_mode<synchronous>, transform_indices = @transform_2, window_bounds = array<i64: 4, 64>}, {pipeline_mode = #tpu.pipeline_mode<synchronous>, transform_indices = @transform_3, window_bounds = array<i64: 512, 256>}, {pipeline_mode = #tpu.pipeline_mode<synchronous>, transform_indices = @transform_4, window_bounds = array<i64: 512, 256>}, {transform_indices = @transform_5, window_bounds = array<i64: 2, 64, 256>}]} {
    %c0 = arith.constant 0 : index
    %c0_0 = arith.constant 0 : index
    %c0_1 = arith.constant 0 : index
    %0 = vector.load %arg1[%c0, %c0_0, %c0_1] : memref<2x64x256xf32, #tpu.memory_space<vmem>>, vector<2x64x256xf32>
    %cst = arith.constant dense<0.000000e+00> : vector<2x64xf32>
    %1 = vector.multi_reduction <add>, %0, %cst [2] : vector<2x64x256xf32> to vector<2x64xf32>
    %cst_2 = arith.constant 2.560000e+02 : f32
    %2 = vector.broadcast %cst_2 : f32 to vector<2x64xf32>
    %3 = arith.divf %1, %2 : vector<2x64xf32>
    %c0_3 = arith.constant 0 : index
    %c0_4 = arith.constant 0 : index
    %4 = vector.load %arg2[%c0_3, %c0_4] : memref<64x4xf32, #tpu.memory_space<vmem>>, vector<64x4xf32>
    %cst_5 = arith.constant dense<0.000000e+00> : vector<2x4xf32>
    %5 = tpu.matmul %3, %4, %cst_5 {dimension_numbers = #tpu.dot_dimension_numbers<[1], [0], [0], [1], [0, 0, 1, 1], [], []>} : vector<2x64xf32>, vector<64x4xf32>, vector<2x4xf32> -> vector<2x4xf32>
    %cst_6 = arith.constant 0.000000e+00 : f32
    %6 = vector.broadcast %cst_6 : f32 to vector<2x4xf32>
    %7 = arith.maximumf %5, %6 : vector<2x4xf32>
    %c0_7 = arith.constant 0 : index
    %c0_8 = arith.constant 0 : index
    %8 = vector.load %arg3[%c0_7, %c0_8] : memref<4x64xf32, #tpu.memory_space<vmem>>, vector<4x64xf32>
    %cst_9 = arith.constant dense<0.000000e+00> : vector<2x64xf32>
    %9 = tpu.matmul %7, %8, %cst_9 {dimension_numbers = #tpu.dot_dimension_numbers<[1], [0], [0], [1], [0, 0, 1, 1], [], []>} : vector<2x4xf32>, vector<4x64xf32>, vector<2x64xf32> -> vector<2x64xf32>
    %10 = arith.negf %9 : vector<2x64xf32>
    %11 = math.exp %10 : vector<2x64xf32>
    %cst_10 = arith.constant 1.000000e+00 : f32
    %12 = vector.broadcast %cst_10 : f32 to vector<2x64xf32>
    %13 = arith.addf %12, %11 : vector<2x64xf32>
    %14 = arith.divf %12, %13 : vector<2x64xf32>
    %15 = vector.shape_cast %14 : vector<2x64xf32> to vector<2x64x1xf32>
    %16 = vector.broadcast %15 : vector<2x64x1xf32> to vector<2x64x256xf32>
    %17 = arith.mulf %0, %16 : vector<2x64x256xf32>
    %c0_11 = arith.constant 0 : index
    %c0_12 = arith.constant 0 : index
    %c0_13 = arith.constant 0 : index
    %18 = vector.load %arg6[%c0_11, %c0_12, %c0_13] : memref<2x64x256xf32, #tpu.memory_space<vmem>>, vector<2x64x256xf32>
    tpu.vector_store %arg6[%c0_11, %c0_12, %c0_13], %17 {strides = array<i32>} : memref<2x64x256xf32, #tpu.memory_space<vmem>>, vector<2x64x256xf32>,
    %c0_14 = arith.constant 0 : index
    %c0_15 = arith.constant 0 : index
    %c0_16 = arith.constant 0 : index
    %19 = vector.load %arg6[%c0_14, %c0_15, %c0_16] : memref<2x64x256xf32, #tpu.memory_space<vmem>>, vector<2x64x256xf32>
    %cst_17 = arith.constant dense<0.000000e+00> : vector<2x256xf32>
    %20 = vector.multi_reduction <add>, %19, %cst_17 [1] : vector<2x64x256xf32> to vector<2x256xf32>
    %cst_18 = arith.constant 6.400000e+01 : f32
    %21 = vector.broadcast %cst_18 : f32 to vector<2x256xf32>
    %22 = arith.divf %20, %21 : vector<2x256xf32>
    %cst_19 = arith.constant dense<0xFF800000> : vector<2x256xf32>
    %23 = vector.multi_reduction <maximumf>, %19, %cst_19 [1] : vector<2x64x256xf32> to vector<2x256xf32>
    %24 = tpu.concatenate %22, %23 in 1 : vector<2x256xf32>, vector<2x256xf32> -> vector<2x512xf32>
    %25 = arith.truncf %24 : vector<2x512xf32> to vector<2x512xbf16>
    %26 = arith.extf %25 : vector<2x512xbf16> to vector<2x512xf32>
    %27 = arith.subf %24, %26 : vector<2x512xf32>
    %28 = arith.truncf %27 : vector<2x512xf32> to vector<2x512xbf16>
    %c0_20 = arith.constant 0 : index
    %c0_21 = arith.constant 0 : index
    %29 = vector.load %arg4[%c0_20, %c0_21] : memref<512x256xbf16, #tpu.memory_space<vmem>>, vector<512x256xbf16>
    %cst_22 = arith.constant dense<0.000000e+00> : vector<2x256xf32>
    %30 = tpu.matmul %25, %29, %cst_22 {dimension_numbers = #tpu.dot_dimension_numbers<[1], [0], [0], [1], [0, 0, 1, 1], [], []>} : vector<2x512xbf16>, vector<512x256xbf16>, vector<2x256xf32> -> vector<2x256xf32>
    %c0_23 = arith.constant 0 : index
    %c0_24 = arith.constant 0 : index
    %31 = vector.load %arg4[%c0_23, %c0_24] : memref<512x256xbf16, #tpu.memory_space<vmem>>, vector<512x256xbf16>
    %cst_25 = arith.constant dense<0.000000e+00> : vector<2x256xf32>
    %32 = tpu.matmul %28, %31, %cst_25 {dimension_numbers = #tpu.dot_dimension_numbers<[1], [0], [0], [1], [0, 0, 1, 1], [], []>} : vector<2x512xbf16>, vector<512x256xbf16>, vector<2x256xf32> -> vector<2x256xf32>
    %33 = arith.addf %30, %32 : vector<2x256xf32>
    %c0_26 = arith.constant 0 : index
    %c0_27 = arith.constant 0 : index
    %34 = vector.load %arg5[%c0_26, %c0_27] : memref<512x256xbf16, #tpu.memory_space<vmem>>, vector<512x256xbf16>
    %cst_28 = arith.constant dense<0.000000e+00> : vector<2x256xf32>
    %35 = tpu.matmul %25, %34, %cst_28 {dimension_numbers = #tpu.dot_dimension_numbers<[1], [0], [0], [1], [0, 0, 1, 1], [], []>} : vector<2x512xbf16>, vector<512x256xbf16>, vector<2x256xf32> -> vector<2x256xf32>
    %36 = arith.addf %33, %35 : vector<2x256xf32>
    %37 = arith.negf %36 : vector<2x256xf32>
    %38 = math.exp %37 : vector<2x256xf32>
    %cst_29 = arith.constant 1.000000e+00 : f32
    %39 = vector.broadcast %cst_29 : f32 to vector<2x256xf32>
    %40 = arith.addf %39, %38 : vector<2x256xf32>
    %41 = arith.divf %39, %40 : vector<2x256xf32>
    %c0_30 = arith.constant 0 : index
    %c0_31 = arith.constant 0 : index
    %c0_32 = arith.constant 0 : index
    %42 = vector.load %arg6[%c0_30, %c0_31, %c0_32] : memref<2x64x256xf32, #tpu.memory_space<vmem>>, vector<2x64x256xf32>
    %43 = vector.shape_cast %41 : vector<2x256xf32> to vector<2x1x256xf32>
    %44 = vector.broadcast %43 : vector<2x1x256xf32> to vector<2x64x256xf32>
    %45 = arith.mulf %42, %44 : vector<2x64x256xf32>
    %c0_33 = arith.constant 0 : index
    %c0_34 = arith.constant 0 : index
    %c0_35 = arith.constant 0 : index
    %46 = vector.load %arg6[%c0_33, %c0_34, %c0_35] : memref<2x64x256xf32, #tpu.memory_space<vmem>>, vector<2x64x256xf32>
    tpu.vector_store %arg6[%c0_33, %c0_34, %c0_35], %45 {strides = array<i32>} : memref<2x64x256xf32, #tpu.memory_space<vmem>>, vector<2x64x256xf32>,
    return
  }
  func.func @transform_0(%arg0: i32) -> (i32, i32, i32) {
    %c0_i32 = arith.constant 0 : i32
    %c0_i32_0 = arith.constant 0 : i32
    %c0_i32_1 = arith.constant 0 : i32
    return %arg0, %c0_i32, %c0_i32_0 : i32, i32, i32
  }
  func.func @transform_1(%arg0: i32) -> (i32, i32) {
    %c0_i32 = arith.constant 0 : i32
    %c0_i32_0 = arith.constant 0 : i32
    %c0_i32_1 = arith.constant 0 : i32
    return %c0_i32, %c0_i32_0 : i32, i32
  }
  func.func @transform_2(%arg0: i32) -> (i32, i32) {
    %c0_i32 = arith.constant 0 : i32
    %c0_i32_0 = arith.constant 0 : i32
    %c0_i32_1 = arith.constant 0 : i32
    return %c0_i32, %c0_i32_0 : i32, i32
  }
  func.func @transform_3(%arg0: i32) -> (i32, i32) {
    %c0_i32 = arith.constant 0 : i32
    %c0_i32_0 = arith.constant 0 : i32
    %c0_i32_1 = arith.constant 0 : i32
    return %c0_i32, %c0_i32_0 : i32, i32
  }
  func.func @transform_4(%arg0: i32) -> (i32, i32) {
    %c0_i32 = arith.constant 0 : i32
    %c0_i32_0 = arith.constant 0 : i32
    %c0_i32_1 = arith.constant 0 : i32
    return %c0_i32, %c0_i32_0 : i32, i32
  }
  func.func @transform_5(%arg0: i32) -> (i32, i32, i32) {
    %c0_i32 = arith.constant 0 : i32
    %c0_i32_0 = arith.constant 0 : i32
    %c0_i32_1 = arith.constant 0 : i32
    return %arg0, %c0_i32, %c0_i32_0 : i32, i32, i32
  }
}

module attributes {stable_mosaic.version = 11 : i64} {
  func.func @cbam_kernel(%arg0: i32, %arg1: memref<2x64x256xf32, #tpu.memory_space<vmem>>, %arg2: memref<64x4xf32, #tpu.memory_space<vmem>>, %arg3: memref<4x64xf32, #tpu.memory_space<vmem>>, %arg4: memref<512x256xbf16, #tpu.memory_space<vmem>>, %arg5: memref<512x256xbf16, #tpu.memory_space<vmem>>, %arg6: memref<2x64x256xf32, #tpu.memory_space<vmem>>) attributes {dimension_semantics = [#tpu.dimension_semantics<parallel>], iteration_bounds = array<i64: 1>, scalar_prefetch = 0 : i64, scratch_operands = 0 : i64, tpu.core_type = #tpu.core_type<tc>, window_params = [{transform_indices = @transform_0, window_bounds = array<i64: 2, 64, 256>}, {pipeline_mode = #tpu.pipeline_mode<synchronous>, transform_indices = @transform_1, window_bounds = array<i64: 64, 4>}, {pipeline_mode = #tpu.pipeline_mode<synchronous>, transform_indices = @transform_2, window_bounds = array<i64: 4, 64>}, {pipeline_mode = #tpu.pipeline_mode<synchronous>, transform_indices = @transform_3, window_bounds = array<i64: 512, 256>}, {pipeline_mode = #tpu.pipeline_mode<synchronous>, transform_indices = @transform_4, window_bounds = array<i64: 512, 256>}, {transform_indices = @transform_5, window_bounds = array<i64: 2, 64, 256>}]} {
    %c0 = arith.constant 0 : index
    %c0_0 = arith.constant 0 : index
    %c0_1 = arith.constant 0 : index
    %0 = vector.load %arg1[%c0, %c0_0, %c0_1] : memref<2x64x256xf32, #tpu.memory_space<vmem>>, vector<2x64x256xf32>
    %cst = arith.constant dense<0.000000e+00> : vector<2x64xf32>
    %1 = vector.multi_reduction <add>, %0, %cst [2] : vector<2x64x256xf32> to vector<2x64xf32>
    %cst_2 = arith.constant 2.560000e+02 : f32
    %2 = vector.broadcast %cst_2 : f32 to vector<2x64xf32>
    %3 = arith.divf %1, %2 : vector<2x64xf32>
    %c0_3 = arith.constant 0 : index
    %c0_4 = arith.constant 0 : index
    %4 = vector.load %arg2[%c0_3, %c0_4] : memref<64x4xf32, #tpu.memory_space<vmem>>, vector<64x4xf32>
    %cst_5 = arith.constant dense<0.000000e+00> : vector<2x4xf32>
    %5 = tpu.matmul %3, %4, %cst_5 {dimension_numbers = #tpu.dot_dimension_numbers<[1], [0], [0], [1], [0, 0, 1, 1], [], []>} : vector<2x64xf32>, vector<64x4xf32>, vector<2x4xf32> -> vector<2x4xf32>
    %cst_6 = arith.constant 0.000000e+00 : f32
    %6 = vector.broadcast %cst_6 : f32 to vector<2x4xf32>
    %7 = arith.maximumf %5, %6 : vector<2x4xf32>
    %c0_7 = arith.constant 0 : index
    %c0_8 = arith.constant 0 : index
    %8 = vector.load %arg3[%c0_7, %c0_8] : memref<4x64xf32, #tpu.memory_space<vmem>>, vector<4x64xf32>
    %cst_9 = arith.constant dense<0.000000e+00> : vector<2x64xf32>
    %9 = tpu.matmul %7, %8, %cst_9 {dimension_numbers = #tpu.dot_dimension_numbers<[1], [0], [0], [1], [0, 0, 1, 1], [], []>} : vector<2x4xf32>, vector<4x64xf32>, vector<2x64xf32> -> vector<2x64xf32>
    %10 = arith.negf %9 : vector<2x64xf32>
    %11 = math.exp %10 : vector<2x64xf32>
    %cst_10 = arith.constant 1.000000e+00 : f32
    %12 = vector.broadcast %cst_10 : f32 to vector<2x64xf32>
    %13 = arith.addf %12, %11 : vector<2x64xf32>
    %14 = arith.divf %12, %13 : vector<2x64xf32>
    %15 = vector.shape_cast %14 : vector<2x64xf32> to vector<2x64x1xf32>
    %16 = vector.broadcast %15 : vector<2x64x1xf32> to vector<2x64x256xf32>
    %17 = arith.mulf %0, %16 : vector<2x64x256xf32>
    %c0_11 = arith.constant 0 : index
    %c0_12 = arith.constant 0 : index
    %c0_13 = arith.constant 0 : index
    %18 = vector.load %arg6[%c0_11, %c0_12, %c0_13] : memref<2x64x256xf32, #tpu.memory_space<vmem>>, vector<2x64x256xf32>
    tpu.vector_store %arg6[%c0_11, %c0_12, %c0_13], %17 {strides = array<i32>} : memref<2x64x256xf32, #tpu.memory_space<vmem>>, vector<2x64x256xf32>,
    %c0_14 = arith.constant 0 : index
    %c0_15 = arith.constant 0 : index
    %c0_16 = arith.constant 0 : index
    %19 = vector.load %arg6[%c0_14, %c0_15, %c0_16] : memref<2x64x256xf32, #tpu.memory_space<vmem>>, vector<2x64x256xf32>
    %cst_17 = arith.constant dense<0.000000e+00> : vector<2x256xf32>
    %20 = vector.multi_reduction <add>, %19, %cst_17 [1] : vector<2x64x256xf32> to vector<2x256xf32>
    %cst_18 = arith.constant 6.400000e+01 : f32
    %21 = vector.broadcast %cst_18 : f32 to vector<2x256xf32>
    %22 = arith.divf %20, %21 : vector<2x256xf32>
    %cst_19 = arith.constant dense<0xFF800000> : vector<2x256xf32>
    %23 = vector.multi_reduction <maximumf>, %19, %cst_19 [1] : vector<2x64x256xf32> to vector<2x256xf32>
    %24 = tpu.concatenate %22, %23 in 1 : vector<2x256xf32>, vector<2x256xf32> -> vector<2x512xf32>
    %25 = arith.truncf %24 : vector<2x512xf32> to vector<2x512xbf16>
    %26 = arith.extf %25 : vector<2x512xbf16> to vector<2x512xf32>
    %27 = arith.subf %24, %26 : vector<2x512xf32>
    %28 = arith.truncf %27 : vector<2x512xf32> to vector<2x512xbf16>
    %c0_20 = arith.constant 0 : index
    %c0_21 = arith.constant 0 : index
    %29 = vector.load %arg4[%c0_20, %c0_21] : memref<512x256xbf16, #tpu.memory_space<vmem>>, vector<512x256xbf16>
    %cst_22 = arith.constant dense<0.000000e+00> : vector<2x256xf32>
    %30 = tpu.matmul %25, %29, %cst_22 {dimension_numbers = #tpu.dot_dimension_numbers<[1], [0], [0], [1], [0, 0, 1, 1], [], []>} : vector<2x512xbf16>, vector<512x256xbf16>, vector<2x256xf32> -> vector<2x256xf32>
    %c0_23 = arith.constant 0 : index
    %c0_24 = arith.constant 0 : index
    %31 = vector.load %arg4[%c0_23, %c0_24] : memref<512x256xbf16, #tpu.memory_space<vmem>>, vector<512x256xbf16>
    %cst_25 = arith.constant dense<0.000000e+00> : vector<2x256xf32>
    %32 = tpu.matmul %28, %31, %cst_25 {dimension_numbers = #tpu.dot_dimension_numbers<[1], [0], [0], [1], [0, 0, 1, 1], [], []>} : vector<2x512xbf16>, vector<512x256xbf16>, vector<2x256xf32> -> vector<2x256xf32>
    %33 = arith.addf %30, %32 : vector<2x256xf32>
    %c0_26 = arith.constant 0 : index
    %c0_27 = arith.constant 0 : index
    %34 = vector.load %arg5[%c0_26, %c0_27] : memref<512x256xbf16, #tpu.memory_space<vmem>>, vector<512x256xbf16>
    %cst_28 = arith.constant dense<0.000000e+00> : vector<2x256xf32>
    %35 = tpu.matmul %25, %34, %cst_28 {dimension_numbers = #tpu.dot_dimension_numbers<[1], [0], [0], [1], [0, 0, 1, 1], [], []>} : vector<2x512xbf16>, vector<512x256xbf16>, vector<2x256xf32> -> vector<2x256xf32>
    %36 = arith.addf %33, %35 : vector<2x256xf32>
    %37 = arith.negf %36 : vector<2x256xf32>
    %38 = math.exp %37 : vector<2x256xf32>
    %cst_29 = arith.constant 1.000000e+00 : f32
    %39 = vector.broadcast %cst_29 : f32 to vector<2x256xf32>
    %40 = arith.addf %39, %38 : vector<2x256xf32>
    %41 = arith.divf %39, %40 : vector<2x256xf32>
    %c0_30 = arith.constant 0 : index
    %c0_31 = arith.constant 0 : index
    %c0_32 = arith.constant 0 : index
    %42 = vector.load %arg6[%c0_30, %c0_31, %c0_32] : memref<2x64x256xf32, #tpu.memory_space<vmem>>, vector<2x64x256xf32>
    %43 = vector.shape_cast %41 : vector<2x256xf32> to vector<2x1x256xf32>
    %44 = vector.broadcast %43 : vector<2x1x256xf32> to vector<2x64x256xf32>
    %45 = arith.mulf %42, %44 : vector<2x64x256xf32>
    %c0_33 = arith.constant 0 : index
    %c0_34 = arith.constant 0 : index
    %c0_35 = arith.constant 0 : index
    %46 = vector.load %arg6[%c0_33, %c0_34, %c0_35] : memref<2x64x256xf32, #tpu.memory_space<vmem>>, vector<2x64x256xf32>
    tpu.vector_store %arg6[%c0_33, %c0_34, %c0_35], %45 {strides = array<i32>} : memref<2x64x256xf32, #tpu.memory_space<vmem>>, vector<2x64x256xf32>,
    return
  }
  func.func @transform_0(%arg0: i32) -> (i32, i32, i32) {
    %c0_i32 = arith.constant 0 : i32
    %c0_i32_0 = arith.constant 0 : i32
    %c0_i32_1 = arith.constant 0 : i32
    return %arg0, %c0_i32, %c0_i32_0 : i32, i32, i32
  }
  func.func @transform_1(%arg0: i32) -> (i32, i32) {
    %c0_i32 = arith.constant 0 : i32
    %c0_i32_0 = arith.constant 0 : i32
    %c0_i32_1 = arith.constant 0 : i32
    return %c0_i32, %c0_i32_0 : i32, i32
  }
  func.func @transform_2(%arg0: i32) -> (i32, i32) {
    %c0_i32 = arith.constant 0 : i32
    %c0_i32_0 = arith.constant 0 : i32
    %c0_i32_1 = arith.constant 0 : i32
    return %c0_i32, %c0_i32_0 : i32, i32
  }
  func.func @transform_3(%arg0: i32) -> (i32, i32) {
    %c0_i32 = arith.constant 0 : i32
    %c0_i32_0 = arith.constant 0 : i32
    %c0_i32_1 = arith.constant 0 : i32
    return %c0_i32, %c0_i32_0 : i32, i32
  }
  func.func @transform_4(%arg0: i32) -> (i32, i32) {
    %c0_i32 = arith.constant 0 : i32
    %c0_i32_0 = arith.constant 0 : i32
    %c0_i32_1 = arith.constant 0 : i32
    return %c0_i32, %c0_i32_0 : i32, i32
  }
  func.func @transform_5(%arg0: i32) -> (i32, i32, i32) {
    %c0_i32 = arith.constant 0 : i32
    %c0_i32_0 = arith.constant 0 : i32
    %c0_i32_1 = arith.constant 0 : i32
    return %arg0, %c0_i32, %c0_i32_0 : i32, i32, i32
  }
}

</mosaic_0001>

<bundles_post_ra>
// kernel: tpu_custom_call.1
= control target key start
LH: loop header
LB: loop body
LE: loop exit
PB: predicated region body
PF: predicated region fallthrough
CT: control target
= control target key end

     0   :  { %10 = vsyncpa [#allocation3], 0  ;;  %s3161_s0 = inlined_call_operand.hbm [shape: f32[2,64,256], index: 0, kind: input, shape index: {}]   ;;  %s3162_s1 = inlined_call_operand.vmem [shape: f32[64,4], index: 1, kind: input, shape index: {}]   ;;  %s3163_s2 = inlined_call_operand.vmem [shape: f32[4,64], index: 2, kind: input, shape index: {}]   ;;  %s3164_s3 = inlined_call_operand.hbm [shape: bf16[512,256], index: 3, kind: input, shape index: {}]   ;;  %s3165_s4 = inlined_call_operand.hbm [shape: bf16[512,256], index: 4, kind: input, shape index: {}]   ;;  %s3166_s5 = inlined_call_operand.hbm [shape: f32[2,64,256], index: 5, kind: output, shape index: {}]  }
   0x1   :  { %11 = vsyncpa [#allocation6], 0 }
   0x2   :  { %12 = vsyncpa [#allocation4], 0  ;;  %s2411_s18 = smov [#allocation5]   ;;  %s2317_s22 = scalar_lea.hbm %s3164_s3, 8192 }
   0x3   :  { %s34_s19 = sshll.u32 %s2411_s18, 4  ;;  %p2318_p0 = scmp.ne.s32.totalorder %s3164_s3, %s2317_s22  ;;  %s35_s19 = int_to_ptr.vmem [resolvable:$true] %s34_s19 }
   0x4   :  { %p2321_p1 = scmp.lt.u32.totalorder %s2317_s22, %s3164_s3 }
   0x6   :  { %p2323_p2 = pnand %p2321_p1, %p2318_p0 }
   0x8   :  { %2326 = shalt.err (!%p2323_p2)
}
   0x9   :  { %s2327_s27 = scalar_lea.vmem %s35_s19, 8192  ;;  %p2332_p4 = scmp.lt.s32.totalorder %s35_s19, %s35_s19 }
   0xa   :  { %p2328_p3 = scmp.ne.s32.totalorder %s35_s19, %s2327_s27  ;;  %p2333_p5 = scmp.lt.s32.totalorder %s2327_s27, %s2327_s27 }
   0xc   :  { %p2334_p6 = por %p2333_p5, %p2332_p4 }
   0xe   :  { %p2335_p7 = pnand %p2334_p6, %p2328_p3 }
  0x10   :  { %2338 = shalt.err (!%p2335_p7)
}
  0x11   :  { %s2412_s28 = smov 128   ;;  %s2413_s29 = smov 8  }
  0x12   :  { %40 = dma.hbm_to_vmem [thread:$0]  %s3164_s3, 8192, %s35_s19, [#allocation6], %s2412_s28, %s2412_s28, %s2413_s29  }
  0x13   :  { %s2414_s7 = smov [#allocation2]   ;;  %s2339_s11 = scalar_lea.hbm %s3161_s0, 4096 }
  0x14   :  { %s18_s8 = sshll.u32 %s2414_s7, 4  ;;  %p2340_p8 = scmp.ne.s32.totalorder %s3161_s0, %s2339_s11  ;;  %s19_s8 = int_to_ptr.vmem [resolvable:$true] %s18_s8 }
  0x15   :  { %p2343_p9 = scmp.lt.u32.totalorder %s2339_s11, %s3161_s0 }
  0x17   :  { %p2345_p10 = pnand %p2343_p9, %p2340_p8 }
  0x19   :  { %2348 = shalt.err (!%p2345_p10)
}
  0x1a   :  { %s2349_s16 = scalar_lea.vmem %s19_s8, 4096  ;;  %p2354_p12 = scmp.lt.s32.totalorder %s19_s8, %s19_s8 }
  0x1b   :  { %p2350_p11 = scmp.ne.s32.totalorder %s19_s8, %s2349_s16  ;;  %p2355_p13 = scmp.lt.s32.totalorder %s2349_s16, %s2349_s16 }
  0x1d   :  { %p2356_p0 = por %p2355_p13, %p2354_p12 }
  0x1f   :  { %p2357_p1 = pnand %p2356_p0, %p2350_p11 }
  0x21   :  { %2360 = shalt.err (!%p2357_p1)
}
  0x22   :  { %s2415_s3 = smov 256   ;;  %s2416_s17 = smov 16  }
  0x23   :  { %24 = dma.hbm_to_vmem [thread:$0]  %s3161_s0, 4096, %s19_s8, [#allocation3], %s2415_s3, %s2415_s3, %s2416_s17  }
  0x24   :  { %s2417_s20 = smov [#allocation7]   ;;  %s2361_s24 = scalar_lea.hbm %s3165_s4, 8192 }
  0x25   :  { %s46_s21 = sshll.u32 %s2417_s20, 4  ;;  %p2362_p2 = scmp.ne.s32.totalorder %s3165_s4, %s2361_s24  ;;  %s47_s21 = int_to_ptr.vmem [resolvable:$true] %s46_s21 }
  0x26   :  { %p2365_p3 = scmp.lt.u32.totalorder %s2361_s24, %s3165_s4 }
  0x28   :  { %p2367_p4 = pnand %p2365_p3, %p2362_p2 }
  0x2a   :  { %2370 = shalt.err (!%p2367_p4)
}
  0x2b   :  { %s2371_s6 = scalar_lea.vmem %s47_s21, 8192  ;;  %p2376_p6 = scmp.lt.s32.totalorder %s47_s21, %s47_s21 }
  0x2c   :  { %p2372_p5 = scmp.ne.s32.totalorder %s47_s21, %s2371_s6  ;;  %p2377_p7 = scmp.lt.s32.totalorder %s2371_s6, %s2371_s6 }
  0x2e   :  { %p2378_p8 = por %p2377_p7, %p2376_p6 }
  0x30   :  { %p2379_p9 = pnand %p2378_p8, %p2372_p5 }
  0x32   :  { %2382 = shalt.err (!%p2379_p9)
}
  0x33   :  { %52 = dma.hbm_to_vmem [thread:$0]  %s3165_s4, 8192, %s47_s21, [#allocation6], %s2412_s28, %s2412_s28, %s2413_s29  }
  0x34   :  { %2405 = dma.done.wait [#allocation3], 4096  }
  0x35   :  { %2406 = vsyncadd [#allocation3], 4294963200 }
  0x36   :  { %2407 = dma.done.wait [#allocation6], 16384  }
  0x37   :  { %2408 = vsyncadd [#allocation6], 4294950912  ;;  %v2498_v0 = vld [vmem:[#allocation2 + $0x80] sm:$0xff]  ;;  %v2500_v1 = vld [vmem:[#allocation2 + $0x88] sm:$0xff]  ;;  %v2418_v51 = vmov 0.0|0.0   ;;  %vm2419_vm0 = vmmov 0  }
  0x38   :  { %v2502_v2 = vld [vmem:[#allocation2] sm:$0xff]  ;;  %v118_v3 = vadd.f32 %v2500_v1, %v2498_v0  ;;  %v2506_v4 = vld [vmem:[#allocation2 + $0x8] sm:$0xff]  ;;  %v2508_v5 = vld [vmem:[#allocation2 + $0x90] sm:$0xff]  ;;  %2069 = vmatprep.subr.bf16.mxu0 %v2418_v51  ;;  %v2420_v61 = vmov 0.0   ;;  %vm194_vm1 = vcmask 130112   ;;  %vm201_vm2 = vcmask 195712  }
  0x39   :  { %v2510_v6 = vld [vmem:[#allocation2 + $0x98] sm:$0xff]  ;;  %v94_v7 = vadd.f32 %v2506_v4, %v2502_v2  ;;  %v2514_v8 = vld [vmem:[#allocation2 + $0x10] sm:$0xff]  ;;  %v2522_v12 = vld [vmem:[#allocation2 + $0xa0] sm:$0xff]  ;;  %2061 = vmatprep.mubr.msk.f32.mxu0 %vm2419_vm0, %v2420_v61  ;;  %2064 = vmatprep.subr.mxu1 %v2420_v61  ;;  %vm208_vm3 = vcmask 261312   ;;  %vm215_vm4 = vcmask 326912   ;;  %vm222_vm5 = vcmask 392512  }
  0x3a   :  { %v2516_v9 = vld [vmem:[#allocation2 + $0x18] sm:$0xff]  ;;  %119 = vadd.xlane.f32.xlu1 %v118_v3  ;;  %v121_v10 = vadd.f32 %v2510_v6, %v2508_v5  ;;  %v2524_v13 = vld [vmem:[#allocation2 + $0xa8] sm:$0xff]  ;;  %v2526_v14 = vld [vmem:[#allocation2 + $0x20] sm:$0xff]  ;;  %2066 = vmatprep.mubr.msk.f32.mxu1 %vm2419_vm0, %v2420_v61  ;;  %vm229_vm6 = vcmask 458112   ;;  %vm236_vm7 = vcmask 523712   ;;  %vm277_vm8 = vcmask 1041409  }
  0x3b   :  { %95 = vadd.xlane.f32.xlu0 %v94_v7  ;;  %v97_v11 = vadd.f32 %v2516_v9, %v2514_v8  ;;  %v2528_v15 = vld [vmem:[#allocation2 + $0x28] sm:$0xff]  ;;  %v124_v16 = vadd.f32 %v2524_v13, %v2522_v12  ;;  %v2534_v18 = vld [vmem:[#allocation2 + $0xb0] sm:$0xff]  ;;  %v2536_v19 = vld [vmem:[#allocation2 + $0xb8] sm:$0xff]  ;;  %vm279_vm9 = vcmask 523264   ;;  %vm358_vm10 = vcmask 1043456  }
  0x3c   :  { %v100_v17 = vadd.f32 %v2528_v15, %v2526_v14  ;;  %v2538_v20 = vld [vmem:[#allocation2 + $0x30] sm:$0xff]  ;;  %v2540_v21 = vld [vmem:[#allocation2 + $0x38] sm:$0xff]  ;;  %v86_v22 = vld [vmem:[#allocation2 + $0xc0] sm:$0xff]  ;;  %v127_v24 = vadd.f32 %v2536_v19, %v2534_v18  ;;  %vm354_vm11 = vcmask 31744  }
  0x3d   :  { %v87_v23 = vld [vmem:[#allocation2 + $0xc8] sm:$0xff]  ;;  %v2544_v25 = vld [vmem:[#allocation2 + $0x40] sm:$0xff]  ;;  %v103_v27 = vadd.f32 %v2540_v21, %v2538_v20  ;;  %v2550_v28 = vld [vmem:[#allocation2 + $0xd0] sm:$0xff] }
  0x3e   :  { %122 = vadd.xlane.f32.xlu1 %v121_v10  ;;  %v2546_v26 = vld [vmem:[#allocation2 + $0x48] sm:$0xff]  ;;  %v2552_v29 = vld [vmem:[#allocation2 + $0xd8] sm:$0xff]  ;;  %v130_v30 = vadd.f32 %v87_v23, %v86_v22  ;;  %v2554_v31 = vld [vmem:[#allocation2 + $0x50] sm:$0xff]  ;;  %v183_v10 = vlaneseq }
  0x3f   :  { %98 = vadd.xlane.f32.xlu0 %v97_v11  ;;  %3242 = vst [vmem:[#allocation12_spill] sm:$0xff] %v2552_v29  ;;  %v2556_v32 = vld [vmem:[#allocation2 + $0x58] sm:$0xff]  ;;  %v106_v33 = vadd.f32 %v2546_v26, %v2544_v25  ;;  %v2560_v34 = vld [vmem:[#allocation2 + $0xe0] sm:$0xff]  ;;  %v2562_v35 = vld [vmem:[#allocation2 + $0xe8] sm:$0xff]  ;;  %v133_v36 = vadd.f32 %v2552_v29, %v2550_v28 }
  0x40   :  { %3243 = vst [vmem:[#allocation13_spill] sm:$0xff] %v2560_v34  ;;  %3244 = vst [vmem:[#allocation14_spill] sm:$0xff] %v2562_v35  ;;  %v2566_v37 = vld [vmem:[#allocation2 + $0x60] sm:$0xff]  ;;  %v2568_v38 = vld [vmem:[#allocation2 + $0x68] sm:$0xff]  ;;  %v109_v39 = vadd.f32 %v2556_v32, %v2554_v31  ;;  %v136_v42 = vadd.f32 %v2562_v35, %v2560_v34  ;;  %v2612_v23 = vshrl.u32 %v183_v10, 7 }
  0x41   :  { %v2572_v40 = vld [vmem:[#allocation2 + $0xf0] sm:$0xff]  ;;  %v2574_v41 = vld [vmem:[#allocation2 + $0xf8] sm:$0xff]  ;;  %v112_v45 = vadd.f32 %v2568_v38, %v2566_v37  ;;  %v159_v48 = vld [vmem:[%s3162_s1] sm:$0xff] }
  0x42   :  { %125 = vadd.xlane.f32.xlu1 %v124_v16  ;;  %3245 = vst [vmem:[#allocation15_spill] sm:$0xff] %v2572_v40  ;;  %3246 = vst [vmem:[#allocation16_spill] sm:$0xff] %v2574_v41  ;;  %v2578_v43 = vld [vmem:[#allocation2 + $0x70] sm:$0xff]  ;;  %v2580_v44 = vld [vmem:[#allocation2 + $0x78] sm:$0xff]  ;;  %v139_v46 = vadd.f32 %v2574_v41, %v2572_v40 }
  0x43   :  { %101 = vadd.xlane.f32.xlu0 %v100_v17  ;;  %v115_v47 = vadd.f32 %v2580_v44, %v2578_v43  ;;  %v160_v49 = vld [vmem:[%s3162_s1 + $0x8] sm:$0xff]  ;;  %v161_v52 = vld [vmem:[%s3162_s1 + $0x10] sm:$0xff]  ;;  %v162_v53 = vld [vmem:[%s3162_s1 + $0x18] sm:$0xff]  ;;  %v184_v17 = vand.u32 127, %v183_v10  ;;  %3247 = vst [vmem:[#allocation17_spill] sm:$0xff] %v2612_v23 }
  0x44   :  { %v2070_v50 = vpack.c.bf16 %v160_v49, %v159_v48  ;;  %v2073_v54 = vpack.c.bf16 %v162_v53, %v161_v52  ;;  %v163_v55 = vld [vmem:[%s3162_s1 + $0x20] sm:$0xff]  ;;  %v164_v56 = vld [vmem:[%s3162_s1 + $0x28] sm:$0xff]  ;;  %v165_v58 = vld [vmem:[%s3162_s1 + $0x30] sm:$0xff] }
  0x45   :  { %v2076_v57 = vpack.c.bf16 %v164_v56, %v163_v55  ;;  %v166_v59 = vld [vmem:[%s3162_s1 + $0x38] sm:$0xff]  ;;  %v224_v49 = vadd.s32 4294967248, %v184_v17 }
  0x46   :  { %128 = vadd.xlane.f32.xlu1 %v127_v24  ;;  %2071 = vmatpush3.bf16.msra.mxu0 %v2070_v50  ;;  %v2079_v60 = vpack.c.bf16 %v166_v59, %v165_v58 }
  0x47   :  { %104 = vadd.xlane.f32.xlu0 %v103_v27  ;;  %2072 = vmatprep.subr.bf16.mxu0 %v2418_v51  ;;  %v189_v27 = vadd.s32 4294967288, %v184_v17 }
  0x4a   :  { %131 = vadd.xlane.f32.xlu1 %v130_v30  ;;  %2074 = vmatpush3.bf16.msra.mxu0 %v2073_v54  ;;  %v196_v30 = vadd.s32 4294967280, %v184_v17 }
  0x4b   :  { %107 = vadd.xlane.f32.xlu0 %v106_v33  ;;  %2075 = vmatprep.subr.bf16.mxu0 %v2418_v51  ;;  %v203_v33 = vadd.s32 4294967272, %v184_v17 }
  0x4c   :  { %v199_v48 = vsub.s32 %v196_v30, %v2612_v23 }
  0x4e   :  { %134 = vadd.xlane.f32.xlu1 %v133_v36  ;;  %2077 = vmatpush3.bf16.msra.mxu0 %v2076_v57  ;;  %v210_v36 = vadd.s32 4294967264, %v184_v17 }
  0x4f   :  { %110 = vadd.xlane.f32.xlu0 %v109_v39  ;;  %2078 = vmatprep.subr.bf16.mxu0 %v2418_v51  ;;  %v206_v51 = vsub.s32 %v203_v33, %v2612_v23 }
  0x50   :  { %v213_v52 = vsub.s32 %v210_v36, %v2612_v23  ;;  %v231_v36 = vadd.s32 4294967240, %v184_v17 }
  0x52   :  { %137 = vadd.xlane.f32.xlu1 %v136_v42  ;;  %2080 = vmatpush3.bf16.msra.mxu0 %v2079_v60  ;;  %v217_v42 = vadd.s32 4294967256, %v184_v17 }
  0x53   :  { %113 = vadd.xlane.f32.xlu0 %v112_v45  ;;  %v187_v45 = vsub.s32 %v184_v17, %v2612_v23  ;;  %v234_v17 = vsub.s32 %v231_v36, %v2612_v23 }
  0x54   :  { %v220_v55 = vsub.s32 %v217_v42, %v2612_v23 }
  0x56   :  { %140 = vadd.xlane.f32.xlu1 %v139_v46 }
  0x57   :  { %116 = vadd.xlane.f32.xlu0 %v115_v47  ;;  %v192_v47 = vsub.s32 %v189_v27, %v2612_v23 }
  0xc7   :  { %v120_v62 = vpop.xlane.xlu1 %119 }
  0xc8   :  { %v96_v63 = vpop.xlane.xlu0 %95  ;;  %v151_v57 = vmul.f32 0.00390625, %v120_v62 }
  0xc9   :  { %v143_v61 = vmul.f32 0.00390625, %v96_v63 }
  0xca   :  { %v241_v35 = vrot.slane %v151_v57, %v187_v45 }
  0xcb   :  { %v123_v3 = vpop.xlane.xlu1 %122  ;;  %v188_v29 = vrot.slane %v143_v61, %v187_v45 }
  0xcc   :  { %v99_v7 = vpop.xlane.xlu0 %98  ;;  %v152_v50 = vmul.f32 0.00390625, %v123_v3  ;;  %v227_v3 = vsub.s32 %v224_v49, %v2612_v23 }
  0xcd   :  { %v144_v53 = vmul.f32 0.00390625, %v99_v7 }
  0xce   :  { %v245_v30 = vrot.slane %v152_v50, %v192_v47 }
  0xcf   :  { %v126_v11 = vpop.xlane.xlu1 %125  ;;  %v193_v7 = vrot.slane %v144_v53, %v192_v47 }
  0xd0   :  { %v102_v16 = vpop.xlane.xlu0 %101  ;;  %v153_v54 = vmul.f32 0.00390625, %v126_v11  ;;  %v246_v49 = vsel %vm194_vm1, %v245_v30, %v241_v35 }
  0xd1   :  { %v145_v58 = vmul.f32 0.00390625, %v102_v16  ;;  %v195_v47 = vsel %vm194_vm1, %v193_v7, %v188_v29 }
  0xd2   :  { %v250_v11 = vrot.slane %v153_v54, %v199_v48 }
  0xd3   :  { %v129_v22 = vpop.xlane.xlu1 %128  ;;  %v200_v62 = vrot.slane %v145_v58, %v199_v48 }
  0xd4   :  { %v105_v24 = vpop.xlane.xlu0 %104  ;;  %v154_v59 = vmul.f32 0.00390625, %v129_v22  ;;  %v251_v53 = vsel %vm201_vm2, %v250_v11, %v246_v49  ;;  %v2650_v49 = vld [vmem:[#allocation5 + $0x4] ss:$8 sps:$4 sm:$0xff]  }
  0xd5   :  { %v146_v10 = vmul.f32 0.00390625, %v105_v24  ;;  %v202_v57 = vsel %vm201_vm2, %v200_v62, %v195_v47  ;;  %v2640_v62 = vld [vmem:[#allocation5 + $0x104] ss:$8 sps:$4 sm:$0xff]   ;;  %3248 = vst [vmem:[#allocation18_spill] sm:$0xff] %v2650_v49  ;;  %1129 = vmatprep.subr.bf16.mxu0 %v2650_v49  ;;  %v2852_v49 = vld [vmem:[#allocation5 + $0xf0] ss:$8 sps:$4 sm:$0xff]  }
  0xd6   :  { %v255_v16 = vrot.slane %v154_v59, %v206_v51  ;;  %3286 = vst [vmem:[#allocation56_spill] sm:$0xff] %v2852_v49 }
  0xd7   :  { %v132_v39 = vpop.xlane.xlu1 %131  ;;  %v207_v63 = vrot.slane %v146_v10, %v206_v51 }
  0xd8   :  { %v108_v46 = vpop.xlane.xlu0 %107  ;;  %v155_v27 = vmul.f32 0.00390625, %v132_v39  ;;  %v256_v45 = vsel %vm208_vm3, %v255_v16, %v251_v53  ;;  %v2642_v16 = vld [vmem:[#allocation5 + $0x114] ss:$8 sps:$4 sm:$0xff]  }
  0xd9   :  { %v147_v33 = vmul.f32 0.00390625, %v108_v46  ;;  %v209_v35 = vsel %vm208_vm3, %v207_v63, %v202_v57  ;;  %v2662_v53 = vld [vmem:[#allocation5 + $0x14] ss:$8 sps:$4 sm:$0xff]   ;;  %v2668_v57 = vld [vmem:[#allocation5 + $0x130] ss:$8 sps:$4 sm:$0xff]  }
  0xda   :  { %v260_v24 = vrot.slane %v155_v27, %v213_v52  ;;  %3250 = vst [vmem:[#allocation20_spill] sm:$0xff] %v2662_v53 }
  0xdb   :  { %v135_v56 = vpop.xlane.xlu1 %134  ;;  %v214_v50 = vrot.slane %v147_v33, %v213_v52  ;;  %v353_v33 = vld [vmem:[%s3163_s2] sm:$0xf]  ;;  %s2422_s2 = smov [#allocation8]  }
  0xdc   :  { %v111_v60 = vpop.xlane.xlu0 %110  ;;  %v156_v41 = vmul.f32 0.00390625, %v135_v56  ;;  %2065 = vmatpush3.msk.msra.mxu1 %vm358_vm10, %v353_v33  ;;  %v2723_v33 = vld [vmem:[#allocation5 + $0x174] ss:$8 sps:$4 sm:$0xff]   ;;  %s1887_s23 = sshll.u32 %s2422_s2, 4  ;;  %s1888_s23 = int_to_ptr.vmem [resolvable:$true] %s1887_s23 }
  0xdd   :  { %v148_v40 = vmul.f32 0.00390625, %v111_v60  ;;  %v216_v29 = vsel %vm215_vm4, %v214_v50, %v209_v35  ;;  %1252 = vmatprep.subr.bf16.mxu1 %v2640_v62  ;;  %v2652_v50 = vld [vmem:[#allocation5 + $0x124] ss:$8 sps:$4 sm:$0xff]   ;;  %v2686_v35 = vld [vmem:[#allocation5 + $0x34] ss:$8 sps:$4 sm:$0xff]   ;;  %s2383_s24 = scalar_lea.vmem %s1888_s23, 4096  ;;  %p2388_p11 = scmp.lt.s32.totalorder %s1888_s23, %s1888_s23 }
  0xde   :  { %v265_v46 = vrot.slane %v156_v41, %v220_v55  ;;  %v261_v41 = vsel %vm215_vm4, %v260_v24, %v256_v45  ;;  %v2674_v45 = vld [vmem:[#allocation5 + $0x24] ss:$8 sps:$4 sm:$0xff]   ;;  %3254 = vst [vmem:[#allocation24_spill] sm:$0xff] %v2686_v35  ;;  %p2384_p10 = scmp.ne.s32.totalorder %s1888_s23, %s2383_s24  ;;  %p2389_p12 = scmp.lt.s32.totalorder %s2383_s24, %s2383_s24 }
  0xdf   :  { %v138_v42 = vpop.xlane.xlu1 %137  ;;  %v221_v54 = vrot.slane %v148_v40, %v220_v55  ;;  %3252 = vst [vmem:[#allocation22_spill] sm:$0xff] %v2674_v45 }
  0xe0   :  { %v157_v22 = vmul.f32 0.00390625, %v138_v42  ;;  %v114_v34 = vpop.xlane.xlu0 %113  ;;  %v266_v59 = vsel %vm222_vm5, %v265_v46, %v261_v41  ;;  %v2638_v42 = vld [vmem:[#allocation5 + $0x100] ss:$8 sps:$4 sm:$0xff]   ;;  %v2688_v41 = vld [vmem:[#allocation5 + $0x154] ss:$8 sps:$4 sm:$0xff]   ;;  %p2390_p13 = por %p2389_p12, %p2388_p11 }
  0xe1   :  { %v149_v39 = vmul.f32 0.00390625, %v114_v34  ;;  %v223_v55 = vsel %vm222_vm5, %v221_v54, %v216_v29  ;;  %v2654_v46 = vld [vmem:[#allocation5] ss:$8 sps:$4 sm:$0xff]   ;;  %v2664_v54 = vld [vmem:[#allocation5 + $0x134] ss:$8 sps:$4 sm:$0xff]  }
  0xe2   :  { %v270_v56 = vrot.slane %v157_v22, %v227_v3  ;;  %v2646_v22 = vld [vmem:[#allocation5 + $0x110] ss:$8 sps:$4 sm:$0xff]   ;;  %3249 = vst [vmem:[#allocation19_spill] sm:$0xff] %v2654_v46  ;;  %p2391_p0 = pnand %p2390_p13, %p2384_p10 }
  0xe3   :  { %v141_v48 = vpop.xlane.xlu1 %140  ;;  %v228_v51 = vrot.slane %v149_v39, %v227_v3  ;;  %v2692_v29 = vld [vmem:[#allocation5 + $0x150] ss:$8 sps:$4 sm:$0xff]  }
  0xe4   :  { %v158_v58 = vmul.f32 0.00390625, %v141_v48  ;;  %v117_v34 = vpop.xlane.xlu0 %116  ;;  %v271_v60 = vsel %vm229_vm6, %v270_v56, %v266_v59  ;;  %v2666_v48 = vld [vmem:[#allocation5 + $0x10] ss:$8 sps:$4 sm:$0xff]   ;;  %v2695_v59 = vsub.s32 0, %v2612_v23 }
  0xe5   :  { %v150_v52 = vmul.f32 0.00390625, %v117_v34  ;;  %v230_v10 = vsel %vm229_vm6, %v228_v51, %v223_v55  ;;  %3251 = vst [vmem:[#allocation21_spill] sm:$0xff] %v2666_v48  ;;  %v2676_v51 = vld [vmem:[#allocation5 + $0x144] ss:$8 sps:$4 sm:$0xff]   ;;  %v2680_v34 = vld [vmem:[#allocation5 + $0x140] ss:$8 sps:$4 sm:$0xff]  }
  0xe6   :  { %v275_v40 = vrot.slane %v158_v58, %v234_v17  ;;  %v2678_v58 = vld [vmem:[#allocation5 + $0x20] ss:$8 sps:$4 sm:$0xff]   ;;  %3256 = vst [vmem:[#allocation26_spill] sm:$0xff] %v2695_v59  ;;  %v2703_v55 = vld [vmem:[#allocation5 + $0x164] ss:$8 sps:$4 sm:$0xff]  }
  0xe7   :  { %v235_v61 = vrot.slane %v150_v52, %v234_v17  ;;  %v2656_v17 = vld [vmem:[#allocation5 + $0x120] ss:$8 sps:$4 sm:$0xff]   ;;  %3253 = vst [vmem:[#allocation23_spill] sm:$0xff] %v2678_v58  ;;  %v2690_v52 = vld [vmem:[#allocation5 + $0x30] ss:$8 sps:$4 sm:$0xff]  }
  0xe8   :  { %v276_v27 = vsel %vm236_vm7, %v275_v40, %v271_v60  ;;  %3255 = vst [vmem:[#allocation25_spill] sm:$0xff] %v2690_v52  ;;  %v2701_v40 = vld [vmem:[#allocation5 + $0x44] ss:$8 sps:$4 sm:$0xff]  }
  0xe9   :  { %v237_v3 = vsel %vm236_vm7, %v235_v61, %v230_v10  ;;  %3257 = vst [vmem:[#allocation27_spill] sm:$0xff] %v2701_v40  ;;  %v2705_v61 = vld [vmem:[#allocation5 + $0x40] ss:$8 sps:$4 sm:$0xff]  }
  0xea   :  { %v278_v30 = vsel %vm277_vm8, %v276_v27, %v237_v3  ;;  %3258 = vst [vmem:[#allocation28_spill] sm:$0xff] %v2705_v61  ;;  %v2707_v10 = vld [vmem:[#allocation5 + $0x160] ss:$8 sps:$4 sm:$0xff]   ;;  %v2713_v3 = vsub.s32 1, %v2612_v23  ;;  %v2766_v23 = vld [vmem:[#allocation5 + $0x84] ss:$8 sps:$4 sm:$0xff]  }
  0xeb   :  { %2062 = vmatmul.mubr.msk.f32.vlgmr.msra.gmra.mrb[0].mxu0 %vm279_vm9, %v278_v30  ;;  %v2721_v30 = vld [vmem:[#allocation5 + $0x54] ss:$8 sps:$4 sm:$0xff]   ;;  %3266 = vst [vmem:[#allocation36_spill] sm:$0xff] %v2766_v23 }
  0xec   :  { %1130 = vmatpush1.bf16.msra.mxu0 %v2654_v46  ;;  %3259 = vst [vmem:[#allocation29_spill] sm:$0xff] %v2713_v3  ;;  %3260 = vst [vmem:[#allocation30_spill] sm:$0xff] %v2721_v30  ;;  %v2843_v46 = vld [vmem:[#allocation5 + $0xe4] ss:$8 sps:$4 sm:$0xff]  }
  0xed   :  { %1131 = vmatprep.subr.bf16.mxu0 %v2662_v53  ;;  %v2839_v53 = vld [vmem:[#allocation5 + $0x1f0] ss:$8 sps:$4 sm:$0xff]   ;;  %3284 = vst [vmem:[#allocation54_spill] sm:$0xff] %v2843_v46 }
  0xee   :  { %3283 = vst [vmem:[#allocation53_spill] sm:$0xff] %v2839_v53 }
  0xf0   :  { %1132 = vmatpush1.bf16.msra.mxu0 %v2666_v48  ;;  %v2826_v48 = vld [vmem:[#allocation5 + $0x1e0] ss:$8 sps:$4 sm:$0xff]  }
  0xf1   :  { %1133 = vmatprep.subr.bf16.mxu0 %v2674_v45  ;;  %v2816_v45 = vld [vmem:[#allocation5 + $0xc4] ss:$8 sps:$4 sm:$0xff]   ;;  %3279 = vst [vmem:[#allocation49_spill] sm:$0xff] %v2826_v48 }
  0xf2   :  { %3276 = vst [vmem:[#allocation46_spill] sm:$0xff] %v2816_v45 }
  0xf4   :  { %1134 = vmatpush1.bf16.msra.mxu0 %v2678_v58  ;;  %v2812_v58 = vld [vmem:[#allocation5 + $0x1d0] ss:$8 sps:$4 sm:$0xff]  }
  0xf5   :  { %1135 = vmatprep.subr.bf16.mxu0 %v2686_v35  ;;  %v2805_v35 = vld [vmem:[#allocation5 + $0x1d4] ss:$8 sps:$4 sm:$0xff]   ;;  %3275 = vst [vmem:[#allocation45_spill] sm:$0xff] %v2812_v58 }
  0xf6   :  { %3273 = vst [vmem:[#allocation43_spill] sm:$0xff] %v2805_v35 }
  0xf8   :  { %1136 = vmatpush1.bf16.msra.mxu0 %v2690_v52  ;;  %v2800_v52 = vld [vmem:[#allocation5 + $0x1c4] ss:$8 sps:$4 sm:$0xff]  }
  0xf9   :  { %1137 = vmatprep.subr.bf16.mxu0 %v2701_v40  ;;  %v2796_v40 = vld [vmem:[#allocation5 + $0x1c0] ss:$8 sps:$4 sm:$0xff]  }
  0xfc   :  { %1138 = vmatpush1.bf16.msra.mxu0 %v2705_v61  ;;  %v2786_v61 = vld [vmem:[#allocation5 + $0x1b0] ss:$8 sps:$4 sm:$0xff]  }
  0xfd   :  { %1139 = vmatprep.subr.bf16.mxu0 %v2721_v30  ;;  %v2784_v30 = vld [vmem:[#allocation5 + $0x90] ss:$8 sps:$4 sm:$0xff]  }
  0xfe   :  { %3269 = vst [vmem:[#allocation39_spill] sm:$0xff] %v2784_v30 }
 0x1be   :  { %v348_v36 = vpop.f32.mrb[0].mxu0 }
 0x1bf   :  { %v352_v7 = vmax.f32 %v348_v36, 0.0  ;;  %v2063_v11 = vpop.f32.mrb[1].mxu0  ;;  %v2725_v36 = vld [vmem:[#allocation5 + $0x50] ss:$8 sps:$4 sm:$0xff]  }
 0x1c0   :  { %3261 = vst [vmem:[#allocation31_spill] sm:$0xff] %v2725_v36  ;;  %1140 = vmatpush1.bf16.msra.mxu0 %v2725_v36  ;;  %v2772_v36 = vld [vmem:[#allocation5 + $0x1a0] ss:$8 sps:$4 sm:$0xff]  }
 0x1c1   :  { %2067 = vmatmul.mubr.msk.f32.vlgmr.msra.gmra.mrb[0].mxu1 %vm354_vm11, %v352_v7  ;;  %v2727_v7 = vld [vmem:[#allocation5 + $0x170] ss:$8 sps:$4 sm:$0xff]  }
 0x1c2   :  { %1253 = vmatpush1.bf16.msra.mxu1 %v2638_v42 }
 0x1c3   :  { %1254 = vmatprep.subr.bf16.mxu1 %v2642_v16 }
 0x1c6   :  { %1255 = vmatpush1.bf16.msra.mxu1 %v2646_v22 }
 0x1c7   :  { %1256 = vmatprep.subr.bf16.mxu1 %v2652_v50 }
 0x1ca   :  { %1257 = vmatpush1.bf16.msra.mxu1 %v2656_v17 }
 0x1cb   :  { %1258 = vmatprep.subr.bf16.mxu1 %v2664_v54 }
 0x1ce   :  { %1259 = vmatpush1.bf16.msra.mxu1 %v2668_v57 }
 0x1cf   :  { %1260 = vmatprep.subr.bf16.mxu1 %v2676_v51 }
 0x1d2   :  { %1261 = vmatpush1.bf16.msra.mxu1 %v2680_v34 }
 0x1d3   :  { %1262 = vmatprep.subr.bf16.mxu1 %v2688_v41 }
 0x1d6   :  { %1263 = vmatpush1.bf16.msra.mxu1 %v2692_v29 }
 0x1d7   :  { %1264 = vmatprep.subr.bf16.mxu1 %v2703_v55 }
 0x1da   :  { %1265 = vmatpush1.bf16.msra.mxu1 %v2707_v10 }
 0x1db   :  { %1266 = vmatprep.subr.bf16.mxu1 %v2723_v33 }
 0x1de   :  { %1267 = vmatpush1.bf16.msra.mxu1 %v2727_v7 }
 0x294   :  { %v428_v63 = vpop.f32.mrb[0].mxu1 }
 0x295   :  { %v1903_v24 = vmul.f32 -1.442695, %v428_v63  ;;  %v2068_v39 = vpop.f32.mrb[1].mxu1  ;;  %v2738_v63 = vld [vmem:[#allocation5 + $0x64] ss:$8 sps:$4 sm:$0xff]  }
 0x296   :  { %3262 = vst [vmem:[#allocation32_spill] sm:$0xff] %v2738_v63  ;;  %v2742_v39 = vld [vmem:[#allocation5 + $0x60] ss:$8 sps:$4 sm:$0xff]   ;;  %1141 = vmatprep.subr.bf16.mxu0 %v2738_v63 }
 0x297   :  { %2303 = vpow2.f32 %v1903_v24  ;;  %v2740_v24 = vld [vmem:[#allocation5 + $0x184] ss:$8 sps:$4 sm:$0xff]   ;;  %3263 = vst [vmem:[#allocation33_spill] sm:$0xff] %v2742_v39  ;;  %1142 = vmatpush1.bf16.msra.mxu0 %v2742_v39  ;;  %v2770_v63 = vld [vmem:[#allocation5 + $0x80] ss:$8 sps:$4 sm:$0xff]  }
 0x298   :  { %1268 = vmatprep.subr.bf16.mxu1 %v2740_v24  ;;  %v2768_v39 = vld [vmem:[#allocation5 + $0x1a4] ss:$8 sps:$4 sm:$0xff]   ;;  %3267 = vst [vmem:[#allocation37_spill] sm:$0xff] %v2770_v63 }
 0x2a1   :  { %v2304_v47 = vpop.eup %2303 }
 0x2a2   :  { %v435_v56 = vadd.f32 1.0, %v2304_v47  ;;  %v2744_v47 = vld [vmem:[#allocation5 + $0x180] ss:$8 sps:$4 sm:$0xff]  }
 0x2a3   :  { %1269 = vmatpush1.bf16.msra.mxu1 %v2744_v47 }
 0x2a4   :  { %2305 = vrcp.f32 %v435_v56  ;;  %v2752_v56 = vld [vmem:[#allocation5 + $0x74] ss:$8 sps:$4 sm:$0xff]  }
 0x2a5   :  { %3264 = vst [vmem:[#allocation34_spill] sm:$0xff] %v2752_v56  ;;  %1143 = vmatprep.subr.bf16.mxu0 %v2752_v56  ;;  %v2782_v56 = vld [vmem:[#allocation5 + $0x1b4] ss:$8 sps:$4 sm:$0xff]  }
 0x2ae   :  { %v2306_v60 = vpop.eup %2305 }
 0x2af   :  { %v2710_v27 = vrot.slane %v2306_v60, %v2695_v59  ;;  %v2730_v11 = vrot.slane %v2306_v60, %v2713_v3  ;;  %v2754_v60 = vld [vmem:[#allocation5 + $0x194] ss:$8 sps:$4 sm:$0xff]   ;;  %v2756_v3 = vld [vmem:[#allocation5 + $0x70] ss:$8 sps:$4 sm:$0xff]  }
 0x2b0   :  { %3265 = vst [vmem:[#allocation35_spill] sm:$0xff] %v2756_v3  ;;  %v2758_v59 = vld [vmem:[#allocation5 + $0x190] ss:$8 sps:$4 sm:$0xff]   ;;  %1270 = vmatprep.subr.bf16.mxu1 %v2754_v60  ;;  %1144 = vmatpush1.bf16.msra.mxu0 %v2756_v3  ;;  %v2780_v3 = vld [vmem:[#allocation5 + $0x94] ss:$8 sps:$4 sm:$0xff]  }
 0x2b1   :  { %447 = vbcast.lane.b32.xlu1 %v2710_v27, 264  ;;  %443 = vbcast.lane.b32.xlu0 %v2710_v27, 256  ;;  %3268 = vst [vmem:[#allocation38_spill] sm:$0xff] %v2780_v3 }
 0x2b2   :  { %1271 = vmatpush1.bf16.msra.mxu1 %v2758_v59  ;;  %1145 = vmatprep.subr.bf16.mxu0 %v2766_v23  ;;  %v2794_v23 = vld [vmem:[#allocation5 + $0xa4] ss:$8 sps:$4 sm:$0xff]  }
 0x2b3   :  { %1272 = vmatprep.subr.bf16.mxu1 %v2768_v39  ;;  %3271 = vst [vmem:[#allocation41_spill] sm:$0xff] %v2794_v23 }
 0x2b4   :  { %1146 = vmatpush1.bf16.msra.mxu0 %v2770_v63  ;;  %v2792_v63 = vld [vmem:[#allocation5 + $0xa0] ss:$8 sps:$4 sm:$0xff]  }
 0x2b5   :  { %478 = vbcast.lane.b32.xlu1 %v2730_v11, 256  ;;  %451 = vbcast.lane.b32.xlu0 %v2710_v27, 272  ;;  %3270 = vst [vmem:[#allocation40_spill] sm:$0xff] %v2792_v63 }
 0x2b6   :  { %1273 = vmatpush1.bf16.msra.mxu1 %v2772_v36  ;;  %1147 = vmatprep.subr.bf16.mxu0 %v2780_v3  ;;  %v2803_v3 = vld [vmem:[#allocation5 + $0xb4] ss:$8 sps:$4 sm:$0xff]  }
 0x2b7   :  { %1274 = vmatprep.subr.bf16.mxu1 %v2782_v56  ;;  %3272 = vst [vmem:[#allocation42_spill] sm:$0xff] %v2803_v3 }
 0x2b8   :  { %1148 = vmatpush1.bf16.msra.mxu0 %v2784_v30  ;;  %v2810_v30 = vld [vmem:[#allocation5 + $0xb0] ss:$8 sps:$4 sm:$0xff]  }
 0x2b9   :  { %482 = vbcast.lane.b32.xlu1 %v2730_v11, 264  ;;  %455 = vbcast.lane.b32.xlu0 %v2710_v27, 280  ;;  %3274 = vst [vmem:[#allocation44_spill] sm:$0xff] %v2810_v30 }
 0x2ba   :  { %1275 = vmatpush1.bf16.msra.mxu1 %v2786_v61  ;;  %1149 = vmatprep.subr.bf16.mxu0 %v2794_v23  ;;  %v2820_v23 = vld [vmem:[#allocation5 + $0x1e4] ss:$8 sps:$4 sm:$0xff]  }
 0x2bb   :  { %1276 = vmatprep.subr.bf16.mxu1 %v2800_v52  ;;  %3277 = vst [vmem:[#allocation47_spill] sm:$0xff] %v2820_v23 }
 0x2bc   :  { %1150 = vmatpush1.bf16.msra.mxu0 %v2792_v63  ;;  %v2824_v63 = vld [vmem:[#allocation5 + $0xc0] ss:$8 sps:$4 sm:$0xff]  }
 0x2bd   :  { %486 = vbcast.lane.b32.xlu1 %v2730_v11, 272  ;;  %459 = vbcast.lane.b32.xlu0 %v2710_v27, 288  ;;  %3278 = vst [vmem:[#allocation48_spill] sm:$0xff] %v2824_v63 }
 0x2be   :  { %1277 = vmatpush1.bf16.msra.mxu1 %v2796_v40  ;;  %1151 = vmatprep.subr.bf16.mxu0 %v2803_v3  ;;  %v2833_v3 = vld [vmem:[#allocation5 + $0x1f4] ss:$8 sps:$4 sm:$0xff]  }
 0x2bf   :  { %1278 = vmatprep.subr.bf16.mxu1 %v2805_v35  ;;  %3281 = vst [vmem:[#allocation51_spill] sm:$0xff] %v2833_v3 }
 0x2c0   :  { %1152 = vmatpush1.bf16.msra.mxu0 %v2810_v30  ;;  %v2837_v30 = vld [vmem:[#allocation5 + $0xd0] ss:$8 sps:$4 sm:$0xff]  }
 0x2c1   :  { %490 = vbcast.lane.b32.xlu1 %v2730_v11, 280  ;;  %463 = vbcast.lane.b32.xlu0 %v2710_v27, 296  ;;  %3282 = vst [vmem:[#allocation52_spill] sm:$0xff] %v2837_v30 }
 0x2c2   :  { %1279 = vmatpush1.bf16.msra.mxu1 %v2812_v58  ;;  %1153 = vmatprep.subr.bf16.mxu0 %v2816_v45  ;;  %v2848_v45 = vld [vmem:[#allocation5 + $0xe0] ss:$8 sps:$4 sm:$0xff]  }
 0x2c3   :  { %1280 = vmatprep.subr.bf16.mxu1 %v2820_v23  ;;  %3285 = vst [vmem:[#allocation55_spill] sm:$0xff] %v2848_v45 }
 0x2c4   :  { %1154 = vmatpush1.bf16.msra.mxu0 %v2824_v63  ;;  %v2206_v63 = vld [vmem:[#allocation7 + $0x4] ss:$8 sps:$4 sm:$0xff]  }
 0x2c5   :  { %494 = vbcast.lane.b32.xlu1 %v2730_v11, 288  ;;  %467 = vbcast.lane.b32.xlu0 %v2710_v27, 304 }
 0x2c6   :  { %1281 = vmatpush1.bf16.msra.mxu1 %v2826_v48 }
 0x2c7   :  { %1282 = vmatprep.subr.bf16.mxu1 %v2833_v3 }
 0x2c9   :  { %498 = vbcast.lane.b32.xlu1 %v2730_v11, 296  ;;  %471 = vbcast.lane.b32.xlu0 %v2710_v27, 312  ;;  %v2830_v27 = vld [vmem:[#allocation5 + $0xd4] ss:$8 sps:$4 sm:$0xff]  }
 0x2ca   :  { %3280 = vst [vmem:[#allocation50_spill] sm:$0xff] %v2830_v27  ;;  %1155 = vmatprep.subr.bf16.mxu0 %v2830_v27  ;;  %1283 = vmatpush1.bf16.msra.mxu1 %v2839_v53 }
 0x2cb   :  { %1156 = vmatpush1.bf16.msra.mxu0 %v2837_v30  ;;  %1677 = vmatprep.subr.bf16.mxu1 %v2206_v63 }
 0x2cc   :  { %1157 = vmatprep.subr.bf16.mxu0 %v2843_v46 }
 0x2cd   :  { %502 = vbcast.lane.b32.xlu1 %v2730_v11, 304 }
 0x2cf   :  { %1158 = vmatpush1.bf16.msra.mxu0 %v2848_v45 }
 0x2d1   :  { %506 = vbcast.lane.b32.xlu1 %v2730_v11, 312  ;;  %v2854_v11 = vld [vmem:[#allocation5 + $0xf4] ss:$8 sps:$4 sm:$0xff]  }
 0x2d2   :  { %3287 = vst [vmem:[#allocation57_spill] sm:$0xff] %v2854_v11  ;;  %1159 = vmatprep.subr.bf16.mxu0 %v2854_v11 }
 0x2d3   :  { %1160 = vmatpush1.bf16.msra.mxu0 %v2852_v49 }
 0x2d4   :  { %1170 = vmatprep.subr.bf16.mxu0 %v2640_v62 }
 0x323   :  { %v448_v30 = vpop.permute.xlu1 %447  ;;  %v444_v27 = vpop.permute.xlu0 %443 }
 0x324   :  { %v2860_v63 = vmul.f32 %v448_v30, %v2514_v8  ;;  %v2863_v45 = vmul.f32 %v448_v30, %v2516_v9  ;;  %v2866_v23 = vmul.f32 %v444_v27, %v2502_v2  ;;  %v2869_v11 = vmul.f32 %v444_v27, %v2506_v4 }
 0x326   :  { %3288 = vst [vmem:[#allocation58_spill] sm:$0xff] %v2860_v63  ;;  %3289 = vst [vmem:[#allocation59_spill] sm:$0xff] %v2863_v45  ;;  %v674_v2 = vmax.f32 %v2869_v11, %v2863_v45  ;;  %v661_v4 = vmax.f32 %v2866_v23, %v2860_v63 }
 0x327   :  { %v479_v53 = vpop.permute.xlu1 %478  ;;  %v452_v3 = vpop.permute.xlu0 %451  ;;  %3290 = vst [vmem:[#allocation60_spill] sm:$0xff] %v2869_v11 }
 0x328   :  { %v2872_v62 = vmul.f32 %v452_v3, %v2526_v14  ;;  %v2875_v49 = vmul.f32 %v452_v3, %v2528_v15  ;;  %v617_v3 = vadd.f32 %v2863_v45, %v2869_v11  ;;  %v2901_v30 = vmul.f32 %v479_v53, %v2500_v1 }
 0x32a   :  { %3294 = vst [vmem:[#allocation64_spill] sm:$0xff] %v2901_v30  ;;  %v675_v27 = vmax.f32 %v674_v2, %v2875_v49 }
 0x32b   :  { %v483_v48 = vpop.permute.xlu1 %482  ;;  %v456_v46 = vpop.permute.xlu0 %455 }
 0x32c   :  { %v2878_v8 = vmul.f32 %v483_v48, %v2510_v6  ;;  %v2881_v9 = vmul.f32 %v456_v46, %v2540_v21  ;;  %v2888_v14 = vmul.f32 %v483_v48, %v2508_v5  ;;  %v2891_v15 = vmul.f32 %v456_v46, %v2538_v20 }
 0x32d   :  { %v604_v6 = vadd.f32 %v2860_v63, %v2866_v23  ;;  %v2898_v21 = vmul.f32 %v479_v53, %v2498_v0  ;;  %v662_v5 = vmax.f32 %v661_v4, %v2872_v62  ;;  %v618_v63 = vadd.f32 %v617_v3, %v2875_v49 }
 0x32e   :  { %3291 = vst [vmem:[#allocation61_spill] sm:$0xff] %v2878_v8  ;;  %3292 = vst [vmem:[#allocation62_spill] sm:$0xff] %v2888_v14  ;;  %v676_v53 = vmax.f32 %v675_v27, %v2881_v9  ;;  %v643_v3 = vadd.f32 %v2878_v8, %v2901_v30 }
 0x32f   :  { %v487_v58 = vpop.permute.xlu1 %486  ;;  %v460_v35 = vpop.permute.xlu0 %459  ;;  %3293 = vst [vmem:[#allocation63_spill] sm:$0xff] %v2898_v21  ;;  %v605_v0 = vadd.f32 %v604_v6, %v2872_v62  ;;  %v687_v2 = vmax.f32 %v2898_v21, %v2888_v14  ;;  %v619_v4 = vadd.f32 %v618_v63, %v2881_v9 }
 0x330   :  { %v2906_v48 = vmul.f32 %v487_v58, %v2524_v13  ;;  %v2909_v20 = vmul.f32 %v460_v35, %v2546_v26  ;;  %v2914_v11 = vmul.f32 %v487_v58, %v2522_v12  ;;  %v2917_v1 = vmul.f32 %v460_v35, %v2544_v25 }
 0x331   :  { %v700_v13 = vmax.f32 %v2901_v30, %v2878_v8  ;;  %v663_v26 = vmax.f32 %v662_v5, %v2891_v15  ;;  %v606_v8 = vadd.f32 %v605_v0, %v2891_v15 }
 0x332   :  { %3295 = vst [vmem:[#allocation65_spill] sm:$0xff] %v2906_v48  ;;  %3296 = vst [vmem:[#allocation66_spill] sm:$0xff] %v2909_v20  ;;  %v677_v5 = vmax.f32 %v676_v53, %v2909_v20  ;;  %v644_v53 = vadd.f32 %v643_v3, %v2906_v48 }
 0x333   :  { %v491_v46 = vpop.permute.xlu1 %490  ;;  %v464_v45 = vpop.permute.xlu0 %463  ;;  %3297 = vst [vmem:[#allocation67_spill] sm:$0xff] %v2914_v11  ;;  %3298 = vst [vmem:[#allocation68_spill] sm:$0xff] %v2917_v1  ;;  %v701_v63 = vmax.f32 %v700_v13, %v2906_v48  ;;  %v607_v13 = vadd.f32 %v606_v8, %v2917_v1 }
 0x334   :  { %v2929_v12 = vmul.f32 %v491_v46, %v2534_v18  ;;  %v2932_v25 = vmul.f32 %v491_v46, %v2536_v19  ;;  %v2935_v58 = vmul.f32 %v464_v45, %v2554_v31  ;;  %v2938_v35 = vmul.f32 %v464_v45, %v2556_v32 }
 0x335   :  { %v630_v18 = vadd.f32 %v2888_v14, %v2898_v21  ;;  %v664_v32 = vmax.f32 %v663_v26, %v2917_v1  ;;  %v688_v45 = vmax.f32 %v687_v2, %v2914_v11  ;;  %v620_v46 = vadd.f32 %v619_v4, %v2909_v20  ;;  %v2316_v2 = vld [vmem:[#allocation2 + $0xc8] sm:$0xff] }
 0x336   :  { %3299 = vst [vmem:[#allocation69_spill] sm:$0xff] %v2929_v12  ;;  %3300 = vst [vmem:[#allocation70_spill] sm:$0xff] %v2932_v25  ;;  %v678_v14 = vmax.f32 %v677_v5, %v2938_v35 }
 0x337   :  { %3301 = vst [vmem:[#allocation71_spill] sm:$0xff] %v2935_v58  ;;  %3302 = vst [vmem:[#allocation72_spill] sm:$0xff] %v2938_v35  ;;  %v495_v6 = vpop.permute.xlu1 %494  ;;  %v468_v27 = vpop.permute.xlu0 %467  ;;  %v631_v0 = vadd.f32 %v630_v18, %v2914_v11  ;;  %v665_v30 = vmax.f32 %v664_v32, %v2935_v58  ;;  %v621_v8 = vadd.f32 %v620_v46, %v2938_v35 }
 0x338   :  { %v2946_v19 = vmul.f32 %v468_v27, %v2566_v37  ;;  %v2949_v31 = vmul.f32 %v468_v27, %v2568_v38  ;;  %v702_v37 = vmax.f32 %v701_v63, %v2932_v25  ;;  %v689_v38 = vmax.f32 %v688_v45, %v2929_v12  ;;  %v2315_v27 = vld [vmem:[#allocation2 + $0xc0] sm:$0xff] }
 0x339   :  { %v2961_v26 = vmul.f32 %v2315_v27, %v495_v6  ;;  %v2963_v21 = vmul.f32 %v2316_v2, %v495_v6  ;;  %v608_v18 = vadd.f32 %v607_v13, %v2935_v58  ;;  %v645_v6 = vadd.f32 %v644_v53, %v2932_v25 }
 0x33a   :  { %3303 = vst [vmem:[#allocation73_spill] sm:$0xff] %v2946_v19  ;;  %3304 = vst [vmem:[#allocation74_spill] sm:$0xff] %v2949_v31  ;;  %v679_v32 = vmax.f32 %v678_v14, %v2949_v31  ;;  %v666_v45 = vmax.f32 %v665_v30, %v2946_v19  ;;  %v622_v27 = vadd.f32 %v621_v8, %v2949_v31 }
 0x33b   :  { %3305 = vst [vmem:[#allocation75_spill] sm:$0xff] %v2961_v26  ;;  %3306 = vst [vmem:[#allocation76_spill] sm:$0xff] %v2963_v21  ;;  %v499_v4 = vpop.permute.xlu1 %498  ;;  %v472_v3 = vpop.permute.xlu0 %471  ;;  %v609_v2 = vadd.f32 %v608_v18, %v2946_v19  ;;  %v632_v46 = vadd.f32 %v631_v0, %v2929_v12  ;;  %v703_v30 = vmax.f32 %v702_v37, %v2963_v21  ;;  %v3312_v0 = vld [vmem:[#allocation13_spill] sm:$0xff]  ;;  %v3316_v19 = vld [vmem:[#allocation15_spill] sm:$0xff] }
 0x33c   :  { %v2968_v5 = vmul.f32 %v472_v3, %v2578_v43  ;;  %v2971_v63 = vmul.f32 %v472_v3, %v2580_v44  ;;  %v2980_v13 = vmul.f32 %v499_v4, %v2550_v28  ;;  %v3310_v43 = vld [vmem:[#allocation12_spill] sm:$0xff]  ;;  %v690_v8 = vmax.f32 %v689_v38, %v2961_v26  ;;  %v3314_v28 = vld [vmem:[#allocation14_spill] sm:$0xff] }
 0x33d   :  { %v2983_v48 = vmul.f32 %v499_v4, %v3310_v43  ;;  %v633_v37 = vadd.f32 %v632_v46, %v2961_v26 }
 0x33e   :  { %3307 = vst [vmem:[#allocation77_spill] sm:$0xff] %v2968_v5  ;;  %3308 = vst [vmem:[#allocation78_spill] sm:$0xff] %v2971_v63  ;;  %v680_v44 = vmax.f32 %v679_v32, %v2971_v63  ;;  %v667_v14 = vmax.f32 %v666_v45, %v2968_v5  ;;  %v623_v53 = vadd.f32 %v622_v27, %v2971_v63 }
 0x33f   :  { %3309 = vst [vmem:[#allocation79_spill] sm:$0xff] %v2980_v13  ;;  %3311 = vst [vmem:[#allocation12_spill] sm:$0xff] %v2983_v48  ;;  %v503_v3 = vpop.permute.xlu1 %502  ;;  %v610_v18 = vadd.f32 %v609_v2, %v2968_v5  ;;  %v646_v45 = vadd.f32 %v645_v6, %v2963_v21  ;;  %v704_v38 = vmax.f32 %v703_v30, %v2983_v48  ;;  %v3318_v6 = vld [vmem:[#allocation16_spill] sm:$0xff] }
 0x340   :  { %v2992_v25 = vmul.f32 %v503_v3, %v3312_v0  ;;  %v2995_v12 = vmul.f32 %v503_v3, %v3314_v28  ;;  %v681_v4 = vrot.slane %v680_v44, 4  ;;  %v668_v43 = vrot.slane %v667_v14, 4 }
 0x341   :  { %v624_v32 = vrot.slane %v623_v53, 4  ;;  %v611_v11 = vrot.slane %v610_v18, 4  ;;  %v691_v2 = vmax.f32 %v690_v8, %v2980_v13  ;;  %v647_v5 = vadd.f32 %v646_v45, %v2983_v48 }
 0x342   :  { %3313 = vst [vmem:[#allocation13_spill] sm:$0xff] %v2992_v25  ;;  %3315 = vst [vmem:[#allocation14_spill] sm:$0xff] %v2995_v12  ;;  %v682_v31 = vmax.f32 %v680_v44, %v681_v4  ;;  %v669_v27 = vmax.f32 %v667_v14, %v668_v43  ;;  %v634_v28 = vadd.f32 %v633_v37, %v2980_v13 }
 0x343   :  { %v507_v63 = vpop.permute.xlu1 %506  ;;  %v625_v0 = vadd.f32 %v624_v32, %v623_v53  ;;  %v612_v3 = vadd.f32 %v611_v11, %v610_v18  ;;  %v705_v46 = vmax.f32 %v704_v38, %v2995_v12  ;;  %v692_v44 = vmax.f32 %v691_v2, %v2992_v25 }
 0x344   :  { %v3004_v35 = vmul.f32 %v507_v63, %v3316_v19  ;;  %v3007_v21 = vmul.f32 %v507_v63, %v3318_v6  ;;  %v648_v30 = vadd.f32 %v647_v5, %v2995_v12  ;;  %v635_v53 = vadd.f32 %v634_v28, %v2992_v25 }
 0x345   :  { %v626_v14 = vrot.slane %v625_v0, 2  ;;  %v613_v8 = vrot.slane %v612_v3, 2  ;;  %v683_v4 = vrot.slane %v682_v31, 2  ;;  %v670_v18 = vrot.slane %v669_v27, 2 }
 0x346   :  { %3317 = vst [vmem:[#allocation15_spill] sm:$0xff] %v3004_v35  ;;  %3319 = vst [vmem:[#allocation16_spill] sm:$0xff] %v3007_v21  ;;  %v706_v11 = vmax.f32 %v705_v46, %v3007_v21  ;;  %v693_v19 = vmax.f32 %v692_v44, %v3004_v35  ;;  %v649_v43 = vadd.f32 %v648_v30, %v3007_v21 }
 0x347   :  { %v636_v63 = vadd.f32 %v635_v53, %v3004_v35  ;;  %v627_v37 = vadd.f32 %v626_v14, %v625_v0  ;;  %v614_v38 = vadd.f32 %v613_v8, %v612_v3  ;;  %v684_v5 = vmax.f32 %v682_v31, %v683_v4 }
 0x348   :  { %v707_v32 = vrot.slane %v706_v11, 4  ;;  %v694_v45 = vrot.slane %v693_v19, 4  ;;  %v650_v2 = vrot.slane %v649_v43, 4  ;;  %v671_v48 = vmax.f32 %v669_v27, %v670_v18 }
 0x349   :  { %v637_v6 = vrot.slane %v636_v63, 4  ;;  %v628_v58 = vrot.slane %v627_v37, 1  ;;  %v615_v44 = vrot.slane %v614_v38, 1  ;;  %v685_v21 = vrot.slane %v684_v5, 1 }
 0x34a   :  { %v708_v12 = vmax.f32 %v706_v11, %v707_v32  ;;  %v695_v28 = vmax.f32 %v693_v19, %v694_v45  ;;  %v651_v25 = vadd.f32 %v650_v2, %v649_v43  ;;  %v672_v35 = vrot.slane %v671_v48, 1 }
 0x34b   :  { %v638_v13 = vadd.f32 %v637_v6, %v636_v63  ;;  %v629_v31 = vadd.f32 %v628_v58, %v627_v37  ;;  %v616_v4 = vadd.f32 %v615_v44, %v614_v38  ;;  %v686_v18 = vmax.f32 %v684_v5, %v685_v21  ;;  %v2215_v44 = vld [vmem:[#allocation7 + $0x24] ss:$8 sps:$4 sm:$0xff]  }
 0x34c   :  { %v709_v46 = vrot.slane %v708_v12, 2  ;;  %v696_v26 = vrot.slane %v695_v28, 2  ;;  %v652_v20 = vrot.slane %v651_v25, 2  ;;  %v673_v43 = vmax.f32 %v671_v48, %v672_v35  ;;  %v2212_v48 = vld [vmem:[#allocation7 + $0x14] ss:$8 sps:$4 sm:$0xff]  }
 0x34d   :  { %v639_v30 = vrot.slane %v638_v13, 2 }
 0x34e   :  { %v710_v53 = vmax.f32 %v708_v12, %v709_v46  ;;  %v697_v1 = vmax.f32 %v695_v28, %v696_v26  ;;  %v653_v0 = vadd.f32 %v652_v20, %v651_v25  ;;  %v658_v26 = vmul.f32 0.015625, %v629_v31  ;;  %v2210_v28 = vld [vmem:[#allocation7 + $0x10] ss:$8 sps:$4 sm:$0xff]  }
 0x34f   :  { %v640_v3 = vadd.f32 %v639_v30, %v638_v13  ;;  %v657_v20 = vmul.f32 0.015625, %v616_v4  ;;  %v2204_v13 = vld [vmem:[#allocation7] ss:$8 sps:$4 sm:$0xff]   ;;  %v2218_v4 = vld [vmem:[#allocation7 + $0x34] ss:$8 sps:$4 sm:$0xff]  }
 0x350   :  { %v711_v14 = vrot.slane %v710_v53, 1  ;;  %v698_v8 = vrot.slane %v697_v1, 1  ;;  %v654_v27 = vrot.slane %v653_v0, 1 }
 0x351   :  { %v641_v11 = vrot.slane %v640_v3, 1 }
 0x352   :  { %v712_v19 = vmax.f32 %v710_v53, %v711_v14  ;;  %v699_v63 = vmax.f32 %v697_v1, %v698_v8  ;;  %v655_v32 = vadd.f32 %v654_v27, %v653_v0  ;;  %v2213_v14 = vld [vmem:[#allocation7 + $0x20] ss:$8 sps:$4 sm:$0xff]  }
 0x353   :  { %v642_v45 = vadd.f32 %v641_v11, %v640_v3  ;;  %v2216_v11 = vld [vmem:[#allocation7 + $0x30] ss:$8 sps:$4 sm:$0xff]  }
 0x354   :  { %v726_v2 = vsel %vm277_vm8, %v712_v19, %v686_v18  ;;  %v3019_v12 = vsel %vm277_vm8, %v699_v63, %v673_v43  ;;  %v660_v21 = vmul.f32 0.015625, %v655_v32  ;;  %v2221_v18 = vld [vmem:[#allocation7 + $0x44] ss:$8 sps:$4 sm:$0xff]   ;;  %v2219_v19 = vld [vmem:[#allocation7 + $0x40] ss:$8 sps:$4 sm:$0xff]  }
 0x355   :  { %v3021_v25 = vpack.c.bf16 %v726_v2, %v726_v2  ;;  %v3025_v58 = vpack.c.bf16 %v3019_v12, %v3019_v12  ;;  %v659_v37 = vmul.f32 0.015625, %v642_v45  ;;  %v2224_v43 = vld [vmem:[#allocation7 + $0x54] ss:$8 sps:$4 sm:$0xff]   ;;  %v2222_v63 = vld [vmem:[#allocation7 + $0x50] ss:$8 sps:$4 sm:$0xff]  }
 0x356   :  { %v718_v1 = vsel %vm277_vm8, %v660_v21, %v658_v26  ;;  %v2227_v32 = vld [vmem:[#allocation7 + $0x64] ss:$8 sps:$4 sm:$0xff]   ;;  %v3320_v45 = vld [vmem:[#allocation43_spill] sm:$0xff] }
 0x357   :  { %1284 = vmatprep.mubr.bf16.mxu1 %v3021_v25  ;;  %v717_v35 = vsel %vm277_vm8, %v659_v37, %v657_v20  ;;  %v3031_v38 = vpack.c.bf16 %v718_v1, %v718_v1  ;;  %v736_v5 = vunpack.c.l.bf16 %v3021_v25  ;;  %v3322_v26 = vld [vmem:[#allocation47_spill] sm:$0xff]  ;;  %v2263_v20 = vld [vmem:[#allocation7 + $0x124] ss:$8 sps:$4 sm:$0xff]   ;;  %v2261_v37 = vld [vmem:[#allocation7 + $0x120] ss:$8 sps:$4 sm:$0xff]  }
 0x358   :  { %1285 = vmatmul.mubr.bf16.vlgmr.msra.gmra.mrb[4].mxu1 %v3025_v58  ;;  %v3033_v6 = vpack.c.bf16 %v717_v35, %v717_v35 }
 0x359   :  { %1678 = vmatpush1.bf16.msra.mxu1 %v2204_v13  ;;  %1709 = vmatprep.mubr.bf16.mxu1 %v3031_v38  ;;  %v734_v46 = vunpack.c.l.bf16 %v3031_v38  ;;  %v740_v3 = vsub.f32 %v726_v2, %v736_v5  ;;  %v3321_v2 = vld [vmem:[#allocation45_spill] sm:$0xff]  ;;  %v3324_v13 = vld [vmem:[#allocation51_spill] sm:$0xff] }
 0x35a   :  { %1679 = vmatprep.subr.bf16.mxu1 %v2212_v48  ;;  %v733_v30 = vunpack.c.l.bf16 %v3033_v6  ;;  %v3325_v48 = vld [vmem:[#allocation53_spill] sm:$0xff]  ;;  %v2266_v5 = vld [vmem:[#allocation7 + $0x134] ss:$8 sps:$4 sm:$0xff]  }
 0x35b   :  { %v738_v53 = vsub.f32 %v718_v1, %v734_v46  ;;  %v744_v27 = vpack.c.bf16 %v740_v3, %v740_v3  ;;  %v2269_v46 = vld [vmem:[#allocation7 + $0x144] ss:$8 sps:$4 sm:$0xff]   ;;  %v2270_v3 = vld [vmem:[#allocation7 + $0x150] ss:$8 sps:$4 sm:$0xff]  }
 0x35c   :  { %v737_v0 = vsub.f32 %v717_v35, %v733_v30  ;;  %v3326_v35 = vld [vmem:[#allocation18_spill] sm:$0xff]  ;;  %v3329_v30 = vld [vmem:[#allocation21_spill] sm:$0xff] }
 0x35d   :  { %1680 = vmatpush1.bf16.msra.mxu1 %v2210_v28  ;;  %v742_v8 = vpack.c.bf16 %v738_v53, %v738_v53  ;;  %v3327_v28 = vld [vmem:[#allocation19_spill] sm:$0xff] }
 0x35e   :  { %1681 = vmatprep.subr.bf16.mxu1 %v2215_v44  ;;  %v741_v31 = vpack.c.bf16 %v737_v0, %v737_v0  ;;  %v3328_v44 = vld [vmem:[#allocation20_spill] sm:$0xff]  ;;  %v2272_v53 = vld [vmem:[#allocation7 + $0x154] ss:$8 sps:$4 sm:$0xff]  }
 0x35f   :  { %1161 = vmatprep.mubr.bf16.mxu0 %v742_v8  ;;  %v3330_v0 = vld [vmem:[#allocation22_spill] sm:$0xff]  ;;  %v2275_v8 = vld [vmem:[#allocation7 + $0x164] ss:$8 sps:$4 sm:$0xff]  }
 0x360   :  { %1162 = vmatmul.mubr.bf16.vlgmr.msra.gmra.mrb[4].mxu0 %v741_v31  ;;  %v3332_v31 = vld [vmem:[#allocation24_spill] sm:$0xff] }
 0x361   :  { %1682 = vmatpush1.bf16.msra.mxu1 %v2213_v14  ;;  %1171 = vmatpush1.bf16.msra.mxu0 %v2638_v42  ;;  %v2225_v42 = vld [vmem:[#allocation7 + $0x60] ss:$8 sps:$4 sm:$0xff]   ;;  %v3331_v14 = vld [vmem:[#allocation23_spill] sm:$0xff] }
 0x362   :  { %1202 = vmatprep.mubr.bf16.mxu0 %v744_v27  ;;  %1172 = vmatprep.subr.bf16.mxu0 %v2642_v16  ;;  %v2230_v16 = vld [vmem:[#allocation7 + $0x74] ss:$8 sps:$4 sm:$0xff]  }
 0x363   :  { %1683 = vmatprep.subr.bf16.mxu1 %v2218_v4  ;;  %v3333_v4 = vld [vmem:[#allocation25_spill] sm:$0xff]  ;;  %v2278_v27 = vld [vmem:[#allocation7 + $0x174] ss:$8 sps:$4 sm:$0xff]  }
 0x365   :  { %1684 = vmatpush1.bf16.msra.mxu1 %v2216_v11  ;;  %1173 = vmatpush1.bf16.msra.mxu0 %v2646_v22  ;;  %v2228_v22 = vld [vmem:[#allocation7 + $0x70] ss:$8 sps:$4 sm:$0xff]  }
 0x366   :  { %1685 = vmatprep.subr.bf16.mxu1 %v2221_v18  ;;  %1174 = vmatprep.subr.bf16.mxu0 %v2652_v50  ;;  %v2233_v50 = vld [vmem:[#allocation7 + $0x84] ss:$8 sps:$4 sm:$0xff]   ;;  %v3334_v11 = vld [vmem:[#allocation27_spill] sm:$0xff] }
 0x367   :  { %v2276_v18 = vld [vmem:[#allocation7 + $0x170] ss:$8 sps:$4 sm:$0xff]  }
 0x369   :  { %1686 = vmatpush1.bf16.msra.mxu1 %v2219_v19  ;;  %1175 = vmatpush1.bf16.msra.mxu0 %v2656_v17  ;;  %v2231_v17 = vld [vmem:[#allocation7 + $0x80] ss:$8 sps:$4 sm:$0xff]  }
 0x36a   :  { %1687 = vmatprep.subr.bf16.mxu1 %v2224_v43  ;;  %1176 = vmatprep.subr.bf16.mxu0 %v2664_v54  ;;  %v2236_v54 = vld [vmem:[#allocation7 + $0x94] ss:$8 sps:$4 sm:$0xff]   ;;  %v3335_v19 = vld [vmem:[#allocation28_spill] sm:$0xff] }
 0x36b   :  { %v2281_v43 = vld [vmem:[#allocation7 + $0x184] ss:$8 sps:$4 sm:$0xff]  }
 0x36d   :  { %1688 = vmatpush1.bf16.msra.mxu1 %v2222_v63  ;;  %1177 = vmatpush1.bf16.msra.mxu0 %v2668_v57  ;;  %v2234_v57 = vld [vmem:[#allocation7 + $0x90] ss:$8 sps:$4 sm:$0xff]  }
 0x36e   :  { %1689 = vmatprep.subr.bf16.mxu1 %v2227_v32  ;;  %1178 = vmatprep.subr.bf16.mxu0 %v2676_v51  ;;  %v2239_v51 = vld [vmem:[#allocation7 + $0xa4] ss:$8 sps:$4 sm:$0xff]   ;;  %v3336_v63 = vld [vmem:[#allocation30_spill] sm:$0xff]  ;;  %v2279_v32 = vld [vmem:[#allocation7 + $0x180] ss:$8 sps:$4 sm:$0xff]  }
 0x371   :  { %1690 = vmatpush1.bf16.msra.mxu1 %v2225_v42  ;;  %1179 = vmatpush1.bf16.msra.mxu0 %v2680_v34  ;;  %v2237_v34 = vld [vmem:[#allocation7 + $0xa0] ss:$8 sps:$4 sm:$0xff]   ;;  %v3337_v42 = vld [vmem:[#allocation31_spill] sm:$0xff] }
 0x372   :  { %1691 = vmatprep.subr.bf16.mxu1 %v2230_v16  ;;  %1180 = vmatprep.subr.bf16.mxu0 %v2688_v41  ;;  %v2242_v41 = vld [vmem:[#allocation7 + $0xb4] ss:$8 sps:$4 sm:$0xff]  }
 0x373   :  { %v2284_v16 = vld [vmem:[#allocation7 + $0x194] ss:$8 sps:$4 sm:$0xff]  }
 0x375   :  { %1692 = vmatpush1.bf16.msra.mxu1 %v2228_v22  ;;  %1181 = vmatpush1.bf16.msra.mxu0 %v2692_v29  ;;  %v2240_v29 = vld [vmem:[#allocation7 + $0xb0] ss:$8 sps:$4 sm:$0xff]   ;;  %v3338_v22 = vld [vmem:[#allocation32_spill] sm:$0xff] }
 0x376   :  { %1693 = vmatprep.subr.bf16.mxu1 %v2233_v50  ;;  %1182 = vmatprep.subr.bf16.mxu0 %v2703_v55  ;;  %v2245_v55 = vld [vmem:[#allocation7 + $0xc4] ss:$8 sps:$4 sm:$0xff]   ;;  %v2282_v50 = vld [vmem:[#allocation7 + $0x190] ss:$8 sps:$4 sm:$0xff]  }
 0x379   :  { %1694 = vmatpush1.bf16.msra.mxu1 %v2231_v17  ;;  %1183 = vmatpush1.bf16.msra.mxu0 %v2707_v10  ;;  %v2243_v10 = vld [vmem:[#allocation7 + $0xc0] ss:$8 sps:$4 sm:$0xff]  }
 0x37a   :  { %1695 = vmatprep.subr.bf16.mxu1 %v2236_v54  ;;  %1184 = vmatprep.subr.bf16.mxu0 %v2723_v33  ;;  %v2248_v33 = vld [vmem:[#allocation7 + $0xd4] ss:$8 sps:$4 sm:$0xff]   ;;  %v3339_v17 = vld [vmem:[#allocation33_spill] sm:$0xff] }
 0x37b   :  { %v2287_v54 = vld [vmem:[#allocation7 + $0x1a4] ss:$8 sps:$4 sm:$0xff]  }
 0x37d   :  { %1696 = vmatpush1.bf16.msra.mxu1 %v2234_v57  ;;  %1185 = vmatpush1.bf16.msra.mxu0 %v2727_v7  ;;  %v2246_v7 = vld [vmem:[#allocation7 + $0xd0] ss:$8 sps:$4 sm:$0xff]  }
 0x37e   :  { %1697 = vmatprep.subr.bf16.mxu1 %v2239_v51  ;;  %1186 = vmatprep.subr.bf16.mxu0 %v2740_v24  ;;  %v2251_v24 = vld [vmem:[#allocation7 + $0xe4] ss:$8 sps:$4 sm:$0xff]   ;;  %v3340_v57 = vld [vmem:[#allocation34_spill] sm:$0xff]  ;;  %v2285_v51 = vld [vmem:[#allocation7 + $0x1a0] ss:$8 sps:$4 sm:$0xff]  }
 0x381   :  { %1698 = vmatpush1.bf16.msra.mxu1 %v2237_v34  ;;  %1187 = vmatpush1.bf16.msra.mxu0 %v2744_v47  ;;  %v2249_v47 = vld [vmem:[#allocation7 + $0xe0] ss:$8 sps:$4 sm:$0xff]   ;;  %v3341_v34 = vld [vmem:[#allocation35_spill] sm:$0xff] }
 0x382   :  { %1699 = vmatprep.subr.bf16.mxu1 %v2242_v41  ;;  %1188 = vmatprep.subr.bf16.mxu0 %v2754_v60  ;;  %v2254_v60 = vld [vmem:[#allocation7 + $0xf4] ss:$8 sps:$4 sm:$0xff]  }
 0x383   :  { %v2290_v41 = vld [vmem:[#allocation7 + $0x1b4] ss:$8 sps:$4 sm:$0xff]  }
 0x385   :  { %1700 = vmatpush1.bf16.msra.mxu1 %v2240_v29  ;;  %1189 = vmatpush1.bf16.msra.mxu0 %v2758_v59  ;;  %v2252_v59 = vld [vmem:[#allocation7 + $0xf0] ss:$8 sps:$4 sm:$0xff]   ;;  %v3342_v29 = vld [vmem:[#allocation36_spill] sm:$0xff] }
 0x386   :  { %1701 = vmatprep.subr.bf16.mxu1 %v2245_v55  ;;  %1190 = vmatprep.subr.bf16.mxu0 %v2768_v39  ;;  %v2257_v39 = vld [vmem:[#allocation7 + $0x104] ss:$8 sps:$4 sm:$0xff]   ;;  %v2288_v55 = vld [vmem:[#allocation7 + $0x1b0] ss:$8 sps:$4 sm:$0xff]  }
 0x389   :  { %1702 = vmatpush1.bf16.msra.mxu1 %v2243_v10  ;;  %1191 = vmatpush1.bf16.msra.mxu0 %v2772_v36  ;;  %v2255_v36 = vld [vmem:[#allocation7 + $0x100] ss:$8 sps:$4 sm:$0xff]  }
 0x38a   :  { %1703 = vmatprep.subr.bf16.mxu1 %v2248_v33  ;;  %1192 = vmatprep.subr.bf16.mxu0 %v2782_v56  ;;  %v2260_v56 = vld [vmem:[#allocation7 + $0x114] ss:$8 sps:$4 sm:$0xff]   ;;  %v3343_v10 = vld [vmem:[#allocation37_spill] sm:$0xff] }
 0x38b   :  { %v2293_v33 = vld [vmem:[#allocation7 + $0x1c4] ss:$8 sps:$4 sm:$0xff]  }
 0x38d   :  { %1704 = vmatpush1.bf16.msra.mxu1 %v2246_v7  ;;  %1193 = vmatpush1.bf16.msra.mxu0 %v2786_v61  ;;  %v735_v61 = vunpack.c.l.bf16 %v3025_v58  ;;  %v3344_v7 = vld [vmem:[#allocation38_spill] sm:$0xff] }
 0x38e   :  { %1705 = vmatprep.subr.bf16.mxu1 %v2251_v24  ;;  %1194 = vmatprep.subr.bf16.mxu0 %v2800_v52  ;;  %v2258_v52 = vld [vmem:[#allocation7 + $0x110] ss:$8 sps:$4 sm:$0xff]   ;;  %v2291_v24 = vld [vmem:[#allocation7 + $0x1c0] ss:$8 sps:$4 sm:$0xff]  }
 0x38f   :  { %v739_v21 = vsub.f32 %v3019_v12, %v735_v61  ;;  %v2267_v12 = vld [vmem:[#allocation7 + $0x140] ss:$8 sps:$4 sm:$0xff]   ;;  %v2302_v61 = vld [vmem:[#allocation7 + $0x1f4] ss:$8 sps:$4 sm:$0xff]  }
 0x391   :  { %1706 = vmatpush1.bf16.msra.mxu1 %v2249_v47  ;;  %1195 = vmatpush1.bf16.msra.mxu0 %v2796_v40  ;;  %v3323_v40 = vld [vmem:[#allocation49_spill] sm:$0xff]  ;;  %v743_v1 = vpack.c.bf16 %v739_v21, %v739_v21  ;;  %v3345_v47 = vld [vmem:[#allocation39_spill] sm:$0xff]  ;;  %v3353_v21 = vld [vmem:[#allocation52_spill] sm:$0xff] }
 0x392   :  { %1707 = vmatprep.subr.bf16.mxu1 %v2254_v60  ;;  %1196 = vmatprep.subr.bf16.mxu0 %v3320_v45  ;;  %v2296_v60 = vld [vmem:[#allocation7 + $0x1d4] ss:$8 sps:$4 sm:$0xff]   ;;  %v3347_v45 = vld [vmem:[#allocation40_spill] sm:$0xff] }
 0x395   :  { %1708 = vmatpush1.bf16.msra.mxu1 %v2252_v59  ;;  %1197 = vmatpush1.bf16.msra.mxu0 %v3321_v2  ;;  %v3346_v59 = vld [vmem:[#allocation41_spill] sm:$0xff]  ;;  %v3348_v2 = vld [vmem:[#allocation42_spill] sm:$0xff] }
 0x396   :  { %1718 = vmatprep.subr.bf16.mxu1 %v2257_v39  ;;  %1198 = vmatprep.subr.bf16.mxu0 %v3322_v26  ;;  %v2294_v39 = vld [vmem:[#allocation7 + $0x1d0] ss:$8 sps:$4 sm:$0xff]   ;;  %v3349_v26 = vld [vmem:[#allocation44_spill] sm:$0xff] }
 0x398   :  { %1710 = vmatmul.mubr.bf16.vlgmr.msra.gmra.mrb[4].mxu1 %v3033_v6 }
 0x399   :  { %1719 = vmatpush1.bf16.msra.mxu1 %v2255_v36  ;;  %1750 = vmatprep.mubr.bf16.mxu1 %v3021_v25  ;;  %v2264_v25 = vld [vmem:[#allocation7 + $0x130] ss:$8 sps:$4 sm:$0xff]   ;;  %v2299_v36 = vld [vmem:[#allocation7 + $0x1e4] ss:$8 sps:$4 sm:$0xff]  }
 0x39a   :  { %1199 = vmatpush1.bf16.msra.mxu0 %v3323_v40  ;;  %1720 = vmatprep.subr.bf16.mxu1 %v2260_v56  ;;  %v2297_v56 = vld [vmem:[#allocation7 + $0x1e0] ss:$8 sps:$4 sm:$0xff]   ;;  %v2300_v40 = vld [vmem:[#allocation7 + $0x1f0] ss:$8 sps:$4 sm:$0xff]  }
 0x39b   :  { %1200 = vmatprep.subr.bf16.mxu0 %v3324_v13  ;;  %v3352_v13 = vld [vmem:[#allocation50_spill] sm:$0xff] }
 0x39d   :  { %1721 = vmatpush1.bf16.msra.mxu1 %v2258_v52  ;;  %v3350_v52 = vld [vmem:[#allocation46_spill] sm:$0xff] }
 0x39e   :  { %1201 = vmatpush1.bf16.msra.mxu0 %v3325_v48  ;;  %1722 = vmatprep.subr.bf16.mxu1 %v2263_v20  ;;  %v3351_v20 = vld [vmem:[#allocation48_spill] sm:$0xff]  ;;  %v3355_v48 = vld [vmem:[#allocation55_spill] sm:$0xff] }
 0x39f   :  { %1211 = vmatprep.subr.bf16.mxu0 %v3326_v35  ;;  %v3357_v35 = vld [vmem:[#allocation56_spill] sm:$0xff] }
 0x3a1   :  { %1203 = vmatmul.mubr.bf16.vlgmr.msra.gmra.mrb[4].mxu0 %v743_v1  ;;  %1723 = vmatpush1.bf16.msra.mxu1 %v2261_v37  ;;  %v3354_v37 = vld [vmem:[#allocation54_spill] sm:$0xff]  ;;  %v3356_v1 = vld [vmem:[#allocation57_spill] sm:$0xff] }
 0x3a2   :  { %1212 = vmatpush1.bf16.msra.mxu0 %v3327_v28  ;;  %1243 = vmatprep.mubr.bf16.mxu0 %v3031_v38  ;;  %v2273_v38 = vld [vmem:[#allocation7 + $0x160] ss:$8 sps:$4 sm:$0xff]  }
 0x3a3   :  { %1213 = vmatprep.subr.bf16.mxu0 %v3328_v44  ;;  %1724 = vmatprep.subr.bf16.mxu1 %v2266_v5 }
 0x3a5   :  { %1725 = vmatpush1.bf16.msra.mxu1 %v2264_v25 }
 0x3a6   :  { %1214 = vmatpush1.bf16.msra.mxu0 %v3329_v30  ;;  %1726 = vmatprep.subr.bf16.mxu1 %v2269_v46 }
 0x3a7   :  { %1215 = vmatprep.subr.bf16.mxu0 %v3330_v0 }
 0x3a9   :  { %1727 = vmatpush1.bf16.msra.mxu1 %v2267_v12 }
 0x3aa   :  { %1216 = vmatpush1.bf16.msra.mxu0 %v3331_v14  ;;  %1728 = vmatprep.subr.bf16.mxu1 %v2272_v53 }
 0x3ab   :  { %1217 = vmatprep.subr.bf16.mxu0 %v3332_v31 }
 0x3ad   :  { %1729 = vmatpush1.bf16.msra.mxu1 %v2270_v3 }
 0x3ae   :  { %1218 = vmatpush1.bf16.msra.mxu0 %v3333_v4  ;;  %1730 = vmatprep.subr.bf16.mxu1 %v2275_v8 }
 0x3af   :  { %1219 = vmatprep.subr.bf16.mxu0 %v3334_v11 }
 0x3b1   :  { %1731 = vmatpush1.bf16.msra.mxu1 %v2273_v38 }
 0x3b2   :  { %1220 = vmatpush1.bf16.msra.mxu0 %v3335_v19  ;;  %1732 = vmatprep.subr.bf16.mxu1 %v2278_v27  ;;  %v3358_v19 = vld [vmem:[#allocation17_spill] sm:$0xff] }
 0x3b3   :  { %1221 = vmatprep.subr.bf16.mxu0 %v3336_v63 }
 0x3b5   :  { %1733 = vmatpush1.bf16.msra.mxu1 %v2276_v18 }
 0x3b6   :  { %1222 = vmatpush1.bf16.msra.mxu0 %v3337_v42  ;;  %1734 = vmatprep.subr.bf16.mxu1 %v2281_v43 }
 0x3b7   :  { %1223 = vmatprep.subr.bf16.mxu0 %v3338_v22 }
 0x3b9   :  { %1735 = vmatpush1.bf16.msra.mxu1 %v2279_v32 }
 0x3ba   :  { %1224 = vmatpush1.bf16.msra.mxu0 %v3339_v17  ;;  %1736 = vmatprep.subr.bf16.mxu1 %v2284_v16  ;;  %v3359_v17 = vld [vmem:[#allocation26_spill] sm:$0xff] }
 0x3bb   :  { %1225 = vmatprep.subr.bf16.mxu0 %v3340_v57  ;;  %v3360_v57 = vld [vmem:[#allocation29_spill] sm:$0xff] }
 0x3bd   :  { %1737 = vmatpush1.bf16.msra.mxu1 %v2282_v50 }
 0x3be   :  { %1226 = vmatpush1.bf16.msra.mxu0 %v3341_v34  ;;  %1738 = vmatprep.subr.bf16.mxu1 %v2287_v54 }
 0x3bf   :  { %1227 = vmatprep.subr.bf16.mxu0 %v3342_v29 }
 0x3c1   :  { %1739 = vmatpush1.bf16.msra.mxu1 %v2285_v51 }
 0x3c2   :  { %1228 = vmatpush1.bf16.msra.mxu0 %v3343_v10  ;;  %1740 = vmatprep.subr.bf16.mxu1 %v2290_v41 }
 0x3c3   :  { %1229 = vmatprep.subr.bf16.mxu0 %v3344_v7 }
 0x3c5   :  { %1741 = vmatpush1.bf16.msra.mxu1 %v2288_v55  ;;  %v3361_v55 = vld [vmem:[#allocation60_spill] sm:$0xff] }
 0x3c6   :  { %1230 = vmatpush1.bf16.msra.mxu0 %v3345_v47  ;;  %1742 = vmatprep.subr.bf16.mxu1 %v2293_v33  ;;  %v3362_v33 = vld [vmem:[#allocation58_spill] sm:$0xff] }
 0x3c7   :  { %1231 = vmatprep.subr.bf16.mxu0 %v3346_v59 }
 0x3c9   :  { %1743 = vmatpush1.bf16.msra.mxu1 %v2291_v24  ;;  %v3363_v24 = vld [vmem:[#allocation59_spill] sm:$0xff] }
 0x3ca   :  { %1232 = vmatpush1.bf16.msra.mxu0 %v3347_v45  ;;  %1744 = vmatprep.subr.bf16.mxu1 %v2296_v60 }
 0x3cb   :  { %1233 = vmatprep.subr.bf16.mxu0 %v3348_v2 }
 0x3cd   :  { %1745 = vmatpush1.bf16.msra.mxu1 %v2294_v39 }
 0x3ce   :  { %1234 = vmatpush1.bf16.msra.mxu0 %v3349_v26  ;;  %1746 = vmatprep.subr.bf16.mxu1 %v2299_v36  ;;  %v3364_v36 = vld [vmem:[#allocation68_spill] sm:$0xff] }
 0x3cf   :  { %1235 = vmatprep.subr.bf16.mxu0 %v3350_v52  ;;  %v3367_v52 = vld [vmem:[#allocation72_spill] sm:$0xff] }
 0x3d1   :  { %1747 = vmatpush1.bf16.msra.mxu1 %v2297_v56  ;;  %v3365_v56 = vld [vmem:[#allocation66_spill] sm:$0xff] }
 0x3d2   :  { %1236 = vmatpush1.bf16.msra.mxu0 %v3351_v20  ;;  %1748 = vmatprep.subr.bf16.mxu1 %v2302_v61  ;;  %v3368_v20 = vld [vmem:[#allocation73_spill] sm:$0xff] }
 0x3d3   :  { %1237 = vmatprep.subr.bf16.mxu0 %v3352_v13 }
 0x3d5   :  { %1749 = vmatpush1.bf16.msra.mxu1 %v2300_v40 }
 0x3d6   :  { %1238 = vmatpush1.bf16.msra.mxu0 %v3353_v21  ;;  %v3369_v21 = vld [vmem:[#allocation74_spill] sm:$0xff] }
 0x3d7   :  { %1239 = vmatprep.subr.bf16.mxu0 %v3354_v37 }
 0x3d8   :  { %1751 = vmatmul.mubr.bf16.vlgmr.msra.gmra.mrb[4].mxu1 %v3025_v58 }
 0x3da   :  { %1240 = vmatpush1.bf16.msra.mxu0 %v3355_v48  ;;  %v3372_v48 = vld [vmem:[#allocation63_spill] sm:$0xff] }
 0x3db   :  { %1241 = vmatprep.subr.bf16.mxu0 %v3356_v1 }
 0x3de   :  { %1242 = vmatpush1.bf16.msra.mxu0 %v3357_v35  ;;  %v3373_v35 = vld [vmem:[#allocation64_spill] sm:$0xff] }
 0x3e1   :  { %1244 = vmatmul.mubr.bf16.vlgmr.msra.gmra.mrb[4].mxu0 %v3033_v6  ;;  %v2421_v6 = vmov 1966171168  }
 0x3e2   :  { %v1777_v27 = vunpack.c.l.s4 %v2421_v6 }
 0x3e4   :  { %v1778_v11 = vunpack.c.0.s8 %v1777_v27  ;;  %v3382_v27 = vld [vmem:[#allocation79_spill] sm:$0xff] }
 0x3e6   :  { %v1781_v43 = vsub.s32 %v1778_v11, %v3358_v19 }
 0x4ab   :  { %v1752_v5 = vpop.f32.mrb[4].mxu1 }
 0x4ac   :  { %v1754_v25 = vpop.f32.mrb[5].mxu1 }
 0x4ad   :  { %v1756_v28 = vpop.f32.mrb[6].mxu1 }
 0x4ae   :  { %v1757_v46 = vpop.f32.mrb[7].mxu1 }
 0x4af   :  { %v3375_v46 = vld [vmem:[#allocation61_spill] sm:$0xff] }
 0x4b4   :  { %v1245_v44 = vpop.f32.mrb[4].mxu0 }
 0x4b5   :  { %v2081_v12 = vadd.f32 %v1752_v5, %v1245_v44  ;;  %v1247_v30 = vpop.f32.mrb[5].mxu0 }
 0x4b6   :  { %v2082_v53 = vadd.f32 %v1754_v25, %v1247_v30  ;;  %v1249_v0 = vpop.f32.mrb[6].mxu0  ;;  %v3374_v25 = vld [vmem:[#allocation62_spill] sm:$0xff] }
 0x4b7   :  { %v2032_v3 = vmul.f32 -1.442695, %v2081_v12  ;;  %v1250_v14 = vpop.f32.mrb[7].mxu0  ;;  %v3376_v12 = vld [vmem:[#allocation67_spill] sm:$0xff] }
 0x4b8   :  { %v2033_v58 = vmul.f32 -1.442695, %v2082_v53  ;;  %v3377_v53 = vld [vmem:[#allocation65_spill] sm:$0xff] }
 0x4b9   :  { %2307 = vpow2.f32 %v2032_v3  ;;  %v3378_v3 = vld [vmem:[#allocation69_spill] sm:$0xff] }
 0x4ba   :  { %2309 = vpow2.f32 %v2033_v58  ;;  %v3379_v58 = vld [vmem:[#allocation70_spill] sm:$0xff] }
 0x4c3   :  { %v2308_v8 = vpop.eup %2307 }
 0x4c4   :  { %v2310_v31 = vpop.eup %2309  ;;  %v1767_v38 = vadd.f32 1.0, %v2308_v8 }
 0x4c5   :  { %v1768_v4 = vadd.f32 1.0, %v2310_v31  ;;  %v3380_v31 = vld [vmem:[#allocation75_spill] sm:$0xff] }
 0x4c6   :  { %2311 = vrcp.f32 %v1767_v38 }
 0x4c7   :  { %2313 = vrcp.f32 %v1768_v4  ;;  %v3381_v4 = vld [vmem:[#allocation76_spill] sm:$0xff] }
 0x4d0   :  { %v2312_v18 = vpop.eup %2311 }
 0x4d1   :  { %v2314_v63 = vpop.eup %2313 }
 0x4d2   :  { %v1775_v32 = vcombine.low %v2312_v18, %v2314_v63  ;;  %v3383_v18 = vld [vmem:[#allocation12_spill] sm:$0xff] }
 0x4d4   :  { %v1782_v42 = vrot.slane %v1775_v32, %v1781_v43  ;;  %v3385_v32 = vld [vmem:[#allocation14_spill] sm:$0xff] }
 0x4d6   :  { %v1783_v16 = vcombine.high %v1782_v42, %v1782_v42  ;;  %v1790_v22 = vrot.slane %v1782_v42, %v1781_v43 }
 0x4d8   :  { %v1797_v50 = vrot.slane %v1783_v16, %v1781_v43  ;;  %v1801_v54 = vrot.slane %v1790_v22, %v3359_v17  ;;  %v1805_v51 = vrot.slane %v1790_v22, %v3360_v57  ;;  %v3384_v43 = vld [vmem:[#allocation13_spill] sm:$0xff]  ;;  %v3386_v16 = vld [vmem:[#allocation15_spill] sm:$0xff] }
 0x4da   :  { %v1809_v34 = vrot.slane %v1797_v50, %v3359_v17  ;;  %v1813_v41 = vrot.slane %v1797_v50, %v3360_v57  ;;  %v1818_v29 = vmul.f32 %v1801_v54, %v2866_v23  ;;  %v1819_v10 = vmul.f32 %v1805_v51, %v3361_v55  ;;  %v3366_v23 = vld [vmem:[#allocation71_spill] sm:$0xff]  ;;  %v3387_v50 = vld [vmem:[#allocation16_spill] sm:$0xff] }
 0x4db   :  { %v1820_v7 = vmul.f32 %v1801_v54, %v3362_v33  ;;  %v1821_v47 = vmul.f32 %v1805_v51, %v3363_v24  ;;  %v1822_v60 = vmul.f32 %v1801_v54, %v2872_v62  ;;  %v1823_v59 = vmul.f32 %v1805_v51, %v2875_v49  ;;  %v3370_v49 = vld [vmem:[#allocation77_spill] sm:$0xff] }
 0x4dc   :  { %v1824_v39 = vmul.f32 %v1801_v54, %v2891_v15  ;;  %v1825_v45 = vmul.f32 %v1805_v51, %v2881_v9  ;;  %v1826_v2 = vmul.f32 %v1801_v54, %v3364_v36  ;;  %v1827_v26 = vmul.f32 %v1805_v51, %v3365_v56  ;;  %1850 = vst [vmem:[#allocation8] sm:$0xff] %v1818_v29  ;;  %v3371_v15 = vld [vmem:[#allocation78_spill] sm:$0xff] }
 0x4dd   :  { %1851 = vst [vmem:[#allocation8 + $0x8] sm:$0xff] %v1819_v10  ;;  %v1828_v61 = vmul.f32 %v1801_v54, %v3366_v23  ;;  %v1829_v40 = vmul.f32 %v1805_v51, %v3367_v52  ;;  %v1830_v13 = vmul.f32 %v1801_v54, %v3368_v20  ;;  %v1831_v62 = vmul.f32 %v1805_v51, %v3369_v21 }
 0x4de   :  { %1852 = vst [vmem:[#allocation8 + $0x10] sm:$0xff] %v1820_v7  ;;  %1853 = vst [vmem:[#allocation8 + $0x18] sm:$0xff] %v1821_v47  ;;  %v1832_v9 = vmul.f32 %v1801_v54, %v3370_v49  ;;  %v1833_v37 = vmul.f32 %v1805_v51, %v3371_v15  ;;  %v1834_v1 = vmul.f32 %v1809_v34, %v3372_v48 }
 0x4df   :  { %1854 = vst [vmem:[#allocation8 + $0x20] sm:$0xff] %v1822_v60  ;;  %1855 = vst [vmem:[#allocation8 + $0x28] sm:$0xff] %v1823_v59  ;;  %v1835_v5 = vmul.f32 %v1813_v41, %v3373_v35  ;;  %v1836_v28 = vmul.f32 %v1809_v34, %v3374_v25  ;;  %v1837_v44 = vmul.f32 %v1813_v41, %v3375_v46 }
 0x4e0   :  { %1856 = vst [vmem:[#allocation8 + $0x30] sm:$0xff] %v1824_v39  ;;  %1857 = vst [vmem:[#allocation8 + $0x38] sm:$0xff] %v1825_v45  ;;  %v1838_v30 = vmul.f32 %v1809_v34, %v3376_v12  ;;  %v1839_v0 = vmul.f32 %v1813_v41, %v3377_v53  ;;  %v1840_v14 = vmul.f32 %v1809_v34, %v3378_v3 }
 0x4e1   :  { %1858 = vst [vmem:[#allocation8 + $0x40] sm:$0xff] %v1826_v2  ;;  %1859 = vst [vmem:[#allocation8 + $0x48] sm:$0xff] %v1827_v26  ;;  %v1841_v8 = vmul.f32 %v1813_v41, %v3379_v58  ;;  %v1842_v38 = vmul.f32 %v1809_v34, %v3380_v31  ;;  %v1843_v6 = vmul.f32 %v1813_v41, %v3381_v4 }
 0x4e2   :  { %1860 = vst [vmem:[#allocation8 + $0x50] sm:$0xff] %v1828_v61  ;;  %1861 = vst [vmem:[#allocation8 + $0x58] sm:$0xff] %v1829_v40  ;;  %v1844_v11 = vmul.f32 %v1809_v34, %v3382_v27  ;;  %v1845_v19 = vmul.f32 %v1813_v41, %v3383_v18  ;;  %v1846_v63 = vmul.f32 %v1809_v34, %v3384_v43 }
 0x4e3   :  { %1862 = vst [vmem:[#allocation8 + $0x60] sm:$0xff] %v1830_v13  ;;  %1863 = vst [vmem:[#allocation8 + $0x68] sm:$0xff] %v1831_v62  ;;  %v1847_v42 = vmul.f32 %v1813_v41, %v3385_v32  ;;  %v1848_v22 = vmul.f32 %v1809_v34, %v3386_v16  ;;  %v1849_v17 = vmul.f32 %v1813_v41, %v3387_v50 }
 0x4e4   :  { %1864 = vst [vmem:[#allocation8 + $0x70] sm:$0xff] %v1832_v9  ;;  %1865 = vst [vmem:[#allocation8 + $0x78] sm:$0xff] %v1833_v37 }
 0x4e5   :  { %1866 = vst [vmem:[#allocation8 + $0x80] sm:$0xff] %v1834_v1  ;;  %1867 = vst [vmem:[#allocation8 + $0x88] sm:$0xff] %v1835_v5 }
 0x4e6   :  { %1868 = vst [vmem:[#allocation8 + $0x90] sm:$0xff] %v1836_v28  ;;  %1869 = vst [vmem:[#allocation8 + $0x98] sm:$0xff] %v1837_v44 }
 0x4e7   :  { %1870 = vst [vmem:[#allocation8 + $0xa0] sm:$0xff] %v1838_v30  ;;  %1871 = vst [vmem:[#allocation8 + $0xa8] sm:$0xff] %v1839_v0 }
 0x4e8   :  { %1872 = vst [vmem:[#allocation8 + $0xb0] sm:$0xff] %v1840_v14  ;;  %1873 = vst [vmem:[#allocation8 + $0xb8] sm:$0xff] %v1841_v8 }
 0x4e9   :  { %1874 = vst [vmem:[#allocation8 + $0xc0] sm:$0xff] %v1842_v38  ;;  %1875 = vst [vmem:[#allocation8 + $0xc8] sm:$0xff] %v1843_v6 }
 0x4ea   :  { %1876 = vst [vmem:[#allocation8 + $0xd0] sm:$0xff] %v1844_v11  ;;  %1877 = vst [vmem:[#allocation8 + $0xd8] sm:$0xff] %v1845_v19 }
 0x4eb   :  { %1878 = vst [vmem:[#allocation8 + $0xe0] sm:$0xff] %v1846_v63  ;;  %1879 = vst [vmem:[#allocation8 + $0xe8] sm:$0xff] %v1847_v42 }
 0x4ec   :  { %1880 = vst [vmem:[#allocation8 + $0xf0] sm:$0xff] %v1848_v22  ;;  %1881 = vst [vmem:[#allocation8 + $0xf8] sm:$0xff] %v1849_v17 }
 0x4ed   :  { %2394 = shalt.err (!%p2391_p0)
}
 0x4ee   :  { %s2395_s27 = scalar_lea.hbm %s3166_s5, 4096 }
 0x4ef   :  { %p2396_p1 = scmp.ne.s32.totalorder %s3166_s5, %s2395_s27  ;;  %p2399_p2 = scmp.lt.u32.totalorder %s2395_s27, %s3166_s5 }
 0x4f1   :  { %p2401_p3 = pnand %p2399_p2, %p2396_p1 }
 0x4f3   :  { %2404 = shalt.err (!%p2401_p3)
}
 0x4f4   :  { %1893 = dma.vmem_to_hbm [thread:$0]  %s1888_s23, 4096, %s3166_s5, [#allocation4], %s2415_s3, %s2415_s3, %s2416_s17  }
 0x4f5   :  { %2409 = dma.done.wait [#allocation4], 4096  }
 0x4f6   :  { %2410 = vsyncadd [#allocation4], 4294963200 }
 0x4f7   :  { %1897 = vsyncpa [#allocation3], 1 }
 0x4f8   :  { %1898 = vsyncpa [#allocation6], 1 }
 0x4f9   :  { %1899 = vsyncpa [#allocation4], 1 }

// kernel: tpu_custom_call.1
= control target key start
LH: loop header
LB: loop body
LE: loop exit
PB: predicated region body
PF: predicated region fallthrough
CT: control target
= control target key end

     0   :  { %10 = vsyncpa [#allocation3], 0  ;;  %s3161_s0 = inlined_call_operand.hbm [shape: f32[2,64,256], index: 0, kind: input, shape index: {}]   ;;  %s3162_s1 = inlined_call_operand.vmem [shape: f32[64,4], index: 1, kind: input, shape index: {}]   ;;  %s3163_s2 = inlined_call_operand.vmem [shape: f32[4,64], index: 2, kind: input, shape index: {}]   ;;  %s3164_s3 = inlined_call_operand.hbm [shape: bf16[512,256], index: 3, kind: input, shape index: {}]   ;;  %s3165_s4 = inlined_call_operand.hbm [shape: bf16[512,256], index: 4, kind: input, shape index: {}]   ;;  %s3166_s5 = inlined_call_operand.hbm [shape: f32[2,64,256], index: 5, kind: output, shape index: {}]  }
   0x1   :  { %11 = vsyncpa [#allocation6], 0 }
   0x2   :  { %12 = vsyncpa [#allocation4], 0  ;;  %s2411_s18 = smov [#allocation5]   ;;  %s2317_s22 = scalar_lea.hbm %s3164_s3, 8192 }
   0x3   :  { %s34_s19 = sshll.u32 %s2411_s18, 4  ;;  %p2318_p0 = scmp.ne.s32.totalorder %s3164_s3, %s2317_s22  ;;  %s35_s19 = int_to_ptr.vmem [resolvable:$true] %s34_s19 }
   0x4   :  { %p2321_p1 = scmp.lt.u32.totalorder %s2317_s22, %s3164_s3 }
   0x6   :  { %p2323_p2 = pnand %p2321_p1, %p2318_p0 }
   0x8   :  { %2326 = shalt.err (!%p2323_p2)
}
   0x9   :  { %s2327_s27 = scalar_lea.vmem %s35_s19, 8192  ;;  %p2332_p4 = scmp.lt.s32.totalorder %s35_s19, %s35_s19 }
   0xa   :  { %p2328_p3 = scmp.ne.s32.totalorder %s35_s19, %s2327_s27  ;;  %p2333_p5 = scmp.lt.s32.totalorder %s2327_s27, %s2327_s27 }
   0xc   :  { %p2334_p6 = por %p2333_p5, %p2332_p4 }
   0xe   :  { %p2335_p7 = pnand %p2334_p6, %p2328_p3 }
  0x10   :  { %2338 = shalt.err (!%p2335_p7)
}
  0x11   :  { %s2412_s28 = smov 128   ;;  %s2413_s29 = smov 8  }
  0x12   :  { %40 = dma.hbm_to_vmem [thread:$0]  %s3164_s3, 8192, %s35_s19, [#allocation6], %s2412_s28, %s2412_s28, %s2413_s29  }
  0x13   :  { %s2414_s7 = smov [#allocation2]   ;;  %s2339_s11 = scalar_lea.hbm %s3161_s0, 4096 }
  0x14   :  { %s18_s8 = sshll.u32 %s2414_s7, 4  ;;  %p2340_p8 = scmp.ne.s32.totalorder %s3161_s0, %s2339_s11  ;;  %s19_s8 = int_to_ptr.vmem [resolvable:$true] %s18_s8 }
  0x15   :  { %p2343_p9 = scmp.lt.u32.totalorder %s2339_s11, %s3161_s0 }
  0x17   :  { %p2345_p10 = pnand %p2343_p9, %p2340_p8 }
  0x19   :  { %2348 = shalt.err (!%p2345_p10)
}
  0x1a   :  { %s2349_s16 = scalar_lea.vmem %s19_s8, 4096  ;;  %p2354_p12 = scmp.lt.s32.totalorder %s19_s8, %s19_s8 }
  0x1b   :  { %p2350_p11 = scmp.ne.s32.totalorder %s19_s8, %s2349_s16  ;;  %p2355_p13 = scmp.lt.s32.totalorder %s2349_s16, %s2349_s16 }
  0x1d   :  { %p2356_p0 = por %p2355_p13, %p2354_p12 }
  0x1f   :  { %p2357_p1 = pnand %p2356_p0, %p2350_p11 }
  0x21   :  { %2360 = shalt.err (!%p2357_p1)
}
  0x22   :  { %s2415_s3 = smov 256   ;;  %s2416_s17 = smov 16  }
  0x23   :  { %24 = dma.hbm_to_vmem [thread:$0]  %s3161_s0, 4096, %s19_s8, [#allocation3], %s2415_s3, %s2415_s3, %s2416_s17  }
  0x24   :  { %s2417_s20 = smov [#allocation7]   ;;  %s2361_s24 = scalar_lea.hbm %s3165_s4, 8192 }
  0x25   :  { %s46_s21 = sshll.u32 %s2417_s20, 4  ;;  %p2362_p2 = scmp.ne.s32.totalorder %s3165_s4, %s2361_s24  ;;  %s47_s21 = int_to_ptr.vmem [resolvable:$true] %s46_s21 }
  0x26   :  { %p2365_p3 = scmp.lt.u32.totalorder %s2361_s24, %s3165_s4 }
  0x28   :  { %p2367_p4 = pnand %p2365_p3, %p2362_p2 }
  0x2a   :  { %2370 = shalt.err (!%p2367_p4)
}
  0x2b   :  { %s2371_s6 = scalar_lea.vmem %s47_s21, 8192  ;;  %p2376_p6 = scmp.lt.s32.totalorder %s47_s21, %s47_s21 }
  0x2c   :  { %p2372_p5 = scmp.ne.s32.totalorder %s47_s21, %s2371_s6  ;;  %p2377_p7 = scmp.lt.s32.totalorder %s2371_s6, %s2371_s6 }
  0x2e   :  { %p2378_p8 = por %p2377_p7, %p2376_p6 }
  0x30   :  { %p2379_p9 = pnand %p2378_p8, %p2372_p5 }
  0x32   :  { %2382 = shalt.err (!%p2379_p9)
}
  0x33   :  { %52 = dma.hbm_to_vmem [thread:$0]  %s3165_s4, 8192, %s47_s21, [#allocation6], %s2412_s28, %s2412_s28, %s2413_s29  }
  0x34   :  { %2405 = dma.done.wait [#allocation3], 4096  }
  0x35   :  { %2406 = vsyncadd [#allocation3], 4294963200 }
  0x36   :  { %2407 = dma.done.wait [#allocation6], 16384  }
  0x37   :  { %2408 = vsyncadd [#allocation6], 4294950912  ;;  %v2498_v0 = vld [vmem:[#allocation2 + $0x80] sm:$0xff]  ;;  %v2500_v1 = vld [vmem:[#allocation2 + $0x88] sm:$0xff]  ;;  %v2418_v51 = vmov 0.0|0.0   ;;  %vm2419_vm0 = vmmov 0  }
  0x38   :  { %v2502_v2 = vld [vmem:[#allocation2] sm:$0xff]  ;;  %v118_v3 = vadd.f32 %v2500_v1, %v2498_v0  ;;  %v2506_v4 = vld [vmem:[#allocation2 + $0x8] sm:$0xff]  ;;  %v2508_v5 = vld [vmem:[#allocation2 + $0x90] sm:$0xff]  ;;  %2069 = vmatprep.subr.bf16.mxu0 %v2418_v51  ;;  %v2420_v61 = vmov 0.0   ;;  %vm194_vm1 = vcmask 130112   ;;  %vm201_vm2 = vcmask 195712  }
  0x39   :  { %v2510_v6 = vld [vmem:[#allocation2 + $0x98] sm:$0xff]  ;;  %v94_v7 = vadd.f32 %v2506_v4, %v2502_v2  ;;  %v2514_v8 = vld [vmem:[#allocation2 + $0x10] sm:$0xff]  ;;  %v2522_v12 = vld [vmem:[#allocation2 + $0xa0] sm:$0xff]  ;;  %2061 = vmatprep.mubr.msk.f32.mxu0 %vm2419_vm0, %v2420_v61  ;;  %2064 = vmatprep.subr.mxu1 %v2420_v61  ;;  %vm208_vm3 = vcmask 261312   ;;  %vm215_vm4 = vcmask 326912   ;;  %vm222_vm5 = vcmask 392512  }
  0x3a   :  { %v2516_v9 = vld [vmem:[#allocation2 + $0x18] sm:$0xff]  ;;  %119 = vadd.xlane.f32.xlu1 %v118_v3  ;;  %v121_v10 = vadd.f32 %v2510_v6, %v2508_v5  ;;  %v2524_v13 = vld [vmem:[#allocation2 + $0xa8] sm:$0xff]  ;;  %v2526_v14 = vld [vmem:[#allocation2 + $0x20] sm:$0xff]  ;;  %2066 = vmatprep.mubr.msk.f32.mxu1 %vm2419_vm0, %v2420_v61  ;;  %vm229_vm6 = vcmask 458112   ;;  %vm236_vm7 = vcmask 523712   ;;  %vm277_vm8 = vcmask 1041409  }
  0x3b   :  { %95 = vadd.xlane.f32.xlu0 %v94_v7  ;;  %v97_v11 = vadd.f32 %v2516_v9, %v2514_v8  ;;  %v2528_v15 = vld [vmem:[#allocation2 + $0x28] sm:$0xff]  ;;  %v124_v16 = vadd.f32 %v2524_v13, %v2522_v12  ;;  %v2534_v18 = vld [vmem:[#allocation2 + $0xb0] sm:$0xff]  ;;  %v2536_v19 = vld [vmem:[#allocation2 + $0xb8] sm:$0xff]  ;;  %vm279_vm9 = vcmask 523264   ;;  %vm358_vm10 = vcmask 1043456  }
  0x3c   :  { %v100_v17 = vadd.f32 %v2528_v15, %v2526_v14  ;;  %v2538_v20 = vld [vmem:[#allocation2 + $0x30] sm:$0xff]  ;;  %v2540_v21 = vld [vmem:[#allocation2 + $0x38] sm:$0xff]  ;;  %v86_v22 = vld [vmem:[#allocation2 + $0xc0] sm:$0xff]  ;;  %v127_v24 = vadd.f32 %v2536_v19, %v2534_v18  ;;  %vm354_vm11 = vcmask 31744  }
  0x3d   :  { %v87_v23 = vld [vmem:[#allocation2 + $0xc8] sm:$0xff]  ;;  %v2544_v25 = vld [vmem:[#allocation2 + $0x40] sm:$0xff]  ;;  %v103_v27 = vadd.f32 %v2540_v21, %v2538_v20  ;;  %v2550_v28 = vld [vmem:[#allocation2 + $0xd0] sm:$0xff] }
  0x3e   :  { %122 = vadd.xlane.f32.xlu1 %v121_v10  ;;  %v2546_v26 = vld [vmem:[#allocation2 + $0x48] sm:$0xff]  ;;  %v2552_v29 = vld [vmem:[#allocation2 + $0xd8] sm:$0xff]  ;;  %v130_v30 = vadd.f32 %v87_v23, %v86_v22  ;;  %v2554_v31 = vld [vmem:[#allocation2 + $0x50] sm:$0xff]  ;;  %v183_v10 = vlaneseq }
  0x3f   :  { %98 = vadd.xlane.f32.xlu0 %v97_v11  ;;  %3242 = vst [vmem:[#allocation12_spill] sm:$0xff] %v2552_v29  ;;  %v2556_v32 = vld [vmem:[#allocation2 + $0x58] sm:$0xff]  ;;  %v106_v33 = vadd.f32 %v2546_v26, %v2544_v25  ;;  %v2560_v34 = vld [vmem:[#allocation2 + $0xe0] sm:$0xff]  ;;  %v2562_v35 = vld [vmem:[#allocation2 + $0xe8] sm:$0xff]  ;;  %v133_v36 = vadd.f32 %v2552_v29, %v2550_v28 }
  0x40   :  { %3243 = vst [vmem:[#allocation13_spill] sm:$0xff] %v2560_v34  ;;  %3244 = vst [vmem:[#allocation14_spill] sm:$0xff] %v2562_v35  ;;  %v2566_v37 = vld [vmem:[#allocation2 + $0x60] sm:$0xff]  ;;  %v2568_v38 = vld [vmem:[#allocation2 + $0x68] sm:$0xff]  ;;  %v109_v39 = vadd.f32 %v2556_v32, %v2554_v31  ;;  %v136_v42 = vadd.f32 %v2562_v35, %v2560_v34  ;;  %v2612_v23 = vshrl.u32 %v183_v10, 7 }
  0x41   :  { %v2572_v40 = vld [vmem:[#allocation2 + $0xf0] sm:$0xff]  ;;  %v2574_v41 = vld [vmem:[#allocation2 + $0xf8] sm:$0xff]  ;;  %v112_v45 = vadd.f32 %v2568_v38, %v2566_v37  ;;  %v159_v48 = vld [vmem:[%s3162_s1] sm:$0xff] }
  0x42   :  { %125 = vadd.xlane.f32.xlu1 %v124_v16  ;;  %3245 = vst [vmem:[#allocation15_spill] sm:$0xff] %v2572_v40  ;;  %3246 = vst [vmem:[#allocation16_spill] sm:$0xff] %v2574_v41  ;;  %v2578_v43 = vld [vmem:[#allocation2 + $0x70] sm:$0xff]  ;;  %v2580_v44 = vld [vmem:[#allocation2 + $0x78] sm:$0xff]  ;;  %v139_v46 = vadd.f32 %v2574_v41, %v2572_v40 }
  0x43   :  { %101 = vadd.xlane.f32.xlu0 %v100_v17  ;;  %v115_v47 = vadd.f32 %v2580_v44, %v2578_v43  ;;  %v160_v49 = vld [vmem:[%s3162_s1 + $0x8] sm:$0xff]  ;;  %v161_v52 = vld [vmem:[%s3162_s1 + $0x10] sm:$0xff]  ;;  %v162_v53 = vld [vmem:[%s3162_s1 + $0x18] sm:$0xff]  ;;  %v184_v17 = vand.u32 127, %v183_v10  ;;  %3247 = vst [vmem:[#allocation17_spill] sm:$0xff] %v2612_v23 }
  0x44   :  { %v2070_v50 = vpack.c.bf16 %v160_v49, %v159_v48  ;;  %v2073_v54 = vpack.c.bf16 %v162_v53, %v161_v52  ;;  %v163_v55 = vld [vmem:[%s3162_s1 + $0x20] sm:$0xff]  ;;  %v164_v56 = vld [vmem:[%s3162_s1 + $0x28] sm:$0xff]  ;;  %v165_v58 = vld [vmem:[%s3162_s1 + $0x30] sm:$0xff] }
  0x45   :  { %v2076_v57 = vpack.c.bf16 %v164_v56, %v163_v55  ;;  %v166_v59 = vld [vmem:[%s3162_s1 + $0x38] sm:$0xff]  ;;  %v224_v49 = vadd.s32 4294967248, %v184_v17 }
  0x46   :  { %128 = vadd.xlane.f32.xlu1 %v127_v24  ;;  %2071 = vmatpush3.bf16.msra.mxu0 %v2070_v50  ;;  %v2079_v60 = vpack.c.bf16 %v166_v59, %v165_v58 }
  0x47   :  { %104 = vadd.xlane.f32.xlu0 %v103_v27  ;;  %2072 = vmatprep.subr.bf16.mxu0 %v2418_v51  ;;  %v189_v27 = vadd.s32 4294967288, %v184_v17 }
  0x4a   :  { %131 = vadd.xlane.f32.xlu1 %v130_v30  ;;  %2074 = vmatpush3.bf16.msra.mxu0 %v2073_v54  ;;  %v196_v30 = vadd.s32 4294967280, %v184_v17 }
  0x4b   :  { %107 = vadd.xlane.f32.xlu0 %v106_v33  ;;  %2075 = vmatprep.subr.bf16.mxu0 %v2418_v51  ;;  %v203_v33 = vadd.s32 4294967272, %v184_v17 }
  0x4c   :  { %v199_v48 = vsub.s32 %v196_v30, %v2612_v23 }
  0x4e   :  { %134 = vadd.xlane.f32.xlu1 %v133_v36  ;;  %2077 = vmatpush3.bf16.msra.mxu0 %v2076_v57  ;;  %v210_v36 = vadd.s32 4294967264, %v184_v17 }
  0x4f   :  { %110 = vadd.xlane.f32.xlu0 %v109_v39  ;;  %2078 = vmatprep.subr.bf16.mxu0 %v2418_v51  ;;  %v206_v51 = vsub.s32 %v203_v33, %v2612_v23 }
  0x50   :  { %v213_v52 = vsub.s32 %v210_v36, %v2612_v23  ;;  %v231_v36 = vadd.s32 4294967240, %v184_v17 }
  0x52   :  { %137 = vadd.xlane.f32.xlu1 %v136_v42  ;;  %2080 = vmatpush3.bf16.msra.mxu0 %v2079_v60  ;;  %v217_v42 = vadd.s32 4294967256, %v184_v17 }
  0x53   :  { %113 = vadd.xlane.f32.xlu0 %v112_v45  ;;  %v187_v45 = vsub.s32 %v184_v17, %v2612_v23  ;;  %v234_v17 = vsub.s32 %v231_v36, %v2612_v23 }
  0x54   :  { %v220_v55 = vsub.s32 %v217_v42, %v2612_v23 }
  0x56   :  { %140 = vadd.xlane.f32.xlu1 %v139_v46 }
  0x57   :  { %116 = vadd.xlane.f32.xlu0 %v115_v47  ;;  %v192_v47 = vsub.s32 %v189_v27, %v2612_v23 }
  0xc7   :  { %v120_v62 = vpop.xlane.xlu1 %119 }
  0xc8   :  { %v96_v63 = vpop.xlane.xlu0 %95  ;;  %v151_v57 = vmul.f32 0.00390625, %v120_v62 }
  0xc9   :  { %v143_v61 = vmul.f32 0.00390625, %v96_v63 }
  0xca   :  { %v241_v35 = vrot.slane %v151_v57, %v187_v45 }
  0xcb   :  { %v123_v3 = vpop.xlane.xlu1 %122  ;;  %v188_v29 = vrot.slane %v143_v61, %v187_v45 }
  0xcc   :  { %v99_v7 = vpop.xlane.xlu0 %98  ;;  %v152_v50 = vmul.f32 0.00390625, %v123_v3  ;;  %v227_v3 = vsub.s32 %v224_v49, %v2612_v23 }
  0xcd   :  { %v144_v53 = vmul.f32 0.00390625, %v99_v7 }
  0xce   :  { %v245_v30 = vrot.slane %v152_v50, %v192_v47 }
  0xcf   :  { %v126_v11 = vpop.xlane.xlu1 %125  ;;  %v193_v7 = vrot.slane %v144_v53, %v192_v47 }
  0xd0   :  { %v102_v16 = vpop.xlane.xlu0 %101  ;;  %v153_v54 = vmul.f32 0.00390625, %v126_v11  ;;  %v246_v49 = vsel %vm194_vm1, %v245_v30, %v241_v35 }
  0xd1   :  { %v145_v58 = vmul.f32 0.00390625, %v102_v16  ;;  %v195_v47 = vsel %vm194_vm1, %v193_v7, %v188_v29 }
  0xd2   :  { %v250_v11 = vrot.slane %v153_v54, %v199_v48 }
  0xd3   :  { %v129_v22 = vpop.xlane.xlu1 %128  ;;  %v200_v62 = vrot.slane %v145_v58, %v199_v48 }
  0xd4   :  { %v105_v24 = vpop.xlane.xlu0 %104  ;;  %v154_v59 = vmul.f32 0.00390625, %v129_v22  ;;  %v251_v53 = vsel %vm201_vm2, %v250_v11, %v246_v49  ;;  %v2650_v49 = vld [vmem:[#allocation5 + $0x4] ss:$8 sps:$4 sm:$0xff]  }
  0xd5   :  { %v146_v10 = vmul.f32 0.00390625, %v105_v24  ;;  %v202_v57 = vsel %vm201_vm2, %v200_v62, %v195_v47  ;;  %v2640_v62 = vld [vmem:[#allocation5 + $0x104] ss:$8 sps:$4 sm:$0xff]   ;;  %3248 = vst [vmem:[#allocation18_spill] sm:$0xff] %v2650_v49  ;;  %1129 = vmatprep.subr.bf16.mxu0 %v2650_v49  ;;  %v2852_v49 = vld [vmem:[#allocation5 + $0xf0] ss:$8 sps:$4 sm:$0xff]  }
  0xd6   :  { %v255_v16 = vrot.slane %v154_v59, %v206_v51  ;;  %3286 = vst [vmem:[#allocation56_spill] sm:$0xff] %v2852_v49 }
  0xd7   :  { %v132_v39 = vpop.xlane.xlu1 %131  ;;  %v207_v63 = vrot.slane %v146_v10, %v206_v51 }
  0xd8   :  { %v108_v46 = vpop.xlane.xlu0 %107  ;;  %v155_v27 = vmul.f32 0.00390625, %v132_v39  ;;  %v256_v45 = vsel %vm208_vm3, %v255_v16, %v251_v53  ;;  %v2642_v16 = vld [vmem:[#allocation5 + $0x114] ss:$8 sps:$4 sm:$0xff]  }
  0xd9   :  { %v147_v33 = vmul.f32 0.00390625, %v108_v46  ;;  %v209_v35 = vsel %vm208_vm3, %v207_v63, %v202_v57  ;;  %v2662_v53 = vld [vmem:[#allocation5 + $0x14] ss:$8 sps:$4 sm:$0xff]   ;;  %v2668_v57 = vld [vmem:[#allocation5 + $0x130] ss:$8 sps:$4 sm:$0xff]  }
  0xda   :  { %v260_v24 = vrot.slane %v155_v27, %v213_v52  ;;  %3250 = vst [vmem:[#allocation20_spill] sm:$0xff] %v2662_v53 }
  0xdb   :  { %v135_v56 = vpop.xlane.xlu1 %134  ;;  %v214_v50 = vrot.slane %v147_v33, %v213_v52  ;;  %v353_v33 = vld [vmem:[%s3163_s2] sm:$0xf]  ;;  %s2422_s2 = smov [#allocation8]  }
  0xdc   :  { %v111_v60 = vpop.xlane.xlu0 %110  ;;  %v156_v41 = vmul.f32 0.00390625, %v135_v56  ;;  %2065 = vmatpush3.msk.msra.mxu1 %vm358_vm10, %v353_v33  ;;  %v2723_v33 = vld [vmem:[#allocation5 + $0x174] ss:$8 sps:$4 sm:$0xff]   ;;  %s1887_s23 = sshll.u32 %s2422_s2, 4  ;;  %s1888_s23 = int_to_ptr.vmem [resolvable:$true] %s1887_s23 }
  0xdd   :  { %v148_v40 = vmul.f32 0.00390625, %v111_v60  ;;  %v216_v29 = vsel %vm215_vm4, %v214_v50, %v209_v35  ;;  %1252 = vmatprep.subr.bf16.mxu1 %v2640_v62  ;;  %v2652_v50 = vld [vmem:[#allocation5 + $0x124] ss:$8 sps:$4 sm:$0xff]   ;;  %v2686_v35 = vld [vmem:[#allocation5 + $0x34] ss:$8 sps:$4 sm:$0xff]   ;;  %s2383_s24 = scalar_lea.vmem %s1888_s23, 4096  ;;  %p2388_p11 = scmp.lt.s32.totalorder %s1888_s23, %s1888_s23 }
  0xde   :  { %v265_v46 = vrot.slane %v156_v41, %v220_v55  ;;  %v261_v41 = vsel %vm215_vm4, %v260_v24, %v256_v45  ;;  %v2674_v45 = vld [vmem:[#allocation5 + $0x24] ss:$8 sps:$4 sm:$0xff]   ;;  %3254 = vst [vmem:[#allocation24_spill] sm:$0xff] %v2686_v35  ;;  %p2384_p10 = scmp.ne.s32.totalorder %s1888_s23, %s2383_s24  ;;  %p2389_p12 = scmp.lt.s32.totalorder %s2383_s24, %s2383_s24 }
  0xdf   :  { %v138_v42 = vpop.xlane.xlu1 %137  ;;  %v221_v54 = vrot.slane %v148_v40, %v220_v55  ;;  %3252 = vst [vmem:[#allocation22_spill] sm:$0xff] %v2674_v45 }
  0xe0   :  { %v157_v22 = vmul.f32 0.00390625, %v138_v42  ;;  %v114_v34 = vpop.xlane.xlu0 %113  ;;  %v266_v59 = vsel %vm222_vm5, %v265_v46, %v261_v41  ;;  %v2638_v42 = vld [vmem:[#allocation5 + $0x100] ss:$8 sps:$4 sm:$0xff]   ;;  %v2688_v41 = vld [vmem:[#allocation5 + $0x154] ss:$8 sps:$4 sm:$0xff]   ;;  %p2390_p13 = por %p2389_p12, %p2388_p11 }
  0xe1   :  { %v149_v39 = vmul.f32 0.00390625, %v114_v34  ;;  %v223_v55 = vsel %vm222_vm5, %v221_v54, %v216_v29  ;;  %v2654_v46 = vld [vmem:[#allocation5] ss:$8 sps:$4 sm:$0xff]   ;;  %v2664_v54 = vld [vmem:[#allocation5 + $0x134] ss:$8 sps:$4 sm:$0xff]  }
  0xe2   :  { %v270_v56 = vrot.slane %v157_v22, %v227_v3  ;;  %v2646_v22 = vld [vmem:[#allocation5 + $0x110] ss:$8 sps:$4 sm:$0xff]   ;;  %3249 = vst [vmem:[#allocation19_spill] sm:$0xff] %v2654_v46  ;;  %p2391_p0 = pnand %p2390_p13, %p2384_p10 }
  0xe3   :  { %v141_v48 = vpop.xlane.xlu1 %140  ;;  %v228_v51 = vrot.slane %v149_v39, %v227_v3  ;;  %v2692_v29 = vld [vmem:[#allocation5 + $0x150] ss:$8 sps:$4 sm:$0xff]  }
  0xe4   :  { %v158_v58 = vmul.f32 0.00390625, %v141_v48  ;;  %v117_v34 = vpop.xlane.xlu0 %116  ;;  %v271_v60 = vsel %vm229_vm6, %v270_v56, %v266_v59  ;;  %v2666_v48 = vld [vmem:[#allocation5 + $0x10] ss:$8 sps:$4 sm:$0xff]   ;;  %v2695_v59 = vsub.s32 0, %v2612_v23 }
  0xe5   :  { %v150_v52 = vmul.f32 0.00390625, %v117_v34  ;;  %v230_v10 = vsel %vm229_vm6, %v228_v51, %v223_v55  ;;  %3251 = vst [vmem:[#allocation21_spill] sm:$0xff] %v2666_v48  ;;  %v2676_v51 = vld [vmem:[#allocation5 + $0x144] ss:$8 sps:$4 sm:$0xff]   ;;  %v2680_v34 = vld [vmem:[#allocation5 + $0x140] ss:$8 sps:$4 sm:$0xff]  }
  0xe6   :  { %v275_v40 = vrot.slane %v158_v58, %v234_v17  ;;  %v2678_v58 = vld [vmem:[#allocation5 + $0x20] ss:$8 sps:$4 sm:$0xff]   ;;  %3256 = vst [vmem:[#allocation26_spill] sm:$0xff] %v2695_v59  ;;  %v2703_v55 = vld [vmem:[#allocation5 + $0x164] ss:$8 sps:$4 sm:$0xff]  }
  0xe7   :  { %v235_v61 = vrot.slane %v150_v52, %v234_v17  ;;  %v2656_v17 = vld [vmem:[#allocation5 + $0x120] ss:$8 sps:$4 sm:$0xff]   ;;  %3253 = vst [vmem:[#allocation23_spill] sm:$0xff] %v2678_v58  ;;  %v2690_v52 = vld [vmem:[#allocation5 + $0x30] ss:$8 sps:$4 sm:$0xff]  }
  0xe8   :  { %v276_v27 = vsel %vm236_vm7, %v275_v40, %v271_v60  ;;  %3255 = vst [vmem:[#allocation25_spill] sm:$0xff] %v2690_v52  ;;  %v2701_v40 = vld [vmem:[#allocation5 + $0x44] ss:$8 sps:$4 sm:$0xff]  }
  0xe9   :  { %v237_v3 = vsel %vm236_vm7, %v235_v61, %v230_v10  ;;  %3257 = vst [vmem:[#allocation27_spill] sm:$0xff] %v2701_v40  ;;  %v2705_v61 = vld [vmem:[#allocation5 + $0x40] ss:$8 sps:$4 sm:$0xff]  }
  0xea   :  { %v278_v30 = vsel %vm277_vm8, %v276_v27, %v237_v3  ;;  %3258 = vst [vmem:[#allocation28_spill] sm:$0xff] %v2705_v61  ;;  %v2707_v10 = vld [vmem:[#allocation5 + $0x160] ss:$8 sps:$4 sm:$0xff]   ;;  %v2713_v3 = vsub.s32 1, %v2612_v23  ;;  %v2766_v23 = vld [vmem:[#allocation5 + $0x84] ss:$8 sps:$4 sm:$0xff]  }
  0xeb   :  { %2062 = vmatmul.mubr.msk.f32.vlgmr.msra.gmra.mrb[0].mxu0 %vm279_vm9, %v278_v30  ;;  %v2721_v30 = vld [vmem:[#allocation5 + $0x54] ss:$8 sps:$4 sm:$0xff]   ;;  %3266 = vst [vmem:[#allocation36_spill] sm:$0xff] %v2766_v23 }
  0xec   :  { %1130 = vmatpush1.bf16.msra.mxu0 %v2654_v46  ;;  %3259 = vst [vmem:[#allocation29_spill] sm:$0xff] %v2713_v3  ;;  %3260 = vst [vmem:[#allocation30_spill] sm:$0xff] %v2721_v30  ;;  %v2843_v46 = vld [vmem:[#allocation5 + $0xe4] ss:$8 sps:$4 sm:$0xff]  }
  0xed   :  { %1131 = vmatprep.subr.bf16.mxu0 %v2662_v53  ;;  %v2839_v53 = vld [vmem:[#allocation5 + $0x1f0] ss:$8 sps:$4 sm:$0xff]   ;;  %3284 = vst [vmem:[#allocation54_spill] sm:$0xff] %v2843_v46 }
  0xee   :  { %3283 = vst [vmem:[#allocation53_spill] sm:$0xff] %v2839_v53 }
  0xf0   :  { %1132 = vmatpush1.bf16.msra.mxu0 %v2666_v48  ;;  %v2826_v48 = vld [vmem:[#allocation5 + $0x1e0] ss:$8 sps:$4 sm:$0xff]  }
  0xf1   :  { %1133 = vmatprep.subr.bf16.mxu0 %v2674_v45  ;;  %v2816_v45 = vld [vmem:[#allocation5 + $0xc4] ss:$8 sps:$4 sm:$0xff]   ;;  %3279 = vst [vmem:[#allocation49_spill] sm:$0xff] %v2826_v48 }
  0xf2   :  { %3276 = vst [vmem:[#allocation46_spill] sm:$0xff] %v2816_v45 }
  0xf4   :  { %1134 = vmatpush1.bf16.msra.mxu0 %v2678_v58  ;;  %v2812_v58 = vld [vmem:[#allocation5 + $0x1d0] ss:$8 sps:$4 sm:$0xff]  }
  0xf5   :  { %1135 = vmatprep.subr.bf16.mxu0 %v2686_v35  ;;  %v2805_v35 = vld [vmem:[#allocation5 + $0x1d4] ss:$8 sps:$4 sm:$0xff]   ;;  %3275 = vst [vmem:[#allocation45_spill] sm:$0xff] %v2812_v58 }
  0xf6   :  { %3273 = vst [vmem:[#allocation43_spill] sm:$0xff] %v2805_v35 }
  0xf8   :  { %1136 = vmatpush1.bf16.msra.mxu0 %v2690_v52  ;;  %v2800_v52 = vld [vmem:[#allocation5 + $0x1c4] ss:$8 sps:$4 sm:$0xff]  }
  0xf9   :  { %1137 = vmatprep.subr.bf16.mxu0 %v2701_v40  ;;  %v2796_v40 = vld [vmem:[#allocation5 + $0x1c0] ss:$8 sps:$4 sm:$0xff]  }
  0xfc   :  { %1138 = vmatpush1.bf16.msra.mxu0 %v2705_v61  ;;  %v2786_v61 = vld [vmem:[#allocation5 + $0x1b0] ss:$8 sps:$4 sm:$0xff]  }
  0xfd   :  { %1139 = vmatprep.subr.bf16.mxu0 %v2721_v30  ;;  %v2784_v30 = vld [vmem:[#allocation5 + $0x90] ss:$8 sps:$4 sm:$0xff]  }
  0xfe   :  { %3269 = vst [vmem:[#allocation39_spill] sm:$0xff] %v2784_v30 }
 0x1be   :  { %v348_v36 = vpop.f32.mrb[0].mxu0 }
 0x1bf   :  { %v352_v7 = vmax.f32 %v348_v36, 0.0  ;;  %v2063_v11 = vpop.f32.mrb[1].mxu0  ;;  %v2725_v36 = vld [vmem:[#allocation5 + $0x50] ss:$8 sps:$4 sm:$0xff]  }
 0x1c0   :  { %3261 = vst [vmem:[#allocation31_spill] sm:$0xff] %v2725_v36  ;;  %1140 = vmatpush1.bf16.msra.mxu0 %v2725_v36  ;;  %v2772_v36 = vld [vmem:[#allocation5 + $0x1a0] ss:$8 sps:$4 sm:$0xff]  }
 0x1c1   :  { %2067 = vmatmul.mubr.msk.f32.vlgmr.msra.gmra.mrb[0].mxu1 %vm354_vm11, %v352_v7  ;;  %v2727_v7 = vld [vmem:[#allocation5 + $0x170] ss:$8 sps:$4 sm:$0xff]  }
 0x1c2   :  { %1253 = vmatpush1.bf16.msra.mxu1 %v2638_v42 }
 0x1c3   :  { %1254 = vmatprep.subr.bf16.mxu1 %v2642_v16 }
 0x1c6   :  { %1255 = vmatpush1.bf16.msra.mxu1 %v2646_v22 }
 0x1c7   :  { %1256 = vmatprep.subr.bf16.mxu1 %v2652_v50 }
 0x1ca   :  { %1257 = vmatpush1.bf16.msra.mxu1 %v2656_v17 }
 0x1cb   :  { %1258 = vmatprep.subr.bf16.mxu1 %v2664_v54 }
 0x1ce   :  { %1259 = vmatpush1.bf16.msra.mxu1 %v2668_v57 }
 0x1cf   :  { %1260 = vmatprep.subr.bf16.mxu1 %v2676_v51 }
 0x1d2   :  { %1261 = vmatpush1.bf16.msra.mxu1 %v2680_v34 }
 0x1d3   :  { %1262 = vmatprep.subr.bf16.mxu1 %v2688_v41 }
 0x1d6   :  { %1263 = vmatpush1.bf16.msra.mxu1 %v2692_v29 }
 0x1d7   :  { %1264 = vmatprep.subr.bf16.mxu1 %v2703_v55 }
 0x1da   :  { %1265 = vmatpush1.bf16.msra.mxu1 %v2707_v10 }
 0x1db   :  { %1266 = vmatprep.subr.bf16.mxu1 %v2723_v33 }
 0x1de   :  { %1267 = vmatpush1.bf16.msra.mxu1 %v2727_v7 }
 0x294   :  { %v428_v63 = vpop.f32.mrb[0].mxu1 }
 0x295   :  { %v1903_v24 = vmul.f32 -1.442695, %v428_v63  ;;  %v2068_v39 = vpop.f32.mrb[1].mxu1  ;;  %v2738_v63 = vld [vmem:[#allocation5 + $0x64] ss:$8 sps:$4 sm:$0xff]  }
 0x296   :  { %3262 = vst [vmem:[#allocation32_spill] sm:$0xff] %v2738_v63  ;;  %v2742_v39 = vld [vmem:[#allocation5 + $0x60] ss:$8 sps:$4 sm:$0xff]   ;;  %1141 = vmatprep.subr.bf16.mxu0 %v2738_v63 }
 0x297   :  { %2303 = vpow2.f32 %v1903_v24  ;;  %v2740_v24 = vld [vmem:[#allocation5 + $0x184] ss:$8 sps:$4 sm:$0xff]   ;;  %3263 = vst [vmem:[#allocation33_spill] sm:$0xff] %v2742_v39  ;;  %1142 = vmatpush1.bf16.msra.mxu0 %v2742_v39  ;;  %v2770_v63 = vld [vmem:[#allocation5 + $0x80] ss:$8 sps:$4 sm:$0xff]  }
 0x298   :  { %1268 = vmatprep.subr.bf16.mxu1 %v2740_v24  ;;  %v2768_v39 = vld [vmem:[#allocation5 + $0x1a4] ss:$8 sps:$4 sm:$0xff]   ;;  %3267 = vst [vmem:[#allocation37_spill] sm:$0xff] %v2770_v63 }
 0x2a1   :  { %v2304_v47 = vpop.eup %2303 }
 0x2a2   :  { %v435_v56 = vadd.f32 1.0, %v2304_v47  ;;  %v2744_v47 = vld [vmem:[#allocation5 + $0x180] ss:$8 sps:$4 sm:$0xff]  }
 0x2a3   :  { %1269 = vmatpush1.bf16.msra.mxu1 %v2744_v47 }
 0x2a4   :  { %2305 = vrcp.f32 %v435_v56  ;;  %v2752_v56 = vld [vmem:[#allocation5 + $0x74] ss:$8 sps:$4 sm:$0xff]  }
 0x2a5   :  { %3264 = vst [vmem:[#allocation34_spill] sm:$0xff] %v2752_v56  ;;  %1143 = vmatprep.subr.bf16.mxu0 %v2752_v56  ;;  %v2782_v56 = vld [vmem:[#allocation5 + $0x1b4] ss:$8 sps:$4 sm:$0xff]  }
 0x2ae   :  { %v2306_v60 = vpop.eup %2305 }
 0x2af   :  { %v2710_v27 = vrot.slane %v2306_v60, %v2695_v59  ;;  %v2730_v11 = vrot.slane %v2306_v60, %v2713_v3  ;;  %v2754_v60 = vld [vmem:[#allocation5 + $0x194] ss:$8 sps:$4 sm:$0xff]   ;;  %v2756_v3 = vld [vmem:[#allocation5 + $0x70] ss:$8 sps:$4 sm:$0xff]  }
 0x2b0   :  { %3265 = vst [vmem:[#allocation35_spill] sm:$0xff] %v2756_v3  ;;  %v2758_v59 = vld [vmem:[#allocation5 + $0x190] ss:$8 sps:$4 sm:$0xff]   ;;  %1270 = vmatprep.subr.bf16.mxu1 %v2754_v60  ;;  %1144 = vmatpush1.bf16.msra.mxu0 %v2756_v3  ;;  %v2780_v3 = vld [vmem:[#allocation5 + $0x94] ss:$8 sps:$4 sm:$0xff]  }
 0x2b1   :  { %447 = vbcast.lane.b32.xlu1 %v2710_v27, 264  ;;  %443 = vbcast.lane.b32.xlu0 %v2710_v27, 256  ;;  %3268 = vst [vmem:[#allocation38_spill] sm:$0xff] %v2780_v3 }
 0x2b2   :  { %1271 = vmatpush1.bf16.msra.mxu1 %v2758_v59  ;;  %1145 = vmatprep.subr.bf16.mxu0 %v2766_v23  ;;  %v2794_v23 = vld [vmem:[#allocation5 + $0xa4] ss:$8 sps:$4 sm:$0xff]  }
 0x2b3   :  { %1272 = vmatprep.subr.bf16.mxu1 %v2768_v39  ;;  %3271 = vst [vmem:[#allocation41_spill] sm:$0xff] %v2794_v23 }
 0x2b4   :  { %1146 = vmatpush1.bf16.msra.mxu0 %v2770_v63  ;;  %v2792_v63 = vld [vmem:[#allocation5 + $0xa0] ss:$8 sps:$4 sm:$0xff]  }
 0x2b5   :  { %478 = vbcast.lane.b32.xlu1 %v2730_v11, 256  ;;  %451 = vbcast.lane.b32.xlu0 %v2710_v27, 272  ;;  %3270 = vst [vmem:[#allocation40_spill] sm:$0xff] %v2792_v63 }
 0x2b6   :  { %1273 = vmatpush1.bf16.msra.mxu1 %v2772_v36  ;;  %1147 = vmatprep.subr.bf16.mxu0 %v2780_v3  ;;  %v2803_v3 = vld [vmem:[#allocation5 + $0xb4] ss:$8 sps:$4 sm:$0xff]  }
 0x2b7   :  { %1274 = vmatprep.subr.bf16.mxu1 %v2782_v56  ;;  %3272 = vst [vmem:[#allocation42_spill] sm:$0xff] %v2803_v3 }
 0x2b8   :  { %1148 = vmatpush1.bf16.msra.mxu0 %v2784_v30  ;;  %v2810_v30 = vld [vmem:[#allocation5 + $0xb0] ss:$8 sps:$4 sm:$0xff]  }
 0x2b9   :  { %482 = vbcast.lane.b32.xlu1 %v2730_v11, 264  ;;  %455 = vbcast.lane.b32.xlu0 %v2710_v27, 280  ;;  %3274 = vst [vmem:[#allocation44_spill] sm:$0xff] %v2810_v30 }
 0x2ba   :  { %1275 = vmatpush1.bf16.msra.mxu1 %v2786_v61  ;;  %1149 = vmatprep.subr.bf16.mxu0 %v2794_v23  ;;  %v2820_v23 = vld [vmem:[#allocation5 + $0x1e4] ss:$8 sps:$4 sm:$0xff]  }
 0x2bb   :  { %1276 = vmatprep.subr.bf16.mxu1 %v2800_v52  ;;  %3277 = vst [vmem:[#allocation47_spill] sm:$0xff] %v2820_v23 }
 0x2bc   :  { %1150 = vmatpush1.bf16.msra.mxu0 %v2792_v63  ;;  %v2824_v63 = vld [vmem:[#allocation5 + $0xc0] ss:$8 sps:$4 sm:$0xff]  }
 0x2bd   :  { %486 = vbcast.lane.b32.xlu1 %v2730_v11, 272  ;;  %459 = vbcast.lane.b32.xlu0 %v2710_v27, 288  ;;  %3278 = vst [vmem:[#allocation48_spill] sm:$0xff] %v2824_v63 }
 0x2be   :  { %1277 = vmatpush1.bf16.msra.mxu1 %v2796_v40  ;;  %1151 = vmatprep.subr.bf16.mxu0 %v2803_v3  ;;  %v2833_v3 = vld [vmem:[#allocation5 + $0x1f4] ss:$8 sps:$4 sm:$0xff]  }
 0x2bf   :  { %1278 = vmatprep.subr.bf16.mxu1 %v2805_v35  ;;  %3281 = vst [vmem:[#allocation51_spill] sm:$0xff] %v2833_v3 }
 0x2c0   :  { %1152 = vmatpush1.bf16.msra.mxu0 %v2810_v30  ;;  %v2837_v30 = vld [vmem:[#allocation5 + $0xd0] ss:$8 sps:$4 sm:$0xff]  }
 0x2c1   :  { %490 = vbcast.lane.b32.xlu1 %v2730_v11, 280  ;;  %463 = vbcast.lane.b32.xlu0 %v2710_v27, 296  ;;  %3282 = vst [vmem:[#allocation52_spill] sm:$0xff] %v2837_v30 }
 0x2c2   :  { %1279 = vmatpush1.bf16.msra.mxu1 %v2812_v58  ;;  %1153 = vmatprep.subr.bf16.mxu0 %v2816_v45  ;;  %v2848_v45 = vld [vmem:[#allocation5 + $0xe0] ss:$8 sps:$4 sm:$0xff]  }
 0x2c3   :  { %1280 = vmatprep.subr.bf16.mxu1 %v2820_v23  ;;  %3285 = vst [vmem:[#allocation55_spill] sm:$0xff] %v2848_v45 }
 0x2c4   :  { %1154 = vmatpush1.bf16.msra.mxu0 %v2824_v63  ;;  %v2206_v63 = vld [vmem:[#allocation7 + $0x4] ss:$8 sps:$4 sm:$0xff]  }
 0x2c5   :  { %494 = vbcast.lane.b32.xlu1 %v2730_v11, 288  ;;  %467 = vbcast.lane.b32.xlu0 %v2710_v27, 304 }
 0x2c6   :  { %1281 = vmatpush1.bf16.msra.mxu1 %v2826_v48 }
 0x2c7   :  { %1282 = vmatprep.subr.bf16.mxu1 %v2833_v3 }
 0x2c9   :  { %498 = vbcast.lane.b32.xlu1 %v2730_v11, 296  ;;  %471 = vbcast.lane.b32.xlu0 %v2710_v27, 312  ;;  %v2830_v27 = vld [vmem:[#allocation5 + $0xd4] ss:$8 sps:$4 sm:$0xff]  }
 0x2ca   :  { %3280 = vst [vmem:[#allocation50_spill] sm:$0xff] %v2830_v27  ;;  %1155 = vmatprep.subr.bf16.mxu0 %v2830_v27  ;;  %1283 = vmatpush1.bf16.msra.mxu1 %v2839_v53 }
 0x2cb   :  { %1156 = vmatpush1.bf16.msra.mxu0 %v2837_v30  ;;  %1677 = vmatprep.subr.bf16.mxu1 %v2206_v63 }
 0x2cc   :  { %1157 = vmatprep.subr.bf16.mxu0 %v2843_v46 }
 0x2cd   :  { %502 = vbcast.lane.b32.xlu1 %v2730_v11, 304 }
 0x2cf   :  { %1158 = vmatpush1.bf16.msra.mxu0 %v2848_v45 }
 0x2d1   :  { %506 = vbcast.lane.b32.xlu1 %v2730_v11, 312  ;;  %v2854_v11 = vld [vmem:[#allocation5 + $0xf4] ss:$8 sps:$4 sm:$0xff]  }
 0x2d2   :  { %3287 = vst [vmem:[#allocation57_spill] sm:$0xff] %v2854_v11  ;;  %1159 = vmatprep.subr.bf16.mxu0 %v2854_v11 }
 0x2d3   :  { %1160 = vmatpush1.bf16.msra.mxu0 %v2852_v49 }
 0x2d4   :  { %1170 = vmatprep.subr.bf16.mxu0 %v2640_v62 }
 0x323   :  { %v448_v30 = vpop.permute.xlu1 %447  ;;  %v444_v27 = vpop.permute.xlu0 %443 }
 0x324   :  { %v2860_v63 = vmul.f32 %v448_v30, %v2514_v8  ;;  %v2863_v45 = vmul.f32 %v448_v30, %v2516_v9  ;;  %v2866_v23 = vmul.f32 %v444_v27, %v2502_v2  ;;  %v2869_v11 = vmul.f32 %v444_v27, %v2506_v4 }
 0x326   :  { %3288 = vst [vmem:[#allocation58_spill] sm:$0xff] %v2860_v63  ;;  %3289 = vst [vmem:[#allocation59_spill] sm:$0xff] %v2863_v45  ;;  %v674_v2 = vmax.f32 %v2869_v11, %v2863_v45  ;;  %v661_v4 = vmax.f32 %v2866_v23, %v2860_v63 }
 0x327   :  { %v479_v53 = vpop.permute.xlu1 %478  ;;  %v452_v3 = vpop.permute.xlu0 %451  ;;  %3290 = vst [vmem:[#allocation60_spill] sm:$0xff] %v2869_v11 }
 0x328   :  { %v2872_v62 = vmul.f32 %v452_v3, %v2526_v14  ;;  %v2875_v49 = vmul.f32 %v452_v3, %v2528_v15  ;;  %v617_v3 = vadd.f32 %v2863_v45, %v2869_v11  ;;  %v2901_v30 = vmul.f32 %v479_v53, %v2500_v1 }
 0x32a   :  { %3294 = vst [vmem:[#allocation64_spill] sm:$0xff] %v2901_v30  ;;  %v675_v27 = vmax.f32 %v674_v2, %v2875_v49 }
 0x32b   :  { %v483_v48 = vpop.permute.xlu1 %482  ;;  %v456_v46 = vpop.permute.xlu0 %455 }
 0x32c   :  { %v2878_v8 = vmul.f32 %v483_v48, %v2510_v6  ;;  %v2881_v9 = vmul.f32 %v456_v46, %v2540_v21  ;;  %v2888_v14 = vmul.f32 %v483_v48, %v2508_v5  ;;  %v2891_v15 = vmul.f32 %v456_v46, %v2538_v20 }
 0x32d   :  { %v604_v6 = vadd.f32 %v2860_v63, %v2866_v23  ;;  %v2898_v21 = vmul.f32 %v479_v53, %v2498_v0  ;;  %v662_v5 = vmax.f32 %v661_v4, %v2872_v62  ;;  %v618_v63 = vadd.f32 %v617_v3, %v2875_v49 }
 0x32e   :  { %3291 = vst [vmem:[#allocation61_spill] sm:$0xff] %v2878_v8  ;;  %3292 = vst [vmem:[#allocation62_spill] sm:$0xff] %v2888_v14  ;;  %v676_v53 = vmax.f32 %v675_v27, %v2881_v9  ;;  %v643_v3 = vadd.f32 %v2878_v8, %v2901_v30 }
 0x32f   :  { %v487_v58 = vpop.permute.xlu1 %486  ;;  %v460_v35 = vpop.permute.xlu0 %459  ;;  %3293 = vst [vmem:[#allocation63_spill] sm:$0xff] %v2898_v21  ;;  %v605_v0 = vadd.f32 %v604_v6, %v2872_v62  ;;  %v687_v2 = vmax.f32 %v2898_v21, %v2888_v14  ;;  %v619_v4 = vadd.f32 %v618_v63, %v2881_v9 }
 0x330   :  { %v2906_v48 = vmul.f32 %v487_v58, %v2524_v13  ;;  %v2909_v20 = vmul.f32 %v460_v35, %v2546_v26  ;;  %v2914_v11 = vmul.f32 %v487_v58, %v2522_v12  ;;  %v2917_v1 = vmul.f32 %v460_v35, %v2544_v25 }
 0x331   :  { %v700_v13 = vmax.f32 %v2901_v30, %v2878_v8  ;;  %v663_v26 = vmax.f32 %v662_v5, %v2891_v15  ;;  %v606_v8 = vadd.f32 %v605_v0, %v2891_v15 }
 0x332   :  { %3295 = vst [vmem:[#allocation65_spill] sm:$0xff] %v2906_v48  ;;  %3296 = vst [vmem:[#allocation66_spill] sm:$0xff] %v2909_v20  ;;  %v677_v5 = vmax.f32 %v676_v53, %v2909_v20  ;;  %v644_v53 = vadd.f32 %v643_v3, %v2906_v48 }
 0x333   :  { %v491_v46 = vpop.permute.xlu1 %490  ;;  %v464_v45 = vpop.permute.xlu0 %463  ;;  %3297 = vst [vmem:[#allocation67_spill] sm:$0xff] %v2914_v11  ;;  %3298 = vst [vmem:[#allocation68_spill] sm:$0xff] %v2917_v1  ;;  %v701_v63 = vmax.f32 %v700_v13, %v2906_v48  ;;  %v607_v13 = vadd.f32 %v606_v8, %v2917_v1 }
 0x334   :  { %v2929_v12 = vmul.f32 %v491_v46, %v2534_v18  ;;  %v2932_v25 = vmul.f32 %v491_v46, %v2536_v19  ;;  %v2935_v58 = vmul.f32 %v464_v45, %v2554_v31  ;;  %v2938_v35 = vmul.f32 %v464_v45, %v2556_v32 }
 0x335   :  { %v630_v18 = vadd.f32 %v2888_v14, %v2898_v21  ;;  %v664_v32 = vmax.f32 %v663_v26, %v2917_v1  ;;  %v688_v45 = vmax.f32 %v687_v2, %v2914_v11  ;;  %v620_v46 = vadd.f32 %v619_v4, %v2909_v20  ;;  %v2316_v2 = vld [vmem:[#allocation2 + $0xc8] sm:$0xff] }
 0x336   :  { %3299 = vst [vmem:[#allocation69_spill] sm:$0xff] %v2929_v12  ;;  %3300 = vst [vmem:[#allocation70_spill] sm:$0xff] %v2932_v25  ;;  %v678_v14 = vmax.f32 %v677_v5, %v2938_v35 }
 0x337   :  { %3301 = vst [vmem:[#allocation71_spill] sm:$0xff] %v2935_v58  ;;  %3302 = vst [vmem:[#allocation72_spill] sm:$0xff] %v2938_v35  ;;  %v495_v6 = vpop.permute.xlu1 %494  ;;  %v468_v27 = vpop.permute.xlu0 %467  ;;  %v631_v0 = vadd.f32 %v630_v18, %v2914_v11  ;;  %v665_v30 = vmax.f32 %v664_v32, %v2935_v58  ;;  %v621_v8 = vadd.f32 %v620_v46, %v2938_v35 }
 0x338   :  { %v2946_v19 = vmul.f32 %v468_v27, %v2566_v37  ;;  %v2949_v31 = vmul.f32 %v468_v27, %v2568_v38  ;;  %v702_v37 = vmax.f32 %v701_v63, %v2932_v25  ;;  %v689_v38 = vmax.f32 %v688_v45, %v2929_v12  ;;  %v2315_v27 = vld [vmem:[#allocation2 + $0xc0] sm:$0xff] }
 0x339   :  { %v2961_v26 = vmul.f32 %v2315_v27, %v495_v6  ;;  %v2963_v21 = vmul.f32 %v2316_v2, %v495_v6  ;;  %v608_v18 = vadd.f32 %v607_v13, %v2935_v58  ;;  %v645_v6 = vadd.f32 %v644_v53, %v2932_v25 }
 0x33a   :  { %3303 = vst [vmem:[#allocation73_spill] sm:$0xff] %v2946_v19  ;;  %3304 = vst [vmem:[#allocation74_spill] sm:$0xff] %v2949_v31  ;;  %v679_v32 = vmax.f32 %v678_v14, %v2949_v31  ;;  %v666_v45 = vmax.f32 %v665_v30, %v2946_v19  ;;  %v622_v27 = vadd.f32 %v621_v8, %v2949_v31 }
 0x33b   :  { %3305 = vst [vmem:[#allocation75_spill] sm:$0xff] %v2961_v26  ;;  %3306 = vst [vmem:[#allocation76_spill] sm:$0xff] %v2963_v21  ;;  %v499_v4 = vpop.permute.xlu1 %498  ;;  %v472_v3 = vpop.permute.xlu0 %471  ;;  %v609_v2 = vadd.f32 %v608_v18, %v2946_v19  ;;  %v632_v46 = vadd.f32 %v631_v0, %v2929_v12  ;;  %v703_v30 = vmax.f32 %v702_v37, %v2963_v21  ;;  %v3312_v0 = vld [vmem:[#allocation13_spill] sm:$0xff]  ;;  %v3316_v19 = vld [vmem:[#allocation15_spill] sm:$0xff] }
 0x33c   :  { %v2968_v5 = vmul.f32 %v472_v3, %v2578_v43  ;;  %v2971_v63 = vmul.f32 %v472_v3, %v2580_v44  ;;  %v2980_v13 = vmul.f32 %v499_v4, %v2550_v28  ;;  %v3310_v43 = vld [vmem:[#allocation12_spill] sm:$0xff]  ;;  %v690_v8 = vmax.f32 %v689_v38, %v2961_v26  ;;  %v3314_v28 = vld [vmem:[#allocation14_spill] sm:$0xff] }
 0x33d   :  { %v2983_v48 = vmul.f32 %v499_v4, %v3310_v43  ;;  %v633_v37 = vadd.f32 %v632_v46, %v2961_v26 }
 0x33e   :  { %3307 = vst [vmem:[#allocation77_spill] sm:$0xff] %v2968_v5  ;;  %3308 = vst [vmem:[#allocation78_spill] sm:$0xff] %v2971_v63  ;;  %v680_v44 = vmax.f32 %v679_v32, %v2971_v63  ;;  %v667_v14 = vmax.f32 %v666_v45, %v2968_v5  ;;  %v623_v53 = vadd.f32 %v622_v27, %v2971_v63 }
 0x33f   :  { %3309 = vst [vmem:[#allocation79_spill] sm:$0xff] %v2980_v13  ;;  %3311 = vst [vmem:[#allocation12_spill] sm:$0xff] %v2983_v48  ;;  %v503_v3 = vpop.permute.xlu1 %502  ;;  %v610_v18 = vadd.f32 %v609_v2, %v2968_v5  ;;  %v646_v45 = vadd.f32 %v645_v6, %v2963_v21  ;;  %v704_v38 = vmax.f32 %v703_v30, %v2983_v48  ;;  %v3318_v6 = vld [vmem:[#allocation16_spill] sm:$0xff] }
 0x340   :  { %v2992_v25 = vmul.f32 %v503_v3, %v3312_v0  ;;  %v2995_v12 = vmul.f32 %v503_v3, %v3314_v28  ;;  %v681_v4 = vrot.slane %v680_v44, 4  ;;  %v668_v43 = vrot.slane %v667_v14, 4 }
 0x341   :  { %v624_v32 = vrot.slane %v623_v53, 4  ;;  %v611_v11 = vrot.slane %v610_v18, 4  ;;  %v691_v2 = vmax.f32 %v690_v8, %v2980_v13  ;;  %v647_v5 = vadd.f32 %v646_v45, %v2983_v48 }
 0x342   :  { %3313 = vst [vmem:[#allocation13_spill] sm:$0xff] %v2992_v25  ;;  %3315 = vst [vmem:[#allocation14_spill] sm:$0xff] %v2995_v12  ;;  %v682_v31 = vmax.f32 %v680_v44, %v681_v4  ;;  %v669_v27 = vmax.f32 %v667_v14, %v668_v43  ;;  %v634_v28 = vadd.f32 %v633_v37, %v2980_v13 }
 0x343   :  { %v507_v63 = vpop.permute.xlu1 %506  ;;  %v625_v0 = vadd.f32 %v624_v32, %v623_v53  ;;  %v612_v3 = vadd.f32 %v611_v11, %v610_v18  ;;  %v705_v46 = vmax.f32 %v704_v38, %v2995_v12  ;;  %v692_v44 = vmax.f32 %v691_v2, %v2992_v25 }
 0x344   :  { %v3004_v35 = vmul.f32 %v507_v63, %v3316_v19  ;;  %v3007_v21 = vmul.f32 %v507_v63, %v3318_v6  ;;  %v648_v30 = vadd.f32 %v647_v5, %v2995_v12  ;;  %v635_v53 = vadd.f32 %v634_v28, %v2992_v25 }
 0x345   :  { %v626_v14 = vrot.slane %v625_v0, 2  ;;  %v613_v8 = vrot.slane %v612_v3, 2  ;;  %v683_v4 = vrot.slane %v682_v31, 2  ;;  %v670_v18 = vrot.slane %v669_v27, 2 }
 0x346   :  { %3317 = vst [vmem:[#allocation15_spill] sm:$0xff] %v3004_v35  ;;  %3319 = vst [vmem:[#allocation16_spill] sm:$0xff] %v3007_v21  ;;  %v706_v11 = vmax.f32 %v705_v46, %v3007_v21  ;;  %v693_v19 = vmax.f32 %v692_v44, %v3004_v35  ;;  %v649_v43 = vadd.f32 %v648_v30, %v3007_v21 }
 0x347   :  { %v636_v63 = vadd.f32 %v635_v53, %v3004_v35  ;;  %v627_v37 = vadd.f32 %v626_v14, %v625_v0  ;;  %v614_v38 = vadd.f32 %v613_v8, %v612_v3  ;;  %v684_v5 = vmax.f32 %v682_v31, %v683_v4 }
 0x348   :  { %v707_v32 = vrot.slane %v706_v11, 4  ;;  %v694_v45 = vrot.slane %v693_v19, 4  ;;  %v650_v2 = vrot.slane %v649_v43, 4  ;;  %v671_v48 = vmax.f32 %v669_v27, %v670_v18 }
 0x349   :  { %v637_v6 = vrot.slane %v636_v63, 4  ;;  %v628_v58 = vrot.slane %v627_v37, 1  ;;  %v615_v44 = vrot.slane %v614_v38, 1  ;;  %v685_v21 = vrot.slane %v684_v5, 1 }
 0x34a   :  { %v708_v12 = vmax.f32 %v706_v11, %v707_v32  ;;  %v695_v28 = vmax.f32 %v693_v19, %v694_v45  ;;  %v651_v25 = vadd.f32 %v650_v2, %v649_v43  ;;  %v672_v35 = vrot.slane %v671_v48, 1 }
 0x34b   :  { %v638_v13 = vadd.f32 %v637_v6, %v636_v63  ;;  %v629_v31 = vadd.f32 %v628_v58, %v627_v37  ;;  %v616_v4 = vadd.f32 %v615_v44, %v614_v38  ;;  %v686_v18 = vmax.f32 %v684_v5, %v685_v21  ;;  %v2215_v44 = vld [vmem:[#allocation7 + $0x24] ss:$8 sps:$4 sm:$0xff]  }
 0x34c   :  { %v709_v46 = vrot.slane %v708_v12, 2  ;;  %v696_v26 = vrot.slane %v695_v28, 2  ;;  %v652_v20 = vrot.slane %v651_v25, 2  ;;  %v673_v43 = vmax.f32 %v671_v48, %v672_v35  ;;  %v2212_v48 = vld [vmem:[#allocation7 + $0x14] ss:$8 sps:$4 sm:$0xff]  }
 0x34d   :  { %v639_v30 = vrot.slane %v638_v13, 2 }
 0x34e   :  { %v710_v53 = vmax.f32 %v708_v12, %v709_v46  ;;  %v697_v1 = vmax.f32 %v695_v28, %v696_v26  ;;  %v653_v0 = vadd.f32 %v652_v20, %v651_v25  ;;  %v658_v26 = vmul.f32 0.015625, %v629_v31  ;;  %v2210_v28 = vld [vmem:[#allocation7 + $0x10] ss:$8 sps:$4 sm:$0xff]  }
 0x34f   :  { %v640_v3 = vadd.f32 %v639_v30, %v638_v13  ;;  %v657_v20 = vmul.f32 0.015625, %v616_v4  ;;  %v2204_v13 = vld [vmem:[#allocation7] ss:$8 sps:$4 sm:$0xff]   ;;  %v2218_v4 = vld [vmem:[#allocation7 + $0x34] ss:$8 sps:$4 sm:$0xff]  }
 0x350   :  { %v711_v14 = vrot.slane %v710_v53, 1  ;;  %v698_v8 = vrot.slane %v697_v1, 1  ;;  %v654_v27 = vrot.slane %v653_v0, 1 }
 0x351   :  { %v641_v11 = vrot.slane %v640_v3, 1 }
 0x352   :  { %v712_v19 = vmax.f32 %v710_v53, %v711_v14  ;;  %v699_v63 = vmax.f32 %v697_v1, %v698_v8  ;;  %v655_v32 = vadd.f32 %v654_v27, %v653_v0  ;;  %v2213_v14 = vld [vmem:[#allocation7 + $0x20] ss:$8 sps:$4 sm:$0xff]  }
 0x353   :  { %v642_v45 = vadd.f32 %v641_v11, %v640_v3  ;;  %v2216_v11 = vld [vmem:[#allocation7 + $0x30] ss:$8 sps:$4 sm:$0xff]  }
 0x354   :  { %v726_v2 = vsel %vm277_vm8, %v712_v19, %v686_v18  ;;  %v3019_v12 = vsel %vm277_vm8, %v699_v63, %v673_v43  ;;  %v660_v21 = vmul.f32 0.015625, %v655_v32  ;;  %v2221_v18 = vld [vmem:[#allocation7 + $0x44] ss:$8 sps:$4 sm:$0xff]   ;;  %v2219_v19 = vld [vmem:[#allocation7 + $0x40] ss:$8 sps:$4 sm:$0xff]  }
 0x355   :  { %v3021_v25 = vpack.c.bf16 %v726_v2, %v726_v2  ;;  %v3025_v58 = vpack.c.bf16 %v3019_v12, %v3019_v12  ;;  %v659_v37 = vmul.f32 0.015625, %v642_v45  ;;  %v2224_v43 = vld [vmem:[#allocation7 + $0x54] ss:$8 sps:$4 sm:$0xff]   ;;  %v2222_v63 = vld [vmem:[#allocation7 + $0x50] ss:$8 sps:$4 sm:$0xff]  }
 0x356   :  { %v718_v1 = vsel %vm277_vm8, %v660_v21, %v658_v26  ;;  %v2227_v32 = vld [vmem:[#allocation7 + $0x64] ss:$8 sps:$4 sm:$0xff]   ;;  %v3320_v45 = vld [vmem:[#allocation43_spill] sm:$0xff] }
 0x357   :  { %1284 = vmatprep.mubr.bf16.mxu1 %v3021_v25  ;;  %v717_v35 = vsel %vm277_vm8, %v659_v37, %v657_v20  ;;  %v3031_v38 = vpack.c.bf16 %v718_v1, %v718_v1  ;;  %v736_v5 = vunpack.c.l.bf16 %v3021_v25  ;;  %v3322_v26 = vld [vmem:[#allocation47_spill] sm:$0xff]  ;;  %v2263_v20 = vld [vmem:[#allocation7 + $0x124] ss:$8 sps:$4 sm:$0xff]   ;;  %v2261_v37 = vld [vmem:[#allocation7 + $0x120] ss:$8 sps:$4 sm:$0xff]  }
 0x358   :  { %1285 = vmatmul.mubr.bf16.vlgmr.msra.gmra.mrb[4].mxu1 %v3025_v58  ;;  %v3033_v6 = vpack.c.bf16 %v717_v35, %v717_v35 }
 0x359   :  { %1678 = vmatpush1.bf16.msra.mxu1 %v2204_v13  ;;  %1709 = vmatprep.mubr.bf16.mxu1 %v3031_v38  ;;  %v734_v46 = vunpack.c.l.bf16 %v3031_v38  ;;  %v740_v3 = vsub.f32 %v726_v2, %v736_v5  ;;  %v3321_v2 = vld [vmem:[#allocation45_spill] sm:$0xff]  ;;  %v3324_v13 = vld [vmem:[#allocation51_spill] sm:$0xff] }
 0x35a   :  { %1679 = vmatprep.subr.bf16.mxu1 %v2212_v48  ;;  %v733_v30 = vunpack.c.l.bf16 %v3033_v6  ;;  %v3325_v48 = vld [vmem:[#allocation53_spill] sm:$0xff]  ;;  %v2266_v5 = vld [vmem:[#allocation7 + $0x134] ss:$8 sps:$4 sm:$0xff]  }
 0x35b   :  { %v738_v53 = vsub.f32 %v718_v1, %v734_v46  ;;  %v744_v27 = vpack.c.bf16 %v740_v3, %v740_v3  ;;  %v2269_v46 = vld [vmem:[#allocation7 + $0x144] ss:$8 sps:$4 sm:$0xff]   ;;  %v2270_v3 = vld [vmem:[#allocation7 + $0x150] ss:$8 sps:$4 sm:$0xff]  }
 0x35c   :  { %v737_v0 = vsub.f32 %v717_v35, %v733_v30  ;;  %v3326_v35 = vld [vmem:[#allocation18_spill] sm:$0xff]  ;;  %v3329_v30 = vld [vmem:[#allocation21_spill] sm:$0xff] }
 0x35d   :  { %1680 = vmatpush1.bf16.msra.mxu1 %v2210_v28  ;;  %v742_v8 = vpack.c.bf16 %v738_v53, %v738_v53  ;;  %v3327_v28 = vld [vmem:[#allocation19_spill] sm:$0xff] }
 0x35e   :  { %1681 = vmatprep.subr.bf16.mxu1 %v2215_v44  ;;  %v741_v31 = vpack.c.bf16 %v737_v0, %v737_v0  ;;  %v3328_v44 = vld [vmem:[#allocation20_spill] sm:$0xff]  ;;  %v2272_v53 = vld [vmem:[#allocation7 + $0x154] ss:$8 sps:$4 sm:$0xff]  }
 0x35f   :  { %1161 = vmatprep.mubr.bf16.mxu0 %v742_v8  ;;  %v3330_v0 = vld [vmem:[#allocation22_spill] sm:$0xff]  ;;  %v2275_v8 = vld [vmem:[#allocation7 + $0x164] ss:$8 sps:$4 sm:$0xff]  }
 0x360   :  { %1162 = vmatmul.mubr.bf16.vlgmr.msra.gmra.mrb[4].mxu0 %v741_v31  ;;  %v3332_v31 = vld [vmem:[#allocation24_spill] sm:$0xff] }
 0x361   :  { %1682 = vmatpush1.bf16.msra.mxu1 %v2213_v14  ;;  %1171 = vmatpush1.bf16.msra.mxu0 %v2638_v42  ;;  %v2225_v42 = vld [vmem:[#allocation7 + $0x60] ss:$8 sps:$4 sm:$0xff]   ;;  %v3331_v14 = vld [vmem:[#allocation23_spill] sm:$0xff] }
 0x362   :  { %1202 = vmatprep.mubr.bf16.mxu0 %v744_v27  ;;  %1172 = vmatprep.subr.bf16.mxu0 %v2642_v16  ;;  %v2230_v16 = vld [vmem:[#allocation7 + $0x74] ss:$8 sps:$4 sm:$0xff]  }
 0x363   :  { %1683 = vmatprep.subr.bf16.mxu1 %v2218_v4  ;;  %v3333_v4 = vld [vmem:[#allocation25_spill] sm:$0xff]  ;;  %v2278_v27 = vld [vmem:[#allocation7 + $0x174] ss:$8 sps:$4 sm:$0xff]  }
 0x365   :  { %1684 = vmatpush1.bf16.msra.mxu1 %v2216_v11  ;;  %1173 = vmatpush1.bf16.msra.mxu0 %v2646_v22  ;;  %v2228_v22 = vld [vmem:[#allocation7 + $0x70] ss:$8 sps:$4 sm:$0xff]  }
 0x366   :  { %1685 = vmatprep.subr.bf16.mxu1 %v2221_v18  ;;  %1174 = vmatprep.subr.bf16.mxu0 %v2652_v50  ;;  %v2233_v50 = vld [vmem:[#allocation7 + $0x84] ss:$8 sps:$4 sm:$0xff]   ;;  %v3334_v11 = vld [vmem:[#allocation27_spill] sm:$0xff] }
 0x367   :  { %v2276_v18 = vld [vmem:[#allocation7 + $0x170] ss:$8 sps:$4 sm:$0xff]  }
 0x369   :  { %1686 = vmatpush1.bf16.msra.mxu1 %v2219_v19  ;;  %1175 = vmatpush1.bf16.msra.mxu0 %v2656_v17  ;;  %v2231_v17 = vld [vmem:[#allocation7 + $0x80] ss:$8 sps:$4 sm:$0xff]  }
 0x36a   :  { %1687 = vmatprep.subr.bf16.mxu1 %v2224_v43  ;;  %1176 = vmatprep.subr.bf16.mxu0 %v2664_v54  ;;  %v2236_v54 = vld [vmem:[#allocation7 + $0x94] ss:$8 sps:$4 sm:$0xff]   ;;  %v3335_v19 = vld [vmem:[#allocation28_spill] sm:$0xff] }
 0x36b   :  { %v2281_v43 = vld [vmem:[#allocation7 + $0x184] ss:$8 sps:$4 sm:$0xff]  }
 0x36d   :  { %1688 = vmatpush1.bf16.msra.mxu1 %v2222_v63  ;;  %1177 = vmatpush1.bf16.msra.mxu0 %v2668_v57  ;;  %v2234_v57 = vld [vmem:[#allocation7 + $0x90] ss:$8 sps:$4 sm:$0xff]  }
 0x36e   :  { %1689 = vmatprep.subr.bf16.mxu1 %v2227_v32  ;;  %1178 = vmatprep.subr.bf16.mxu0 %v2676_v51  ;;  %v2239_v51 = vld [vmem:[#allocation7 + $0xa4] ss:$8 sps:$4 sm:$0xff]   ;;  %v3336_v63 = vld [vmem:[#allocation30_spill] sm:$0xff]  ;;  %v2279_v32 = vld [vmem:[#allocation7 + $0x180] ss:$8 sps:$4 sm:$0xff]  }
 0x371   :  { %1690 = vmatpush1.bf16.msra.mxu1 %v2225_v42  ;;  %1179 = vmatpush1.bf16.msra.mxu0 %v2680_v34  ;;  %v2237_v34 = vld [vmem:[#allocation7 + $0xa0] ss:$8 sps:$4 sm:$0xff]   ;;  %v3337_v42 = vld [vmem:[#allocation31_spill] sm:$0xff] }
 0x372   :  { %1691 = vmatprep.subr.bf16.mxu1 %v2230_v16  ;;  %1180 = vmatprep.subr.bf16.mxu0 %v2688_v41  ;;  %v2242_v41 = vld [vmem:[#allocation7 + $0xb4] ss:$8 sps:$4 sm:$0xff]  }
 0x373   :  { %v2284_v16 = vld [vmem:[#allocation7 + $0x194] ss:$8 sps:$4 sm:$0xff]  }
 0x375   :  { %1692 = vmatpush1.bf16.msra.mxu1 %v2228_v22  ;;  %1181 = vmatpush1.bf16.msra.mxu0 %v2692_v29  ;;  %v2240_v29 = vld [vmem:[#allocation7 + $0xb0] ss:$8 sps:$4 sm:$0xff]   ;;  %v3338_v22 = vld [vmem:[#allocation32_spill] sm:$0xff] }
 0x376   :  { %1693 = vmatprep.subr.bf16.mxu1 %v2233_v50  ;;  %1182 = vmatprep.subr.bf16.mxu0 %v2703_v55  ;;  %v2245_v55 = vld [vmem:[#allocation7 + $0xc4] ss:$8 sps:$4 sm:$0xff]   ;;  %v2282_v50 = vld [vmem:[#allocation7 + $0x190] ss:$8 sps:$4 sm:$0xff]  }
 0x379   :  { %1694 = vmatpush1.bf16.msra.mxu1 %v2231_v17  ;;  %1183 = vmatpush1.bf16.msra.mxu0 %v2707_v10  ;;  %v2243_v10 = vld [vmem:[#allocation7 + $0xc0] ss:$8 sps:$4 sm:$0xff]  }
 0x37a   :  { %1695 = vmatprep.subr.bf16.mxu1 %v2236_v54  ;;  %1184 = vmatprep.subr.bf16.mxu0 %v2723_v33  ;;  %v2248_v33 = vld [vmem:[#allocation7 + $0xd4] ss:$8 sps:$4 sm:$0xff]   ;;  %v3339_v17 = vld [vmem:[#allocation33_spill] sm:$0xff] }
 0x37b   :  { %v2287_v54 = vld [vmem:[#allocation7 + $0x1a4] ss:$8 sps:$4 sm:$0xff]  }
 0x37d   :  { %1696 = vmatpush1.bf16.msra.mxu1 %v2234_v57  ;;  %1185 = vmatpush1.bf16.msra.mxu0 %v2727_v7  ;;  %v2246_v7 = vld [vmem:[#allocation7 + $0xd0] ss:$8 sps:$4 sm:$0xff]  }
 0x37e   :  { %1697 = vmatprep.subr.bf16.mxu1 %v2239_v51  ;;  %1186 = vmatprep.subr.bf16.mxu0 %v2740_v24  ;;  %v2251_v24 = vld [vmem:[#allocation7 + $0xe4] ss:$8 sps:$4 sm:$0xff]   ;;  %v3340_v57 = vld [vmem:[#allocation34_spill] sm:$0xff]  ;;  %v2285_v51 = vld [vmem:[#allocation7 + $0x1a0] ss:$8 sps:$4 sm:$0xff]  }
 0x381   :  { %1698 = vmatpush1.bf16.msra.mxu1 %v2237_v34  ;;  %1187 = vmatpush1.bf16.msra.mxu0 %v2744_v47  ;;  %v2249_v47 = vld [vmem:[#allocation7 + $0xe0] ss:$8 sps:$4 sm:$0xff]   ;;  %v3341_v34 = vld [vmem:[#allocation35_spill] sm:$0xff] }
 0x382   :  { %1699 = vmatprep.subr.bf16.mxu1 %v2242_v41  ;;  %1188 = vmatprep.subr.bf16.mxu0 %v2754_v60  ;;  %v2254_v60 = vld [vmem:[#allocation7 + $0xf4] ss:$8 sps:$4 sm:$0xff]  }
 0x383   :  { %v2290_v41 = vld [vmem:[#allocation7 + $0x1b4] ss:$8 sps:$4 sm:$0xff]  }
 0x385   :  { %1700 = vmatpush1.bf16.msra.mxu1 %v2240_v29  ;;  %1189 = vmatpush1.bf16.msra.mxu0 %v2758_v59  ;;  %v2252_v59 = vld [vmem:[#allocation7 + $0xf0] ss:$8 sps:$4 sm:$0xff]   ;;  %v3342_v29 = vld [vmem:[#allocation36_spill] sm:$0xff] }
 0x386   :  { %1701 = vmatprep.subr.bf16.mxu1 %v2245_v55  ;;  %1190 = vmatprep.subr.bf16.mxu0 %v2768_v39  ;;  %v2257_v39 = vld [vmem:[#allocation7 + $0x104] ss:$8 sps:$4 sm:$0xff]   ;;  %v2288_v55 = vld [vmem:[#allocation7 + $0x1b0] ss:$8 sps:$4 sm:$0xff]  }
 0x389   :  { %1702 = vmatpush1.bf16.msra.mxu1 %v2243_v10  ;;  %1191 = vmatpush1.bf16.msra.mxu0 %v2772_v36  ;;  %v2255_v36 = vld [vmem:[#allocation7 + $0x100] ss:$8 sps:$4 sm:$0xff]  }
 0x38a   :  { %1703 = vmatprep.subr.bf16.mxu1 %v2248_v33  ;;  %1192 = vmatprep.subr.bf16.mxu0 %v2782_v56  ;;  %v2260_v56 = vld [vmem:[#allocation7 + $0x114] ss:$8 sps:$4 sm:$0xff]   ;;  %v3343_v10 = vld [vmem:[#allocation37_spill] sm:$0xff] }
 0x38b   :  { %v2293_v33 = vld [vmem:[#allocation7 + $0x1c4] ss:$8 sps:$4 sm:$0xff]  }
 0x38d   :  { %1704 = vmatpush1.bf16.msra.mxu1 %v2246_v7  ;;  %1193 = vmatpush1.bf16.msra.mxu0 %v2786_v61  ;;  %v735_v61 = vunpack.c.l.bf16 %v3025_v58  ;;  %v3344_v7 = vld [vmem:[#allocation38_spill] sm:$0xff] }
 0x38e   :  { %1705 = vmatprep.subr.bf16.mxu1 %v2251_v24  ;;  %1194 = vmatprep.subr.bf16.mxu0 %v2800_v52  ;;  %v2258_v52 = vld [vmem:[#allocation7 + $0x110] ss:$8 sps:$4 sm:$0xff]   ;;  %v2291_v24 = vld [vmem:[#allocation7 + $0x1c0] ss:$8 sps:$4 sm:$0xff]  }
 0x38f   :  { %v739_v21 = vsub.f32 %v3019_v12, %v735_v61  ;;  %v2267_v12 = vld [vmem:[#allocation7 + $0x140] ss:$8 sps:$4 sm:$0xff]   ;;  %v2302_v61 = vld [vmem:[#allocation7 + $0x1f4] ss:$8 sps:$4 sm:$0xff]  }
 0x391   :  { %1706 = vmatpush1.bf16.msra.mxu1 %v2249_v47  ;;  %1195 = vmatpush1.bf16.msra.mxu0 %v2796_v40  ;;  %v3323_v40 = vld [vmem:[#allocation49_spill] sm:$0xff]  ;;  %v743_v1 = vpack.c.bf16 %v739_v21, %v739_v21  ;;  %v3345_v47 = vld [vmem:[#allocation39_spill] sm:$0xff]  ;;  %v3353_v21 = vld [vmem:[#allocation52_spill] sm:$0xff] }
 0x392   :  { %1707 = vmatprep.subr.bf16.mxu1 %v2254_v60  ;;  %1196 = vmatprep.subr.bf16.mxu0 %v3320_v45  ;;  %v2296_v60 = vld [vmem:[#allocation7 + $0x1d4] ss:$8 sps:$4 sm:$0xff]   ;;  %v3347_v45 = vld [vmem:[#allocation40_spill] sm:$0xff] }
 0x395   :  { %1708 = vmatpush1.bf16.msra.mxu1 %v2252_v59  ;;  %1197 = vmatpush1.bf16.msra.mxu0 %v3321_v2  ;;  %v3346_v59 = vld [vmem:[#allocation41_spill] sm:$0xff]  ;;  %v3348_v2 = vld [vmem:[#allocation42_spill] sm:$0xff] }
 0x396   :  { %1718 = vmatprep.subr.bf16.mxu1 %v2257_v39  ;;  %1198 = vmatprep.subr.bf16.mxu0 %v3322_v26  ;;  %v2294_v39 = vld [vmem:[#allocation7 + $0x1d0] ss:$8 sps:$4 sm:$0xff]   ;;  %v3349_v26 = vld [vmem:[#allocation44_spill] sm:$0xff] }
 0x398   :  { %1710 = vmatmul.mubr.bf16.vlgmr.msra.gmra.mrb[4].mxu1 %v3033_v6 }
 0x399   :  { %1719 = vmatpush1.bf16.msra.mxu1 %v2255_v36  ;;  %1750 = vmatprep.mubr.bf16.mxu1 %v3021_v25  ;;  %v2264_v25 = vld [vmem:[#allocation7 + $0x130] ss:$8 sps:$4 sm:$0xff]   ;;  %v2299_v36 = vld [vmem:[#allocation7 + $0x1e4] ss:$8 sps:$4 sm:$0xff]  }
 0x39a   :  { %1199 = vmatpush1.bf16.msra.mxu0 %v3323_v40  ;;  %1720 = vmatprep.subr.bf16.mxu1 %v2260_v56  ;;  %v2297_v56 = vld [vmem:[#allocation7 + $0x1e0] ss:$8 sps:$4 sm:$0xff]   ;;  %v2300_v40 = vld [vmem:[#allocation7 + $0x1f0] ss:$8 sps:$4 sm:$0xff]  }
 0x39b   :  { %1200 = vmatprep.subr.bf16.mxu0 %v3324_v13  ;;  %v3352_v13 = vld [vmem:[#allocation50_spill] sm:$0xff] }
 0x39d   :  { %1721 = vmatpush1.bf16.msra.mxu1 %v2258_v52  ;;  %v3350_v52 = vld [vmem:[#allocation46_spill] sm:$0xff] }
 0x39e   :  { %1201 = vmatpush1.bf16.msra.mxu0 %v3325_v48  ;;  %1722 = vmatprep.subr.bf16.mxu1 %v2263_v20  ;;  %v3351_v20 = vld [vmem:[#allocation48_spill] sm:$0xff]  ;;  %v3355_v48 = vld [vmem:[#allocation55_spill] sm:$0xff] }
 0x39f   :  { %1211 = vmatprep.subr.bf16.mxu0 %v3326_v35  ;;  %v3357_v35 = vld [vmem:[#allocation56_spill] sm:$0xff] }
 0x3a1   :  { %1203 = vmatmul.mubr.bf16.vlgmr.msra.gmra.mrb[4].mxu0 %v743_v1  ;;  %1723 = vmatpush1.bf16.msra.mxu1 %v2261_v37  ;;  %v3354_v37 = vld [vmem:[#allocation54_spill] sm:$0xff]  ;;  %v3356_v1 = vld [vmem:[#allocation57_spill] sm:$0xff] }
 0x3a2   :  { %1212 = vmatpush1.bf16.msra.mxu0 %v3327_v28  ;;  %1243 = vmatprep.mubr.bf16.mxu0 %v3031_v38  ;;  %v2273_v38 = vld [vmem:[#allocation7 + $0x160] ss:$8 sps:$4 sm:$0xff]  }
 0x3a3   :  { %1213 = vmatprep.subr.bf16.mxu0 %v3328_v44  ;;  %1724 = vmatprep.subr.bf16.mxu1 %v2266_v5 }
 0x3a5   :  { %1725 = vmatpush1.bf16.msra.mxu1 %v2264_v25 }
 0x3a6   :  { %1214 = vmatpush1.bf16.msra.mxu0 %v3329_v30  ;;  %1726 = vmatprep.subr.bf16.mxu1 %v2269_v46 }
 0x3a7   :  { %1215 = vmatprep.subr.bf16.mxu0 %v3330_v0 }
 0x3a9   :  { %1727 = vmatpush1.bf16.msra.mxu1 %v2267_v12 }
 0x3aa   :  { %1216 = vmatpush1.bf16.msra.mxu0 %v3331_v14  ;;  %1728 = vmatprep.subr.bf16.mxu1 %v2272_v53 }
 0x3ab   :  { %1217 = vmatprep.subr.bf16.mxu0 %v3332_v31 }
 0x3ad   :  { %1729 = vmatpush1.bf16.msra.mxu1 %v2270_v3 }
 0x3ae   :  { %1218 = vmatpush1.bf16.msra.mxu0 %v3333_v4  ;;  %1730 = vmatprep.subr.bf16.mxu1 %v2275_v8 }
 0x3af   :  { %1219 = vmatprep.subr.bf16.mxu0 %v3334_v11 }
 0x3b1   :  { %1731 = vmatpush1.bf16.msra.mxu1 %v2273_v38 }
 0x3b2   :  { %1220 = vmatpush1.bf16.msra.mxu0 %v3335_v19  ;;  %1732 = vmatprep.subr.bf16.mxu1 %v2278_v27  ;;  %v3358_v19 = vld [vmem:[#allocation17_spill] sm:$0xff] }
 0x3b3   :  { %1221 = vmatprep.subr.bf16.mxu0 %v3336_v63 }
 0x3b5   :  { %1733 = vmatpush1.bf16.msra.mxu1 %v2276_v18 }
 0x3b6   :  { %1222 = vmatpush1.bf16.msra.mxu0 %v3337_v42  ;;  %1734 = vmatprep.subr.bf16.mxu1 %v2281_v43 }
 0x3b7   :  { %1223 = vmatprep.subr.bf16.mxu0 %v3338_v22 }
 0x3b9   :  { %1735 = vmatpush1.bf16.msra.mxu1 %v2279_v32 }
 0x3ba   :  { %1224 = vmatpush1.bf16.msra.mxu0 %v3339_v17  ;;  %1736 = vmatprep.subr.bf16.mxu1 %v2284_v16  ;;  %v3359_v17 = vld [vmem:[#allocation26_spill] sm:$0xff] }
 0x3bb   :  { %1225 = vmatprep.subr.bf16.mxu0 %v3340_v57  ;;  %v3360_v57 = vld [vmem:[#allocation29_spill] sm:$0xff] }
 0x3bd   :  { %1737 = vmatpush1.bf16.msra.mxu1 %v2282_v50 }
 0x3be   :  { %1226 = vmatpush1.bf16.msra.mxu0 %v3341_v34  ;;  %1738 = vmatprep.subr.bf16.mxu1 %v2287_v54 }
 0x3bf   :  { %1227 = vmatprep.subr.bf16.mxu0 %v3342_v29 }
 0x3c1   :  { %1739 = vmatpush1.bf16.msra.mxu1 %v2285_v51 }
 0x3c2   :  { %1228 = vmatpush1.bf16.msra.mxu0 %v3343_v10  ;;  %1740 = vmatprep.subr.bf16.mxu1 %v2290_v41 }
 0x3c3   :  { %1229 = vmatprep.subr.bf16.mxu0 %v3344_v7 }
 0x3c5   :  { %1741 = vmatpush1.bf16.msra.mxu1 %v2288_v55  ;;  %v3361_v55 = vld [vmem:[#allocation60_spill] sm:$0xff] }
 0x3c6   :  { %1230 = vmatpush1.bf16.msra.mxu0 %v3345_v47  ;;  %1742 = vmatprep.subr.bf16.mxu1 %v2293_v33  ;;  %v3362_v33 = vld [vmem:[#allocation58_spill] sm:$0xff] }
 0x3c7   :  { %1231 = vmatprep.subr.bf16.mxu0 %v3346_v59 }
 0x3c9   :  { %1743 = vmatpush1.bf16.msra.mxu1 %v2291_v24  ;;  %v3363_v24 = vld [vmem:[#allocation59_spill] sm:$0xff] }
 0x3ca   :  { %1232 = vmatpush1.bf16.msra.mxu0 %v3347_v45  ;;  %1744 = vmatprep.subr.bf16.mxu1 %v2296_v60 }
 0x3cb   :  { %1233 = vmatprep.subr.bf16.mxu0 %v3348_v2 }
 0x3cd   :  { %1745 = vmatpush1.bf16.msra.mxu1 %v2294_v39 }
 0x3ce   :  { %1234 = vmatpush1.bf16.msra.mxu0 %v3349_v26  ;;  %1746 = vmatprep.subr.bf16.mxu1 %v2299_v36  ;;  %v3364_v36 = vld [vmem:[#allocation68_spill] sm:$0xff] }
 0x3cf   :  { %1235 = vmatprep.subr.bf16.mxu0 %v3350_v52  ;;  %v3367_v52 = vld [vmem:[#allocation72_spill] sm:$0xff] }
 0x3d1   :  { %1747 = vmatpush1.bf16.msra.mxu1 %v2297_v56  ;;  %v3365_v56 = vld [vmem:[#allocation66_spill] sm:$0xff] }
 0x3d2   :  { %1236 = vmatpush1.bf16.msra.mxu0 %v3351_v20  ;;  %1748 = vmatprep.subr.bf16.mxu1 %v2302_v61  ;;  %v3368_v20 = vld [vmem:[#allocation73_spill] sm:$0xff] }
 0x3d3   :  { %1237 = vmatprep.subr.bf16.mxu0 %v3352_v13 }
 0x3d5   :  { %1749 = vmatpush1.bf16.msra.mxu1 %v2300_v40 }
 0x3d6   :  { %1238 = vmatpush1.bf16.msra.mxu0 %v3353_v21  ;;  %v3369_v21 = vld [vmem:[#allocation74_spill] sm:$0xff] }
 0x3d7   :  { %1239 = vmatprep.subr.bf16.mxu0 %v3354_v37 }
 0x3d8   :  { %1751 = vmatmul.mubr.bf16.vlgmr.msra.gmra.mrb[4].mxu1 %v3025_v58 }
 0x3da   :  { %1240 = vmatpush1.bf16.msra.mxu0 %v3355_v48  ;;  %v3372_v48 = vld [vmem:[#allocation63_spill] sm:$0xff] }
 0x3db   :  { %1241 = vmatprep.subr.bf16.mxu0 %v3356_v1 }
 0x3de   :  { %1242 = vmatpush1.bf16.msra.mxu0 %v3357_v35  ;;  %v3373_v35 = vld [vmem:[#allocation64_spill] sm:$0xff] }
 0x3e1   :  { %1244 = vmatmul.mubr.bf16.vlgmr.msra.gmra.mrb[4].mxu0 %v3033_v6  ;;  %v2421_v6 = vmov 1966171168  }
 0x3e2   :  { %v1777_v27 = vunpack.c.l.s4 %v2421_v6 }
 0x3e4   :  { %v1778_v11 = vunpack.c.0.s8 %v1777_v27  ;;  %v3382_v27 = vld [vmem:[#allocation79_spill] sm:$0xff] }
 0x3e6   :  { %v1781_v43 = vsub.s32 %v1778_v11, %v3358_v19 }
 0x4ab   :  { %v1752_v5 = vpop.f32.mrb[4].mxu1 }
 0x4ac   :  { %v1754_v25 = vpop.f32.mrb[5].mxu1 }
 0x4ad   :  { %v1756_v28 = vpop.f32.mrb[6].mxu1 }
 0x4ae   :  { %v1757_v46 = vpop.f32.mrb[7].mxu1 }
 0x4af   :  { %v3375_v46 = vld [vmem:[#allocation61_spill] sm:$0xff] }
 0x4b4   :  { %v1245_v44 = vpop.f32.mrb[4].mxu0 }
 0x4b5   :  { %v2081_v12 = vadd.f32 %v1752_v5, %v1245_v44  ;;  %v1247_v30 = vpop.f32.mrb[5].mxu0 }
 0x4b6   :  { %v2082_v53 = vadd.f32 %v1754_v25, %v1247_v30  ;;  %v1249_v0 = vpop.f32.mrb[6].mxu0  ;;  %v3374_v25 = vld [vmem:[#allocation62_spill] sm:$0xff] }
 0x4b7   :  { %v2032_v3 = vmul.f32 -1.442695, %v2081_v12  ;;  %v1250_v14 = vpop.f32.mrb[7].mxu0  ;;  %v3376_v12 = vld [vmem:[#allocation67_spill] sm:$0xff] }
 0x4b8   :  { %v2033_v58 = vmul.f32 -1.442695, %v2082_v53  ;;  %v3377_v53 = vld [vmem:[#allocation65_spill] sm:$0xff] }
 0x4b9   :  { %2307 = vpow2.f32 %v2032_v3  ;;  %v3378_v3 = vld [vmem:[#allocation69_spill] sm:$0xff] }
 0x4ba   :  { %2309 = vpow2.f32 %v2033_v58  ;;  %v3379_v58 = vld [vmem:[#allocation70_spill] sm:$0xff] }
 0x4c3   :  { %v2308_v8 = vpop.eup %2307 }
 0x4c4   :  { %v2310_v31 = vpop.eup %2309  ;;  %v1767_v38 = vadd.f32 1.0, %v2308_v8 }
 0x4c5   :  { %v1768_v4 = vadd.f32 1.0, %v2310_v31  ;;  %v3380_v31 = vld [vmem:[#allocation75_spill] sm:$0xff] }
 0x4c6   :  { %2311 = vrcp.f32 %v1767_v38 }
 0x4c7   :  { %2313 = vrcp.f32 %v1768_v4  ;;  %v3381_v4 = vld [vmem:[#allocation76_spill] sm:$0xff] }
 0x4d0   :  { %v2312_v18 = vpop.eup %2311 }
 0x4d1   :  { %v2314_v63 = vpop.eup %2313 }
 0x4d2   :  { %v1775_v32 = vcombine.low %v2312_v18, %v2314_v63  ;;  %v3383_v18 = vld [vmem:[#allocation12_spill] sm:$0xff] }
 0x4d4   :  { %v1782_v42 = vrot.slane %v1775_v32, %v1781_v43  ;;  %v3385_v32 = vld [vmem:[#allocation14_spill] sm:$0xff] }
 0x4d6   :  { %v1783_v16 = vcombine.high %v1782_v42, %v1782_v42  ;;  %v1790_v22 = vrot.slane %v1782_v42, %v1781_v43 }
 0x4d8   :  { %v1797_v50 = vrot.slane %v1783_v16, %v1781_v43  ;;  %v1801_v54 = vrot.slane %v1790_v22, %v3359_v17  ;;  %v1805_v51 = vrot.slane %v1790_v22, %v3360_v57  ;;  %v3384_v43 = vld [vmem:[#allocation13_spill] sm:$0xff]  ;;  %v3386_v16 = vld [vmem:[#allocation15_spill] sm:$0xff] }
 0x4da   :  { %v1809_v34 = vrot.slane %v1797_v50, %v3359_v17  ;;  %v1813_v41 = vrot.slane %v1797_v50, %v3360_v57  ;;  %v1818_v29 = vmul.f32 %v1801_v54, %v2866_v23  ;;  %v1819_v10 = vmul.f32 %v1805_v51, %v3361_v55  ;;  %v3366_v23 = vld [vmem:[#allocation71_spill] sm:$0xff]  ;;  %v3387_v50 = vld [vmem:[#allocation16_spill] sm:$0xff] }
 0x4db   :  { %v1820_v7 = vmul.f32 %v1801_v54, %v3362_v33  ;;  %v1821_v47 = vmul.f32 %v1805_v51, %v3363_v24  ;;  %v1822_v60 = vmul.f32 %v1801_v54, %v2872_v62  ;;  %v1823_v59 = vmul.f32 %v1805_v51, %v2875_v49  ;;  %v3370_v49 = vld [vmem:[#allocation77_spill] sm:$0xff] }
 0x4dc   :  { %v1824_v39 = vmul.f32 %v1801_v54, %v2891_v15  ;;  %v1825_v45 = vmul.f32 %v1805_v51, %v2881_v9  ;;  %v1826_v2 = vmul.f32 %v1801_v54, %v3364_v36  ;;  %v1827_v26 = vmul.f32 %v1805_v51, %v3365_v56  ;;  %1850 = vst [vmem:[#allocation8] sm:$0xff] %v1818_v29  ;;  %v3371_v15 = vld [vmem:[#allocation78_spill] sm:$0xff] }
 0x4dd   :  { %1851 = vst [vmem:[#allocation8 + $0x8] sm:$0xff] %v1819_v10  ;;  %v1828_v61 = vmul.f32 %v1801_v54, %v3366_v23  ;;  %v1829_v40 = vmul.f32 %v1805_v51, %v3367_v52  ;;  %v1830_v13 = vmul.f32 %v1801_v54, %v3368_v20  ;;  %v1831_v62 = vmul.f32 %v1805_v51, %v3369_v21 }
 0x4de   :  { %1852 = vst [vmem:[#allocation8 + $0x10] sm:$0xff] %v1820_v7  ;;  %1853 = vst [vmem:[#allocation8 + $0x18] sm:$0xff] %v1821_v47  ;;  %v1832_v9 = vmul.f32 %v1801_v54, %v3370_v49  ;;  %v1833_v37 = vmul.f32 %v1805_v51, %v3371_v15  ;;  %v1834_v1 = vmul.f32 %v1809_v34, %v3372_v48 }
 0x4df   :  { %1854 = vst [vmem:[#allocation8 + $0x20] sm:$0xff] %v1822_v60  ;;  %1855 = vst [vmem:[#allocation8 + $0x28] sm:$0xff] %v1823_v59  ;;  %v1835_v5 = vmul.f32 %v1813_v41, %v3373_v35  ;;  %v1836_v28 = vmul.f32 %v1809_v34, %v3374_v25  ;;  %v1837_v44 = vmul.f32 %v1813_v41, %v3375_v46 }
 0x4e0   :  { %1856 = vst [vmem:[#allocation8 + $0x30] sm:$0xff] %v1824_v39  ;;  %1857 = vst [vmem:[#allocation8 + $0x38] sm:$0xff] %v1825_v45  ;;  %v1838_v30 = vmul.f32 %v1809_v34, %v3376_v12  ;;  %v1839_v0 = vmul.f32 %v1813_v41, %v3377_v53  ;;  %v1840_v14 = vmul.f32 %v1809_v34, %v3378_v3 }
 0x4e1   :  { %1858 = vst [vmem:[#allocation8 + $0x40] sm:$0xff] %v1826_v2  ;;  %1859 = vst [vmem:[#allocation8 + $0x48] sm:$0xff] %v1827_v26  ;;  %v1841_v8 = vmul.f32 %v1813_v41, %v3379_v58  ;;  %v1842_v38 = vmul.f32 %v1809_v34, %v3380_v31  ;;  %v1843_v6 = vmul.f32 %v1813_v41, %v3381_v4 }
 0x4e2   :  { %1860 = vst [vmem:[#allocation8 + $0x50] sm:$0xff] %v1828_v61  ;;  %1861 = vst [vmem:[#allocation8 + $0x58] sm:$0xff] %v1829_v40  ;;  %v1844_v11 = vmul.f32 %v1809_v34, %v3382_v27  ;;  %v1845_v19 = vmul.f32 %v1813_v41, %v3383_v18  ;;  %v1846_v63 = vmul.f32 %v1809_v34, %v3384_v43 }
 0x4e3   :  { %1862 = vst [vmem:[#allocation8 + $0x60] sm:$0xff] %v1830_v13  ;;  %1863 = vst [vmem:[#allocation8 + $0x68] sm:$0xff] %v1831_v62  ;;  %v1847_v42 = vmul.f32 %v1813_v41, %v3385_v32  ;;  %v1848_v22 = vmul.f32 %v1809_v34, %v3386_v16  ;;  %v1849_v17 = vmul.f32 %v1813_v41, %v3387_v50 }
 0x4e4   :  { %1864 = vst [vmem:[#allocation8 + $0x70] sm:$0xff] %v1832_v9  ;;  %1865 = vst [vmem:[#allocation8 + $0x78] sm:$0xff] %v1833_v37 }
 0x4e5   :  { %1866 = vst [vmem:[#allocation8 + $0x80] sm:$0xff] %v1834_v1  ;;  %1867 = vst [vmem:[#allocation8 + $0x88] sm:$0xff] %v1835_v5 }
 0x4e6   :  { %1868 = vst [vmem:[#allocation8 + $0x90] sm:$0xff] %v1836_v28  ;;  %1869 = vst [vmem:[#allocation8 + $0x98] sm:$0xff] %v1837_v44 }
 0x4e7   :  { %1870 = vst [vmem:[#allocation8 + $0xa0] sm:$0xff] %v1838_v30  ;;  %1871 = vst [vmem:[#allocation8 + $0xa8] sm:$0xff] %v1839_v0 }
 0x4e8   :  { %1872 = vst [vmem:[#allocation8 + $0xb0] sm:$0xff] %v1840_v14  ;;  %1873 = vst [vmem:[#allocation8 + $0xb8] sm:$0xff] %v1841_v8 }
 0x4e9   :  { %1874 = vst [vmem:[#allocation8 + $0xc0] sm:$0xff] %v1842_v38  ;;  %1875 = vst [vmem:[#allocation8 + $0xc8] sm:$0xff] %v1843_v6 }
 0x4ea   :  { %1876 = vst [vmem:[#allocation8 + $0xd0] sm:$0xff] %v1844_v11  ;;  %1877 = vst [vmem:[#allocation8 + $0xd8] sm:$0xff] %v1845_v19 }
 0x4eb   :  { %1878 = vst [vmem:[#allocation8 + $0xe0] sm:$0xff] %v1846_v63  ;;  %1879 = vst [vmem:[#allocation8 + $0xe8] sm:$0xff] %v1847_v42 }
 0x4ec   :  { %1880 = vst [vmem:[#allocation8 + $0xf0] sm:$0xff] %v1848_v22  ;;  %1881 = vst [vmem:[#allocation8 + $0xf8] sm:$0xff] %v1849_v17 }
 0x4ed   :  { %2394 = shalt.err (!%p2391_p0)
}
 0x4ee   :  { %s2395_s27 = scalar_lea.hbm %s3166_s5, 4096 }
 0x4ef   :  { %p2396_p1 = scmp.ne.s32.totalorder %s3166_s5, %s2395_s27  ;;  %p2399_p2 = scmp.lt.u32.totalorder %s2395_s27, %s3166_s5 }
 0x4f1   :  { %p2401_p3 = pnand %p2399_p2, %p2396_p1 }
 0x4f3   :  { %2404 = shalt.err (!%p2401_p3)
}
 0x4f4   :  { %1893 = dma.vmem_to_hbm [thread:$0]  %s1888_s23, 4096, %s3166_s5, [#allocation4], %s2415_s3, %s2415_s3, %s2416_s17  }
 0x4f5   :  { %2409 = dma.done.wait [#allocation4], 4096  }
 0x4f6   :  { %2410 = vsyncadd [#allocation4], 4294963200 }
 0x4f7   :  { %1897 = vsyncpa [#allocation3], 1 }
 0x4f8   :  { %1898 = vsyncpa [#allocation6], 1 }
 0x4f9   :  { %1899 = vsyncpa [#allocation4], 1 }

</bundles_post_ra>
